<compile_context>
chip_gen: v6e
topology: v6e:2x2x1
jax: 0.10.0
libtpu: 0.0.40
codegen_flags: <defaults>
</compile_context>

<pallas_src>
import jax
import jax.numpy as jnp
from jax.experimental import pallas as pl
from jax.experimental.pallas import tpu as pltpu

_IN = 784
_H1, _H2, _H3 = 1024, 512, 256
_TB_MAX = 1024          # max batch tile (portable to v7x's smaller VMEM)


def _discriminator_kernel(x_ref,
                          w1_ref, b1_ref,
                          w2_ref, b2_ref,
                          w3_ref, b3_ref,
                          w4_ref, b4_ref,
                          o_ref):
    """One batch tile of the 4-layer MLP.

    x_ref : (TB, 784) f32 tile (streamed / double-buffered per grid step);
            cast to bf16 in-kernel so the wrapper never re-writes x in HBM.
    wN_ref: bf16 weights (w4 in f32), bN_ref: f32 biases — all VMEM-resident
            across the whole grid (constant index_map).  Matmuls accumulate in
            f32 on the MXU; all elementwise math stays f32 on the VPU/EUP.
    """
    x = x_ref[...].astype(jnp.bfloat16)                               # (TB, 784)

    h = jnp.dot(x, w1_ref[...], preferred_element_type=jnp.float32)  # (TB, 1024)
    h = jnp.maximum(h + b1_ref[...], 0.0)

    h = jnp.dot(h.astype(jnp.bfloat16), w2_ref[...],
                preferred_element_type=jnp.float32)                   # (TB, 512)
    h = jnp.maximum(h + b2_ref[...], 0.0)

    h = jnp.dot(h.astype(jnp.bfloat16), w3_ref[...],
                preferred_element_type=jnp.float32)                   # (TB, 256)
    h = jnp.maximum(h + b3_ref[...], 0.0)

    # Final Linear(256, 1): VPU multiply + lane reduction instead of an N=1
    # MXU matmul (which would use 1/256 of the systolic array columns).
    logit = jnp.sum(h * w4_ref[...], axis=-1, keepdims=True) + b4_ref[...]

    # Exact sigmoid: exp + divide both on the EUP, which has slack here.
    o_ref[...] = 1.0 / (1.0 + jnp.exp(-logit))


def prepare_kernel_params(params):
    """Convert f32 PyTorch-style params to the kernel layout (done once).

    - W1 (784,1024), W2, W3 cast to bf16 (MXU operands).
    - W4 kept in f32 as a (1, 256) row (VPU lane reduction, never hits MXU).
    - Biases kept in f32.
    """
    (w1, b1), (w2, b2), (w3, b3), (w4, b4) = params
    return ((w1.astype(jnp.bfloat16), b1.astype(jnp.float32)),
            (w2.astype(jnp.bfloat16), b2.astype(jnp.float32)),
            (w3.astype(jnp.bfloat16), b3.astype(jnp.float32)),
            (w4.reshape(1, _H3).astype(jnp.float32),
             b4.reshape(1, 1).astype(jnp.float32)))


def _pick_batch_tile(b):
    """Static (trace-time) batch-tile choice.

    Large batches: 1024-row tiles (amortize per-step overhead, fits every
    generation's VMEM).  Medium batches: split into >= 2 grid steps so v7x can
    use both TensorCores.  Tiny batches: a single 8-row-aligned tile.
    """
    if b >= 2 * _TB_MAX:
        return _TB_MAX
    if b > 8:
        half = -(-b // 2)
        return -(-half // 8) * 8
    return 8


@jax.jit
def discriminator_forward(x_nchw, kernel_params):
    """Flatten input (== x.view(B, 784)) and run the fused Pallas MLP."""
    b = x_nchw.shape[0]
    x = x_nchw.reshape(b, _IN)            # layout-only; no HBM pass over x

    tb = _pick_batch_tile(b)
    b_pad = pl.cdiv(b, tb) * tb
    if b_pad != b:                        # only pads when B isn't a tile multiple
        x = jnp.pad(x, ((0, b_pad - b), (0, 0)))

    (w1, b1), (w2, b2), (w3, b3), (w4, b4) = kernel_params

    def resident(shape):
        # Constant block index -> stays VMEM-resident across all grid steps.
        return pl.BlockSpec(shape, lambda i: (0, 0))

    out = pl.pallas_call(
        _discriminator_kernel,
        out_shape=jax.ShapeDtypeStruct((b_pad, 1), jnp.float32),
        grid=(b_pad // tb,),
        in_specs=[
            pl.BlockSpec((tb, _IN), lambda i: (i, 0)),    # x tile (streamed)
            resident((_IN, _H1)), resident((1, _H1)),     # W1, b1
            resident((_H1, _H2)), resident((1, _H2)),     # W2, b2
            resident((_H2, _H3)), resident((1, _H3)),     # W3, b3
            resident((1, _H3)),   resident((1, 1)),       # W4 row (f32), b4
        ],
        out_specs=pl.BlockSpec((tb, 1), lambda i: (i, 0)),
        compiler_params=pltpu.CompilerParams(
            dimension_semantics=("parallel",),   # v7x: shard batch over 2 TCs
            vmem_limit_bytes=32 << 20),
    )(x, w1, b1, w2, b2, w3, b3, w4, b4)

    return out[:b]


def init_params(key):
    """PyTorch-style Linear init. Weights stored (in_features, out_features)
    (transposed vs. torch.nn.Linear.weight); biases as (1, out_features)."""
    dims = [(_IN, _H1), (_H1, _H2), (_H2, _H3), (_H3, 1)]
    params = []
    for fan_in, fan_out in dims:
        key, kw, kb = jax.random.split(key, 3)
        bound = 1.0 / jnp.sqrt(fan_in)
        w = jax.random.uniform(kw, (fan_in, fan_out), jnp.float32,
                               minval=-bound, maxval=bound)
        bias = jax.random.uniform(kb, (1, fan_out), jnp.float32,
                                  minval=-bound, maxval=bound)
        params.append((w, bias))
    return params


def reference_forward(x_nchw, params):
    """Pure-JAX f32 reference for correctness checking."""
    b = x_nchw.shape[0]
    h = x_nchw.reshape(b, _IN).astype(jnp.float32)
    (w1, b1), (w2, b2), (w3, b3), (w4, b4) = params
    h = jnp.maximum(h @ w1 + b1, 0.0)
    h = jnp.maximum(h @ w2 + b2, 0.0)
    h = jnp.maximum(h @ w3 + b3, 0.0)
    return jax.nn.sigmoid(h @ w4 + b4)


if __name__ == "__main__":
    key = jax.random.PRNGKey(0)
    key, kx1, kx2 = jax.random.split(key, 3)

    params = init_params(key)
    kparams = prepare_kernel_params(params)

    # Small MNIST-like batch: (B, C, H, W) = (2, 1, 28, 28) -> flattens to 784.
    x_small = jax.random.normal(kx1, (2, 1, 28, 28), dtype=jnp.float32)
    out_small = jax.block_until_ready(discriminator_forward(x_small, kparams))
    ref_small = reference_forward(x_small, params)
    assert out_small.shape == (2, 1), out_small.shape
    # bf16 weights / activations vs f32 reference: loosened tolerance.
    assert jnp.allclose(out_small, ref_small, atol=2e-2, rtol=2e-2), (
        out_small, ref_small)

    # Second (still small) batch exercising the multi-step grid path (grid=2).
    x_med = jax.random.normal(kx2, (96, 1, 28, 28), dtype=jnp.float32)
    out_med = jax.block_until_ready(discriminator_forward(x_med, kparams))
    ref_med = reference_forward(x_med, params)
    assert out_med.shape == (96, 1), out_med.shape
    assert jnp.allclose(out_med, ref_med, atol=2e-2, rtol=2e-2)

    print("KERNEL_OK")
</pallas_src>

<mosaic_0001>
module attributes {stable_mosaic.version = 11 : i64} {
  func.func @_discriminator_kernel(%arg0: i32, %arg1: memref<8x784xf32, #tpu.memory_space<vmem>>, %arg2: memref<784x1024xbf16, #tpu.memory_space<vmem>>, %arg3: memref<1x1024xf32, #tpu.memory_space<vmem>>, %arg4: memref<1024x512xbf16, #tpu.memory_space<vmem>>, %arg5: memref<1x512xf32, #tpu.memory_space<vmem>>, %arg6: memref<512x256xbf16, #tpu.memory_space<vmem>>, %arg7: memref<1x256xf32, #tpu.memory_space<vmem>>, %arg8: memref<1x256xf32, #tpu.memory_space<vmem>>, %arg9: memref<1x1xf32, #tpu.memory_space<vmem>>, %arg10: memref<8x1xf32, #tpu.memory_space<vmem>>) attributes {dimension_semantics = [#tpu.dimension_semantics<parallel>], iteration_bounds = array<i64: 1>, scalar_prefetch = 0 : i64, scratch_operands = 0 : i64, tpu.core_type = #tpu.core_type<tc>, window_params = [{transform_indices = @transform_0, window_bounds = array<i64: 8, 784>}, {pipeline_mode = #tpu.pipeline_mode<synchronous>, transform_indices = @transform_1, window_bounds = array<i64: 784, 1024>}, {pipeline_mode = #tpu.pipeline_mode<synchronous>, transform_indices = @transform_2, window_bounds = array<i64: 1, 1024>}, {pipeline_mode = #tpu.pipeline_mode<synchronous>, transform_indices = @transform_3, window_bounds = array<i64: 1024, 512>}, {pipeline_mode = #tpu.pipeline_mode<synchronous>, transform_indices = @transform_4, window_bounds = array<i64: 1, 512>}, {pipeline_mode = #tpu.pipeline_mode<synchronous>, transform_indices = @transform_5, window_bounds = array<i64: 512, 256>}, {pipeline_mode = #tpu.pipeline_mode<synchronous>, transform_indices = @transform_6, window_bounds = array<i64: 1, 256>}, {pipeline_mode = #tpu.pipeline_mode<synchronous>, transform_indices = @transform_7, window_bounds = array<i64: 1, 256>}, {pipeline_mode = #tpu.pipeline_mode<synchronous>, transform_indices = @transform_8, window_bounds = array<i64: 1, 1>}, {transform_indices = @transform_9, window_bounds = array<i64: 8, 1>}]} {
    %c0 = arith.constant 0 : index
    %c0_0 = arith.constant 0 : index
    %0 = vector.load %arg1[%c0, %c0_0] : memref<8x784xf32, #tpu.memory_space<vmem>>, vector<8x784xf32>
    %1 = arith.truncf %0 : vector<8x784xf32> to vector<8x784xbf16>
    %c0_1 = arith.constant 0 : index
    %c0_2 = arith.constant 0 : index
    %2 = vector.load %arg2[%c0_1, %c0_2] : memref<784x1024xbf16, #tpu.memory_space<vmem>>, vector<784x1024xbf16>
    %cst = arith.constant dense<0.000000e+00> : vector<8x1024xf32>
    %3 = tpu.matmul %1, %2, %cst {dimension_numbers = #tpu.dot_dimension_numbers<[1], [0], [0], [1], [0, 0, 1, 1], [], []>} : vector<8x784xbf16>, vector<784x1024xbf16>, vector<8x1024xf32> -> vector<8x1024xf32>
    %c0_3 = arith.constant 0 : index
    %c0_4 = arith.constant 0 : index
    %4 = vector.load %arg3[%c0_3, %c0_4] : memref<1x1024xf32, #tpu.memory_space<vmem>>, vector<1x1024xf32>
    %5 = vector.broadcast %4 : vector<1x1024xf32> to vector<8x1024xf32>
    %6 = arith.addf %3, %5 : vector<8x1024xf32>
    %cst_5 = arith.constant 0.000000e+00 : f32
    %7 = vector.broadcast %cst_5 : f32 to vector<8x1024xf32>
    %8 = arith.maximumf %6, %7 : vector<8x1024xf32>
    %9 = arith.truncf %8 : vector<8x1024xf32> to vector<8x1024xbf16>
    %c0_6 = arith.constant 0 : index
    %c0_7 = arith.constant 0 : index
    %10 = vector.load %arg4[%c0_6, %c0_7] : memref<1024x512xbf16, #tpu.memory_space<vmem>>, vector<1024x512xbf16>
    %cst_8 = arith.constant dense<0.000000e+00> : vector<8x512xf32>
    %11 = tpu.matmul %9, %10, %cst_8 {dimension_numbers = #tpu.dot_dimension_numbers<[1], [0], [0], [1], [0, 0, 1, 1], [], []>} : vector<8x1024xbf16>, vector<1024x512xbf16>, vector<8x512xf32> -> vector<8x512xf32>
    %c0_9 = arith.constant 0 : index
    %c0_10 = arith.constant 0 : index
    %12 = vector.load %arg5[%c0_9, %c0_10] : memref<1x512xf32, #tpu.memory_space<vmem>>, vector<1x512xf32>
    %13 = vector.broadcast %12 : vector<1x512xf32> to vector<8x512xf32>
    %14 = arith.addf %11, %13 : vector<8x512xf32>
    %cst_11 = arith.constant 0.000000e+00 : f32
    %15 = vector.broadcast %cst_11 : f32 to vector<8x512xf32>
    %16 = arith.maximumf %14, %15 : vector<8x512xf32>
    %17 = arith.truncf %16 : vector<8x512xf32> to vector<8x512xbf16>
    %c0_12 = arith.constant 0 : index
    %c0_13 = arith.constant 0 : index
    %18 = vector.load %arg6[%c0_12, %c0_13] : memref<512x256xbf16, #tpu.memory_space<vmem>>, vector<512x256xbf16>
    %cst_14 = arith.constant dense<0.000000e+00> : vector<8x256xf32>
    %19 = tpu.matmul %17, %18, %cst_14 {dimension_numbers = #tpu.dot_dimension_numbers<[1], [0], [0], [1], [0, 0, 1, 1], [], []>} : vector<8x512xbf16>, vector<512x256xbf16>, vector<8x256xf32> -> vector<8x256xf32>
    %c0_15 = arith.constant 0 : index
    %c0_16 = arith.constant 0 : index
    %20 = vector.load %arg7[%c0_15, %c0_16] : memref<1x256xf32, #tpu.memory_space<vmem>>, vector<1x256xf32>
    %21 = vector.broadcast %20 : vector<1x256xf32> to vector<8x256xf32>
    %22 = arith.addf %19, %21 : vector<8x256xf32>
    %cst_17 = arith.constant 0.000000e+00 : f32
    %23 = vector.broadcast %cst_17 : f32 to vector<8x256xf32>
    %24 = arith.maximumf %22, %23 : vector<8x256xf32>
    %c0_18 = arith.constant 0 : index
    %c0_19 = arith.constant 0 : index
    %25 = vector.load %arg8[%c0_18, %c0_19] : memref<1x256xf32, #tpu.memory_space<vmem>>, vector<1x256xf32>
    %26 = vector.broadcast %25 : vector<1x256xf32> to vector<8x256xf32>
    %27 = arith.mulf %24, %26 : vector<8x256xf32>
    %cst_20 = arith.constant dense<0.000000e+00> : vector<8xf32>
    %28 = vector.multi_reduction <add>, %27, %cst_20 [1] : vector<8x256xf32> to vector<8xf32>
    %29 = vector.shape_cast %28 : vector<8xf32> to vector<8x1xf32>
    %c0_21 = arith.constant 0 : index
    %c0_22 = arith.constant 0 : index
    %30 = vector.load %arg9[%c0_21, %c0_22] : memref<1x1xf32, #tpu.memory_space<vmem>>, vector<1x1xf32>
    %31 = vector.broadcast %30 : vector<1x1xf32> to vector<8x1xf32>
    %32 = arith.addf %29, %31 : vector<8x1xf32>
    %cst_23 = arith.constant 0.000000e+00 : f32
    %33 = vector.broadcast %cst_23 : f32 to vector<8x1xf32>
    %34 = arith.subf %33, %32 : vector<8x1xf32>
    %35 = math.exp %34 : vector<8x1xf32>
    %cst_24 = arith.constant 1.000000e+00 : f32
    %36 = vector.broadcast %cst_24 : f32 to vector<8x1xf32>
    %37 = arith.addf %36, %35 : vector<8x1xf32>
    %cst_25 = arith.constant 1.000000e+00 : f32
    %38 = vector.broadcast %cst_25 : f32 to vector<8x1xf32>
    %39 = arith.divf %38, %37 : vector<8x1xf32>
    %c0_26 = arith.constant 0 : index
    %c0_27 = arith.constant 0 : index
    %40 = vector.load %arg10[%c0_26, %c0_27] : memref<8x1xf32, #tpu.memory_space<vmem>>, vector<8x1xf32>
    tpu.vector_store %arg10[%c0_26, %c0_27], %39 {strides = array<i32>} : memref<8x1xf32, #tpu.memory_space<vmem>>, vector<8x1xf32>,
    return
  }
  func.func @transform_0(%arg0: i32) -> (i32, i32) {
    %c0_i32 = arith.constant 0 : i32
    %c0_i32_0 = arith.constant 0 : i32
    return %arg0, %c0_i32 : i32, i32
  }
  func.func @transform_1(%arg0: i32) -> (i32, i32) {
    %c0_i32 = arith.constant 0 : i32
    %c0_i32_0 = arith.constant 0 : i32
    %c0_i32_1 = arith.constant 0 : i32
    return %c0_i32, %c0_i32_0 : i32, i32
  }
  func.func @transform_2(%arg0: i32) -> (i32, i32) {
    %c0_i32 = arith.constant 0 : i32
    %c0_i32_0 = arith.constant 0 : i32
    %c0_i32_1 = arith.constant 0 : i32
    return %c0_i32, %c0_i32_0 : i32, i32
  }
  func.func @transform_3(%arg0: i32) -> (i32, i32) {
    %c0_i32 = arith.constant 0 : i32
    %c0_i32_0 = arith.constant 0 : i32
    %c0_i32_1 = arith.constant 0 : i32
    return %c0_i32, %c0_i32_0 : i32, i32
  }
  func.func @transform_4(%arg0: i32) -> (i32, i32) {
    %c0_i32 = arith.constant 0 : i32
    %c0_i32_0 = arith.constant 0 : i32
    %c0_i32_1 = arith.constant 0 : i32
    return %c0_i32, %c0_i32_0 : i32, i32
  }
  func.func @transform_5(%arg0: i32) -> (i32, i32) {
    %c0_i32 = arith.constant 0 : i32
    %c0_i32_0 = arith.constant 0 : i32
    %c0_i32_1 = arith.constant 0 : i32
    return %c0_i32, %c0_i32_0 : i32, i32
  }
  func.func @transform_6(%arg0: i32) -> (i32, i32) {
    %c0_i32 = arith.constant 0 : i32
    %c0_i32_0 = arith.constant 0 : i32
    %c0_i32_1 = arith.constant 0 : i32
    return %c0_i32, %c0_i32_0 : i32, i32
  }
  func.func @transform_7(%arg0: i32) -> (i32, i32) {
    %c0_i32 = arith.constant 0 : i32
    %c0_i32_0 = arith.constant 0 : i32
    %c0_i32_1 = arith.constant 0 : i32
    return %c0_i32, %c0_i32_0 : i32, i32
  }
  func.func @transform_8(%arg0: i32) -> (i32, i32) {
    %c0_i32 = arith.constant 0 : i32
    %c0_i32_0 = arith.constant 0 : i32
    %c0_i32_1 = arith.constant 0 : i32
    return %c0_i32, %c0_i32_0 : i32, i32
  }
  func.func @transform_9(%arg0: i32) -> (i32, i32) {
    %c0_i32 = arith.constant 0 : i32
    %c0_i32_0 = arith.constant 0 : i32
    return %arg0, %c0_i32 : i32, i32
  }
}

</mosaic_0001>

<bundles_post_ra>
// kernel: discriminator_forward.1
= control target key start
LH: loop header
LB: loop body
LE: loop exit
PB: predicated region body
PF: predicated region fallthrough
CT: control target
= control target key end

     0   :  { %s7290_s0 = inlined_call_operand.vmem [shape: f32[8,784], index: 0, kind: input, shape index: {}]   ;;  %s7291_s1 = inlined_call_operand.hbm [shape: bf16[784,1024], index: 1, kind: input, shape index: {}]   ;;  %s7292_s2 = inlined_call_operand.hbm [shape: f32[1,1024], index: 2, kind: input, shape index: {}]   ;;  %s7293_s3 = inlined_call_operand.hbm [shape: bf16[1024,512], index: 3, kind: input, shape index: {}]   ;;  %s7294_s4 = inlined_call_operand.hbm [shape: f32[1,512], index: 4, kind: input, shape index: {}]   ;;  %s7295_s5 = inlined_call_operand.hbm [shape: bf16[512,256], index: 5, kind: input, shape index: {}]   ;;  %s7296_s6 = inlined_call_operand.hbm [shape: f32[1,256], index: 6, kind: input, shape index: {}]   ;;  %s7297_s7 = inlined_call_operand.hbm [shape: f32[1,256], index: 7, kind: input, shape index: {}]   ;;  %s7298_s8 = inlined_call_operand.<no memory space> [shape: f32[1,1], index: 8, kind: input, shape index: {}]   ;;  %s7299_s9 = inlined_call_operand.vmem [shape: f32[8,1], index: 9, kind: output, shape index: {}]  }
   0x1   :  { %v14_v0 = vstv %s7298_s8 }
   0x2   :  { %15 = vst [vmem:[#allocation2] sm:$0x1] %v14_v0 }
   0x3   :  { %16 = vsyncpa [#allocation4], 0 }
   0x4   :  { %17 = vsyncpa [#allocation6], 0 }
   0x5   :  { %18 = vsyncpa [#allocation9], 0 }
   0x6   :  { %19 = vsyncpa [#allocation12], 0  ;;  %s6985_s11 = smov [#allocation5]   ;;  %s6986_s13 = smov [#allocation8]  }
   0x7   :  { %s40_s12 = sshll.u32 %s6985_s11, 4  ;;  %s62_s14 = sshll.u32 %s6986_s13, 4  ;;  %s41_s12 = int_to_ptr.vmem [resolvable:$true] %s40_s12  ;;  %s63_s14 = int_to_ptr.vmem [resolvable:$true] %s62_s14 }
   0x8   :  { %s6845_s15 = scalar_lea.vmem %s41_s12, 128  ;;  %p6850_p1 = scmp.lt.s32.totalorder %s41_s12, %s41_s12 }
   0x9   :  { %p6846_p0 = scmp.ne.s32.totalorder %s41_s12, %s6845_s15  ;;  %p6851_p2 = scmp.lt.s32.totalorder %s6845_s15, %s6845_s15 }
   0xb   :  { %p6852_p3 = por %p6851_p2, %p6850_p1 }
   0xd   :  { %p6853_p4 = pnand %p6852_p3, %p6846_p0 }
   0xf   :  { %6856 = shalt.err (!%p6853_p4)
}
  0x10   :  { %43 = dma.hbm_to_vmem [thread:$0]  %s7292_s2, 128, %s41_s12, [#allocation6]  }
  0x11   :  { %s6865_s17 = scalar_lea.vmem %s63_s14, 64  ;;  %p6870_p6 = scmp.lt.s32.totalorder %s63_s14, %s63_s14 }
  0x12   :  { %p6866_p5 = scmp.ne.s32.totalorder %s63_s14, %s6865_s17  ;;  %p6871_p7 = scmp.lt.s32.totalorder %s6865_s17, %s6865_s17 }
  0x14   :  { %p6872_p8 = por %p6871_p7, %p6870_p6 }
  0x16   :  { %p6873_p9 = pnand %p6872_p8, %p6866_p5 }
  0x18   :  { %6876 = shalt.err (!%p6873_p9)
}
  0x19   :  { %65 = dma.hbm_to_vmem [thread:$0]  %s7294_s4, 64, %s63_s14, [#allocation9]  }
  0x1a   :  { %s6987_s20 = smov [#allocation11]   ;;  %s6988_s22 = smov [#allocation3]  }
  0x1b   :  { %s84_s21 = sshll.u32 %s6987_s20, 4  ;;  %s27_s23 = sshll.u32 %s6988_s22, 4  ;;  %s85_s21 = int_to_ptr.vmem [resolvable:$true] %s84_s21  ;;  %s28_s23 = int_to_ptr.vmem [resolvable:$true] %s27_s23 }
  0x1c   :  { %s6885_s24 = scalar_lea.vmem %s85_s21, 32  ;;  %p6890_p11 = scmp.lt.s32.totalorder %s85_s21, %s85_s21 }
  0x1d   :  { %p6886_p10 = scmp.ne.s32.totalorder %s85_s21, %s6885_s24  ;;  %p6891_p12 = scmp.lt.s32.totalorder %s6885_s24, %s6885_s24 }
  0x1f   :  { %p6892_p13 = por %p6891_p12, %p6890_p11 }
  0x21   :  { %p6893_p0 = pnand %p6892_p13, %p6886_p10 }
  0x23   :  { %6896 = shalt.err (!%p6893_p0)
}
  0x24   :  { %87 = dma.hbm_to_vmem [thread:$0]  %s7296_s6, 32, %s85_s21, [#allocation12]  }
  0x25   :  { %s6905_s26 = scalar_lea.vmem %s28_s23, 50176  ;;  %p6910_p2 = scmp.lt.s32.totalorder %s28_s23, %s28_s23 }
  0x26   :  { %p6906_p1 = scmp.ne.s32.totalorder %s28_s23, %s6905_s26  ;;  %p6911_p3 = scmp.lt.s32.totalorder %s6905_s26, %s6905_s26 }
  0x28   :  { %p6912_p4 = por %p6911_p3, %p6910_p2 }
  0x2a   :  { %p6913_p5 = pnand %p6912_p4, %p6906_p1 }
  0x2c   :  { %6916 = shalt.err (!%p6913_p5)
}
  0x2d   :  { %s6989_s4 = smov 512   ;;  %s6990_s27 = smov 32  }
  0x2e   :  { %33 = dma.hbm_to_vmem [thread:$0]  %s7291_s1, 50176, %s28_s23, [#allocation4], %s6989_s4, %s6989_s4, %s6990_s27  }
  0x2f   :  { %s6991_s30 = smov [#allocation7]  }
  0x30   :  { %s49_s10 = sshll.u32 %s6991_s30, 4  ;;  %s50_s10 = int_to_ptr.vmem [resolvable:$true] %s49_s10 }
  0x31   :  { %s6925_s11 = scalar_lea.vmem %s50_s10, 32768  ;;  %p6930_p7 = scmp.lt.s32.totalorder %s50_s10, %s50_s10 }
  0x32   :  { %p6926_p6 = scmp.ne.s32.totalorder %s50_s10, %s6925_s11  ;;  %p6931_p8 = scmp.lt.s32.totalorder %s6925_s11, %s6925_s11 }
  0x34   :  { %p6932_p9 = por %p6931_p8, %p6930_p7 }
  0x36   :  { %p6933_p10 = pnand %p6932_p9, %p6926_p6 }
  0x38   :  { %6936 = shalt.err (!%p6933_p10)
}
  0x39   :  { %s6992_s6 = smov 256   ;;  %s6993_s12 = smov 16  }
  0x3a   :  { %55 = dma.hbm_to_vmem [thread:$0]  %s7293_s3, 32768, %s50_s10, [#allocation6], %s6992_s6, %s6992_s6, %s6993_s12  }
  0x3b   :  { %s6994_s15 = smov [#allocation10]  }
  0x3c   :  { %s71_s16 = sshll.u32 %s6994_s15, 4  ;;  %s72_s16 = int_to_ptr.vmem [resolvable:$true] %s71_s16 }
  0x3d   :  { %s6945_s1 = scalar_lea.vmem %s72_s16, 8192  ;;  %p6950_p12 = scmp.lt.s32.totalorder %s72_s16, %s72_s16 }
  0x3e   :  { %p6946_p11 = scmp.ne.s32.totalorder %s72_s16, %s6945_s1  ;;  %p6951_p13 = scmp.lt.s32.totalorder %s6945_s1, %s6945_s1 }
  0x40   :  { %p6952_p0 = por %p6951_p13, %p6950_p12 }
  0x42   :  { %p6953_p1 = pnand %p6952_p0, %p6946_p11 }
  0x44   :  { %6956 = shalt.err (!%p6953_p1)
}
  0x45   :  { %s6995_s8 = smov 128   ;;  %s6996_s17 = smov 8  }
  0x46   :  { %77 = dma.hbm_to_vmem [thread:$0]  %s7295_s5, 8192, %s72_s16, [#allocation9], %s6995_s8, %s6995_s8, %s6996_s17  }
  0x47   :  { %s6997_s20 = smov [#allocation13]  }
  0x48   :  { %s94_s21 = sshll.u32 %s6997_s20, 4  ;;  %s95_s21 = int_to_ptr.vmem [resolvable:$true] %s94_s21 }
  0x49   :  { %s6965_s3 = scalar_lea.vmem %s95_s21, 32  ;;  %p6970_p3 = scmp.lt.s32.totalorder %s95_s21, %s95_s21 }
  0x4a   :  { %p6966_p2 = scmp.ne.s32.totalorder %s95_s21, %s6965_s3  ;;  %p6971_p4 = scmp.lt.s32.totalorder %s6965_s3, %s6965_s3 }
  0x4c   :  { %p6972_p5 = por %p6971_p4, %p6970_p3 }
  0x4e   :  { %p6973_p6 = pnand %p6972_p5, %p6966_p2 }
  0x50   :  { %6976 = shalt.err (!%p6973_p6)
}
  0x51   :  { %97 = dma.hbm_to_vmem [thread:$0]  %s7297_s7, 32, %s95_s21, [#allocation12]  }
  0x52   :  { %6977 = dma.done.wait [#allocation4], 50176  }
  0x53   :  { %6978 = vsyncadd [#allocation4], 4294917120 }
  0x54   :  { %6979 = dma.done.wait [#allocation6], 32896  }
  0x55   :  { %6980 = vsyncadd [#allocation6], 4294934400 }
  0x56   :  { %6981 = dma.done.wait [#allocation9], 8256  }
  0x57   :  { %6982 = vsyncadd [#allocation9], 4294959040 }
  0x58   :  { %6983 = dma.done.wait [#allocation12], 64  }
  0x59   :  { %6984 = vsyncadd [#allocation12], 4294967232  ;;  %v192_v1 = vld [vmem:[#allocation3 + $0x1c0] sm:$0xff]  ;;  %v125_v55 = vld [vmem:[%s7290_s0 + $0x18] sm:$0xff]  ;;  %vm2530_vm0 = vcmask 130048   ;;  %vm5611_vm1 = vcmask 7168  }
  0x5a   :  { %v196_v2 = vld [vmem:[#allocation3 + $0x1e0] sm:$0xff]  ;;  %v7081_v60 = vpack.c.bf16 %v125_v55, %v125_v55 }
  0x5b   :  { %v320_v3 = vld [vmem:[#allocation3 + $0x5c0] sm:$0xff]  ;;  %v5678_v4 = vcombine.high %v192_v1, %v196_v2  ;;  %v5677_v6 = vcombine.low %v192_v1, %v196_v2 }
  0x5c   :  { %v324_v5 = vld [vmem:[#allocation3 + $0x5e0] sm:$0xff]  ;;  %2607 = vmatprep.mubr.bf16.mxu1 %v7081_v60 }
  0x5d   :  { %v184_v7 = vld [vmem:[#allocation3 + $0x180] sm:$0xff]  ;;  %v5806_v9 = vcombine.high %v320_v3, %v324_v5  ;;  %v5805_v10 = vcombine.low %v320_v3, %v324_v5  ;;  %2534 = vmatprep.subr.bf16.mxu0 %v5678_v4 }
  0x5e   :  { %v188_v8 = vld [vmem:[#allocation3 + $0x1a0] sm:$0xff]  ;;  %2535 = vmatpush1.bf16.msra.mxu0 %v5677_v6 }
  0x5f   :  { %v5670_v11 = vcombine.high %v184_v7, %v188_v8  ;;  %v312_v12 = vld [vmem:[#allocation3 + $0x580] sm:$0xff]  ;;  %2575 = vmatprep.subr.bf16.mxu1 %v5806_v9  ;;  %v5669_v19 = vcombine.low %v184_v7, %v188_v8 }
  0x60   :  { %v316_v13 = vld [vmem:[#allocation3 + $0x5a0] sm:$0xff]  ;;  %2576 = vmatpush1.bf16.msra.mxu1 %v5805_v10 }
  0x61   :  { %v176_v14 = vld [vmem:[#allocation3 + $0x140] sm:$0xff]  ;;  %v5798_v15 = vcombine.high %v312_v12, %v316_v13  ;;  %2536 = vmatprep.subr.bf16.mxu0 %v5670_v11  ;;  %v5797_v20 = vcombine.low %v312_v12, %v316_v13 }
  0x62   :  { %v180_v16 = vld [vmem:[#allocation3 + $0x160] sm:$0xff]  ;;  %2537 = vmatpush1.bf16.msra.mxu0 %v5669_v19 }
  0x63   :  { %v304_v17 = vld [vmem:[#allocation3 + $0x540] sm:$0xff]  ;;  %v5662_v21 = vcombine.high %v176_v14, %v180_v16  ;;  %2577 = vmatprep.subr.bf16.mxu1 %v5798_v15  ;;  %v5661_v27 = vcombine.low %v176_v14, %v180_v16 }
  0x64   :  { %v308_v18 = vld [vmem:[#allocation3 + $0x560] sm:$0xff]  ;;  %2578 = vmatpush1.bf16.msra.mxu1 %v5797_v20 }
  0x65   :  { %v5790_v22 = vcombine.high %v304_v17, %v308_v18  ;;  %v168_v23 = vld [vmem:[#allocation3 + $0x100] sm:$0xff]  ;;  %2538 = vmatprep.subr.bf16.mxu0 %v5662_v21  ;;  %v5789_v28 = vcombine.low %v304_v17, %v308_v18 }
  0x66   :  { %v172_v24 = vld [vmem:[#allocation3 + $0x120] sm:$0xff]  ;;  %2539 = vmatpush1.bf16.msra.mxu0 %v5661_v27 }
  0x67   :  { %v296_v25 = vld [vmem:[#allocation3 + $0x500] sm:$0xff]  ;;  %v5654_v29 = vcombine.high %v168_v23, %v172_v24  ;;  %2579 = vmatprep.subr.bf16.mxu1 %v5790_v22  ;;  %v5653_v35 = vcombine.low %v168_v23, %v172_v24 }
  0x68   :  { %v300_v26 = vld [vmem:[#allocation3 + $0x520] sm:$0xff]  ;;  %2580 = vmatpush1.bf16.msra.mxu1 %v5789_v28 }
  0x69   :  { %v5782_v30 = vcombine.high %v296_v25, %v300_v26  ;;  %v160_v31 = vld [vmem:[#allocation3 + $0xc0] sm:$0xff]  ;;  %2540 = vmatprep.subr.bf16.mxu0 %v5654_v29  ;;  %v5781_v36 = vcombine.low %v296_v25, %v300_v26 }
  0x6a   :  { %v164_v32 = vld [vmem:[#allocation3 + $0xe0] sm:$0xff]  ;;  %2541 = vmatpush1.bf16.msra.mxu0 %v5653_v35 }
  0x6b   :  { %v288_v33 = vld [vmem:[#allocation3 + $0x4c0] sm:$0xff]  ;;  %v5646_v37 = vcombine.high %v160_v31, %v164_v32  ;;  %2581 = vmatprep.subr.bf16.mxu1 %v5782_v30  ;;  %v5645_v43 = vcombine.low %v160_v31, %v164_v32 }
  0x6c   :  { %v292_v34 = vld [vmem:[#allocation3 + $0x4e0] sm:$0xff]  ;;  %2582 = vmatpush1.bf16.msra.mxu1 %v5781_v36 }
  0x6d   :  { %v5774_v38 = vcombine.high %v288_v33, %v292_v34  ;;  %v152_v39 = vld [vmem:[#allocation3 + $0x80] sm:$0xff]  ;;  %2542 = vmatprep.subr.bf16.mxu0 %v5646_v37  ;;  %v5773_v44 = vcombine.low %v288_v33, %v292_v34 }
  0x6e   :  { %v156_v40 = vld [vmem:[#allocation3 + $0xa0] sm:$0xff]  ;;  %2543 = vmatpush1.bf16.msra.mxu0 %v5645_v43 }
  0x6f   :  { %v280_v41 = vld [vmem:[#allocation3 + $0x480] sm:$0xff]  ;;  %v5638_v45 = vcombine.high %v152_v39, %v156_v40  ;;  %2583 = vmatprep.subr.bf16.mxu1 %v5774_v38  ;;  %v5637_v51 = vcombine.low %v152_v39, %v156_v40 }
  0x70   :  { %v284_v42 = vld [vmem:[#allocation3 + $0x4a0] sm:$0xff]  ;;  %2584 = vmatpush1.bf16.msra.mxu1 %v5773_v44 }
  0x71   :  { %v5766_v46 = vcombine.high %v280_v41, %v284_v42  ;;  %v144_v47 = vld [vmem:[#allocation3 + $0x40] sm:$0xff]  ;;  %2544 = vmatprep.subr.bf16.mxu0 %v5638_v45  ;;  %v5765_v52 = vcombine.low %v280_v41, %v284_v42 }
  0x72   :  { %v148_v48 = vld [vmem:[#allocation3 + $0x60] sm:$0xff]  ;;  %2545 = vmatpush1.bf16.msra.mxu0 %v5637_v51 }
  0x73   :  { %v272_v49 = vld [vmem:[#allocation3 + $0x440] sm:$0xff]  ;;  %v5630_v53 = vcombine.high %v144_v47, %v148_v48  ;;  %2585 = vmatprep.subr.bf16.mxu1 %v5766_v46  ;;  %v5629_v63 = vcombine.low %v144_v47, %v148_v48 }
  0x74   :  { %v276_v50 = vld [vmem:[#allocation3 + $0x460] sm:$0xff]  ;;  %2586 = vmatpush1.bf16.msra.mxu1 %v5765_v52 }
  0x75   :  { %v123_v54 = vld [vmem:[%s7290_s0 + $0x8] sm:$0xff]  ;;  %v5758_v56 = vcombine.high %v272_v49, %v276_v50  ;;  %2546 = vmatprep.subr.bf16.mxu0 %v5630_v53  ;;  %v5757_v0 = vcombine.low %v272_v49, %v276_v50 }
  0x76   :  { %v136_v57 = vld [vmem:[#allocation3] sm:$0xff]  ;;  %v7079_v59 = vpack.c.bf16 %v123_v54, %v123_v54  ;;  %2547 = vmatpush1.bf16.msra.mxu0 %v5629_v63 }
  0x77   :  { %v140_v58 = vld [vmem:[#allocation3 + $0x20] sm:$0xff]  ;;  %2587 = vmatprep.subr.bf16.mxu1 %v5758_v56 }
  0x78   :  { %v264_v61 = vld [vmem:[#allocation3 + $0x400] sm:$0xff]  ;;  %2566 = vmatprep.mubr.bf16.mxu0 %v7079_v59  ;;  %v5622_v1 = vcombine.high %v136_v57, %v140_v58  ;;  %v5621_v7 = vcombine.low %v136_v57, %v140_v58  ;;  %2588 = vmatpush1.bf16.msra.mxu1 %v5757_v0 }
  0x79   :  { %v268_v62 = vld [vmem:[#allocation3 + $0x420] sm:$0xff] }
  0x7a   :  { %v5750_v2 = vcombine.high %v264_v61, %v268_v62  ;;  %v256_v3 = vld [vmem:[#allocation3 + $0x3c0] sm:$0xff]  ;;  %2548 = vmatprep.subr.bf16.mxu0 %v5622_v1  ;;  %v5749_v8 = vcombine.low %v264_v61, %v268_v62 }
  0x7b   :  { %v260_v4 = vld [vmem:[#allocation3 + $0x3e0] sm:$0xff]  ;;  %2549 = vmatpush1.bf16.msra.mxu0 %v5621_v7 }
  0x7c   :  { %v384_v5 = vld [vmem:[#allocation3 + $0x7c0] sm:$0xff]  ;;  %v5742_v9 = vcombine.high %v256_v3, %v260_v4  ;;  %2589 = vmatprep.subr.bf16.mxu1 %v5750_v2  ;;  %v5741_v15 = vcombine.low %v256_v3, %v260_v4 }
  0x7d   :  { %v388_v6 = vld [vmem:[#allocation3 + $0x7e0] sm:$0xff]  ;;  %2590 = vmatpush1.bf16.msra.mxu1 %v5749_v8 }
  0x7e   :  { %v5870_v10 = vcombine.high %v384_v5, %v388_v6  ;;  %v248_v11 = vld [vmem:[#allocation3 + $0x380] sm:$0xff]  ;;  %2550 = vmatprep.subr.bf16.mxu0 %v5742_v9  ;;  %v5869_v16 = vcombine.low %v384_v5, %v388_v6 }
  0x7f   :  { %v252_v12 = vld [vmem:[#allocation3 + $0x3a0] sm:$0xff]  ;;  %2551 = vmatpush2.bf16.msra.mxu0 %v5741_v15 }
  0x80   :  { %v376_v13 = vld [vmem:[#allocation3 + $0x780] sm:$0xff]  ;;  %v5734_v17 = vcombine.high %v248_v11, %v252_v12  ;;  %2591 = vmatprep.subr.bf16.mxu1 %v5870_v10  ;;  %v5733_v23 = vcombine.low %v248_v11, %v252_v12  ;;  %v124_v12 = vld [vmem:[%s7290_s0 + $0x10] sm:$0xff] }
  0x81   :  { %v380_v14 = vld [vmem:[#allocation3 + $0x7a0] sm:$0xff]  ;;  %2592 = vmatpush2.bf16.msra.mxu1 %v5869_v16 }
  0x82   :  { %v5862_v18 = vcombine.high %v376_v13, %v380_v14  ;;  %v240_v19 = vld [vmem:[#allocation3 + $0x340] sm:$0xff]  ;;  %2552 = vmatprep.subr.bf16.mxu0 %v5734_v17  ;;  %v5861_v24 = vcombine.low %v376_v13, %v380_v14 }
  0x83   :  { %v244_v20 = vld [vmem:[#allocation3 + $0x360] sm:$0xff]  ;;  %2553 = vmatpush2.bf16.msra.mxu0 %v5733_v23 }
  0x84   :  { %v368_v21 = vld [vmem:[#allocation3 + $0x740] sm:$0xff]  ;;  %v5726_v25 = vcombine.high %v240_v19, %v244_v20  ;;  %2593 = vmatprep.subr.bf16.mxu1 %v5862_v18  ;;  %v5725_v31 = vcombine.low %v240_v19, %v244_v20  ;;  %v193_v18 = vld [vmem:[#allocation3 + $0x1c8] sm:$0xff]  ;;  %v7093_v20 = vpack.c.bf16 %v124_v12, %v124_v12 }
  0x85   :  { %v372_v22 = vld [vmem:[#allocation3 + $0x760] sm:$0xff]  ;;  %2594 = vmatpush2.bf16.msra.mxu1 %v5861_v24  ;;  %v197_v19 = vld [vmem:[#allocation3 + $0x1e8] sm:$0xff] }
  0x86   :  { %v5854_v26 = vcombine.high %v368_v21, %v372_v22  ;;  %v232_v27 = vld [vmem:[#allocation3 + $0x300] sm:$0xff]  ;;  %2554 = vmatprep.subr.bf16.mxu0 %v5726_v25  ;;  %v5853_v32 = vcombine.low %v368_v21, %v372_v22  ;;  %v149_v12 = vld [vmem:[#allocation3 + $0x68] sm:$0xff] }
  0x87   :  { %v236_v28 = vld [vmem:[#allocation3 + $0x320] sm:$0xff]  ;;  %2555 = vmatpush2.bf16.msra.mxu0 %v5725_v31 }
  0x88   :  { %v360_v29 = vld [vmem:[#allocation3 + $0x700] sm:$0xff]  ;;  %v5718_v33 = vcombine.high %v232_v27, %v236_v28  ;;  %2595 = vmatprep.subr.bf16.mxu1 %v5854_v26  ;;  %v5717_v39 = vcombine.low %v232_v27, %v236_v28  ;;  %v5680_v26 = vcombine.high %v193_v18, %v197_v19  ;;  %v128_v28 = vld [vmem:[%s7290_s0 + $0x30] sm:$0xff] }
  0x89   :  { %v364_v30 = vld [vmem:[#allocation3 + $0x720] sm:$0xff]  ;;  %2596 = vmatpush2.bf16.msra.mxu1 %v5853_v32  ;;  %v185_v32 = vld [vmem:[#allocation3 + $0x188] sm:$0xff] }
  0x8a   :  { %v5846_v34 = vcombine.high %v360_v29, %v364_v30  ;;  %v224_v35 = vld [vmem:[#allocation3 + $0x2c0] sm:$0xff]  ;;  %2556 = vmatprep.subr.bf16.mxu0 %v5718_v33  ;;  %v5845_v40 = vcombine.low %v360_v29, %v364_v30  ;;  %v189_v33 = vld [vmem:[#allocation3 + $0x1a8] sm:$0xff] }
  0x8b   :  { %v228_v36 = vld [vmem:[#allocation3 + $0x2e0] sm:$0xff]  ;;  %2557 = vmatpush2.bf16.msra.mxu0 %v5717_v39  ;;  %v5679_v39 = vcombine.low %v193_v18, %v197_v19 }
  0x8c   :  { %v352_v37 = vld [vmem:[#allocation3 + $0x6c0] sm:$0xff]  ;;  %v5710_v41 = vcombine.high %v224_v35, %v228_v36  ;;  %2597 = vmatprep.subr.bf16.mxu1 %v5846_v34  ;;  %v5709_v47 = vcombine.low %v224_v35, %v228_v36  ;;  %v6998_v35 = vmov 0  }
  0x8d   :  { %v356_v38 = vld [vmem:[#allocation3 + $0x6e0] sm:$0xff]  ;;  %2598 = vmatpush2.bf16.msra.mxu1 %v5845_v40 }
  0x8e   :  { %v5838_v42 = vcombine.high %v352_v37, %v356_v38  ;;  %v216_v43 = vld [vmem:[#allocation3 + $0x280] sm:$0xff]  ;;  %2558 = vmatprep.subr.bf16.mxu0 %v5710_v41  ;;  %v5837_v48 = vcombine.low %v352_v37, %v356_v38  ;;  %v7107_v38 = vpack.c.bf16 %v128_v28, %v128_v28  ;;  %v177_v41 = vld [vmem:[#allocation3 + $0x148] sm:$0xff] }
  0x8f   :  { %v220_v44 = vld [vmem:[#allocation3 + $0x2a0] sm:$0xff]  ;;  %2559 = vmatpush2.bf16.msra.mxu0 %v5709_v47  ;;  %v5671_v47 = vcombine.low %v185_v32, %v189_v33 }
  0x90   :  { %v344_v45 = vld [vmem:[#allocation3 + $0x680] sm:$0xff]  ;;  %v5702_v49 = vcombine.high %v216_v43, %v220_v44  ;;  %2599 = vmatprep.subr.bf16.mxu1 %v5838_v42  ;;  %v5701_v55 = vcombine.low %v216_v43, %v220_v44  ;;  %v181_v42 = vld [vmem:[#allocation3 + $0x168] sm:$0xff]  ;;  %v5672_v44 = vcombine.high %v185_v32, %v189_v33 }
  0x91   :  { %v348_v46 = vld [vmem:[#allocation3 + $0x6a0] sm:$0xff]  ;;  %2600 = vmatpush2.bf16.msra.mxu1 %v5837_v48 }
  0x92   :  { %v5830_v50 = vcombine.high %v344_v45, %v348_v46  ;;  %v208_v51 = vld [vmem:[#allocation3 + $0x240] sm:$0xff]  ;;  %2560 = vmatprep.subr.bf16.mxu0 %v5702_v49  ;;  %v5829_v56 = vcombine.low %v344_v45, %v348_v46  ;;  %v169_v49 = vld [vmem:[#allocation3 + $0x108] sm:$0xff] }
  0x93   :  { %v212_v52 = vld [vmem:[#allocation3 + $0x260] sm:$0xff]  ;;  %2561 = vmatpush2.bf16.msra.mxu0 %v5701_v55  ;;  %v5663_v55 = vcombine.low %v177_v41, %v181_v42 }
  0x94   :  { %v336_v53 = vld [vmem:[#allocation3 + $0x640] sm:$0xff]  ;;  %v5694_v57 = vcombine.high %v208_v51, %v212_v52  ;;  %2601 = vmatprep.subr.bf16.mxu1 %v5830_v50  ;;  %v5693_v1 = vcombine.low %v208_v51, %v212_v52  ;;  %v173_v50 = vld [vmem:[#allocation3 + $0x128] sm:$0xff]  ;;  %v5664_v52 = vcombine.high %v177_v41, %v181_v42 }
  0x95   :  { %v340_v54 = vld [vmem:[#allocation3 + $0x660] sm:$0xff]  ;;  %2602 = vmatpush2.bf16.msra.mxu1 %v5829_v56  ;;  %v253_v41 = vld [vmem:[#allocation3 + $0x3a8] sm:$0xff] }
  0x96   :  { %v5822_v58 = vcombine.high %v336_v53, %v340_v54  ;;  %v200_v61 = vld [vmem:[#allocation3 + $0x200] sm:$0xff]  ;;  %2562 = vmatprep.subr.bf16.mxu0 %v5694_v57  ;;  %v5821_v2 = vcombine.low %v336_v53, %v340_v54  ;;  %v161_v57 = vld [vmem:[#allocation3 + $0xc8] sm:$0xff] }
  0x97   :  { %v204_v62 = vld [vmem:[#allocation3 + $0x220] sm:$0xff]  ;;  %2563 = vmatpush2.bf16.msra.mxu0 %v5693_v1  ;;  %v5655_v1 = vcombine.low %v169_v49, %v173_v50 }
  0x98   :  { %v328_v63 = vld [vmem:[#allocation3 + $0x600] sm:$0xff]  ;;  %v5686_v3 = vcombine.high %v200_v61, %v204_v62  ;;  %2603 = vmatprep.subr.bf16.mxu1 %v5822_v58  ;;  %v5685_v9 = vcombine.low %v200_v61, %v204_v62  ;;  %v165_v58 = vld [vmem:[#allocation3 + $0xe8] sm:$0xff]  ;;  %v5656_v62 = vcombine.high %v169_v49, %v173_v50 }
  0x99   :  { %v332_v0 = vld [vmem:[#allocation3 + $0x620] sm:$0xff]  ;;  %2604 = vmatpush2.bf16.msra.mxu1 %v5821_v2  ;;  %v245_v49 = vld [vmem:[#allocation3 + $0x368] sm:$0xff] }
  0x9a   :  { %v5814_v4 = vcombine.high %v328_v63, %v332_v0  ;;  %v448_v5 = vld [vmem:[#allocation3 + $0x9c0] sm:$0xff]  ;;  %2564 = vmatprep.subr.bf16.mxu0 %v5686_v3  ;;  %v5813_v11 = vcombine.low %v328_v63, %v332_v0  ;;  %v153_v3 = vld [vmem:[#allocation3 + $0x88] sm:$0xff] }
  0x9b   :  { %v452_v6 = vld [vmem:[#allocation3 + $0x9e0] sm:$0xff]  ;;  %2565 = vmatpush2.bf16.msra.mxu0 %v5685_v9  ;;  %v5647_v9 = vcombine.low %v161_v57, %v165_v58 }
  0x9c   :  { %v520_v7 = vld [vmem:[#allocation3 + $0xc00] sm:$0xff]  ;;  %v5934_v13 = vcombine.high %v448_v5, %v452_v6  ;;  %2605 = vmatprep.subr.bf16.mxu1 %v5814_v4  ;;  %v5933_v21 = vcombine.low %v448_v5, %v452_v6  ;;  %v157_v4 = vld [vmem:[#allocation3 + $0xa8] sm:$0xff]  ;;  %v5648_v6 = vcombine.high %v161_v57, %v165_v58 }
  0x9d   :  { %v524_v8 = vld [vmem:[#allocation3 + $0xc20] sm:$0xff]  ;;  %2606 = vmatpush2.bf16.msra.mxu1 %v5813_v11  ;;  %v145_v11 = vld [vmem:[#allocation3 + $0x48] sm:$0xff]  ;;  %v5639_v18 = vcombine.low %v153_v3, %v157_v4 }
  0x9e   :  { %v122_v10 = vld [vmem:[%s7290_s0] sm:$0xff]  ;;  %v6006_v14 = vcombine.high %v520_v7, %v524_v8  ;;  %v127_v22 = vld [vmem:[%s7290_s0 + $0x28] sm:$0xff]  ;;  %2616 = vmatprep.subr.bf16.mxu0 %v5934_v13  ;;  %v6005_v23 = vcombine.low %v520_v7, %v524_v8 }
  0x9f   :  { %v440_v15 = vld [vmem:[#allocation3 + $0x980] sm:$0xff]  ;;  %v7091_v17 = vpack.c.bf16 %v122_v10, %v122_v10  ;;  %v7102_v29 = vpack.c.bf16 %v127_v22, %v127_v22  ;;  %v141_v22 = vld [vmem:[#allocation3 + $0x28] sm:$0xff] }
  0xa0   :  { %v444_v16 = vld [vmem:[#allocation3 + $0x9a0] sm:$0xff]  ;;  %2671 = vmatprep.subr.bf16.mxu1 %v6006_v14  ;;  %2608 = vmatmul.mubr.bf16.vlgmr.msra.gmra.mxu1 %v7093_v20  ;;  %v5640_v14 = vcombine.high %v153_v3, %v157_v4  ;;  %v237_v57 = vld [vmem:[#allocation3 + $0x328] sm:$0xff] }
  0xa1   :  { %v5926_v24 = vcombine.high %v440_v15, %v444_v16  ;;  %v432_v25 = vld [vmem:[#allocation3 + $0x940] sm:$0xff]  ;;  %2567 = vmatmul.mubr.bf16.vlgmr.msra.gmra.mxu0 %v7091_v17  ;;  %v5925_v30 = vcombine.low %v440_v15, %v444_v16  ;;  %2672 = vmatpush1.bf16.msra.mxu1 %v6005_v23  ;;  %v229_v3 = vld [vmem:[#allocation3 + $0x2e8] sm:$0xff] }
  0xa2   :  { %v436_v27 = vld [vmem:[#allocation3 + $0x960] sm:$0xff]  ;;  %2617 = vmatpush1.bf16.msra.mxu0 %v5933_v21  ;;  %2689 = vmatprep.mubr.bf16.mxu1 %v6998_v35  ;;  %v137_v21 = vld [vmem:[#allocation3 + $0x8] sm:$0xff] }
  0xa3   :  { %2618 = vmatprep.subr.bf16.mxu0 %v5926_v24  ;;  %v5918_v31 = vcombine.high %v432_v25, %v436_v27  ;;  %v424_v34 = vld [vmem:[#allocation3 + $0x900] sm:$0xff]  ;;  %2698 = vmatprep.subr.bf16.mxu1 %v5680_v26  ;;  %v5917_v37 = vcombine.low %v432_v25, %v436_v27  ;;  %v5632_v24 = vcombine.high %v145_v11, %v149_v12 }
  0xa4   :  { %v428_v36 = vld [vmem:[#allocation3 + $0x920] sm:$0xff]  ;;  %2648 = vmatprep.mubr.bf16.mxu0 %v7102_v29  ;;  %v5631_v27 = vcombine.low %v145_v11, %v149_v12  ;;  %v5624_v33 = vcombine.high %v137_v21, %v141_v22  ;;  %v221_v11 = vld [vmem:[#allocation3 + $0x2a8] sm:$0xff] }
  0xa5   :  { %v5910_v40 = vcombine.high %v424_v34, %v428_v36  ;;  %v416_v43 = vld [vmem:[#allocation3 + $0x8c0] sm:$0xff]  ;;  %v5909_v46 = vcombine.low %v424_v34, %v428_v36 }
  0xa6   :  { %2619 = vmatpush1.bf16.msra.mxu0 %v5925_v30  ;;  %v420_v45 = vld [vmem:[#allocation3 + $0x8e0] sm:$0xff]  ;;  %v257_v30 = vld [vmem:[#allocation3 + $0x3c8] sm:$0xff] }
  0xa7   :  { %2620 = vmatprep.subr.bf16.mxu0 %v5918_v31  ;;  %v5902_v48 = vcombine.high %v416_v43, %v420_v45  ;;  %v408_v51 = vld [vmem:[#allocation3 + $0x880] sm:$0xff]  ;;  %v5901_v54 = vcombine.low %v416_v43, %v420_v45  ;;  %v261_v31 = vld [vmem:[#allocation3 + $0x3e8] sm:$0xff] }
  0xa8   :  { %6013 = vmatmul.mubr.msk.bf16.vlgmr.msra.gmra.mxu1 %vm2530_vm0, %v7107_v38  ;;  %v412_v53 = vld [vmem:[#allocation3 + $0x8a0] sm:$0xff]  ;;  %v5744_v43 = vcombine.high %v257_v30, %v261_v31 }
  0xa9   :  { %2699 = vmatpush1.bf16.msra.mxu1 %v5679_v39  ;;  %2730 = vmatprep.mubr.bf16.mxu1 %v7079_v59  ;;  %v5894_v56 = vcombine.high %v408_v51, %v412_v53  ;;  %v400_v61 = vld [vmem:[#allocation3 + $0x840] sm:$0xff]  ;;  %v5893_v0 = vcombine.low %v408_v51, %v412_v53 }
  0xaa   :  { %2621 = vmatpush1.bf16.msra.mxu0 %v5917_v37  ;;  %2700 = vmatprep.subr.bf16.mxu1 %v5672_v44  ;;  %v404_v63 = vld [vmem:[#allocation3 + $0x860] sm:$0xff]  ;;  %v5623_v37 = vcombine.low %v137_v21, %v141_v22  ;;  %v213_v21 = vld [vmem:[#allocation3 + $0x268] sm:$0xff] }
  0xab   :  { %2622 = vmatprep.subr.bf16.mxu0 %v5910_v40  ;;  %v5886_v2 = vcombine.high %v400_v61, %v404_v63  ;;  %v392_v5 = vld [vmem:[#allocation3 + $0x800] sm:$0xff]  ;;  %v5885_v8 = vcombine.low %v400_v61, %v404_v63  ;;  %v249_v40 = vld [vmem:[#allocation3 + $0x388] sm:$0xff] }
  0xac   :  { %v396_v7 = vld [vmem:[#allocation3 + $0x820] sm:$0xff]  ;;  %v5736_v51 = vcombine.high %v249_v40, %v253_v41  ;;  %v321_v22 = vld [vmem:[#allocation3 + $0x5c8] sm:$0xff] }
  0xad   :  { %2701 = vmatpush1.bf16.msra.mxu1 %v5671_v47  ;;  %v5878_v10 = vcombine.high %v392_v5, %v396_v7  ;;  %v512_v13 = vld [vmem:[#allocation3 + $0xbc0] sm:$0xff]  ;;  %v5877_v16 = vcombine.low %v392_v5, %v396_v7 }
  0xae   :  { %2623 = vmatpush1.bf16.msra.mxu0 %v5909_v46  ;;  %2702 = vmatprep.subr.bf16.mxu1 %v5664_v52  ;;  %v516_v15 = vld [vmem:[#allocation3 + $0xbe0] sm:$0xff]  ;;  %v5743_v46 = vcombine.low %v257_v30, %v261_v31  ;;  %v201_v30 = vld [vmem:[#allocation3 + $0x208] sm:$0xff] }
  0xaf   :  { %2624 = vmatprep.subr.bf16.mxu0 %v5902_v48  ;;  %v5998_v19 = vcombine.high %v512_v13, %v516_v15  ;;  %v504_v23 = vld [vmem:[#allocation3 + $0xb80] sm:$0xff]  ;;  %v5997_v26 = vcombine.low %v512_v13, %v516_v15  ;;  %v241_v48 = vld [vmem:[#allocation3 + $0x348] sm:$0xff] }
  0xb0   :  { %v508_v25 = vld [vmem:[#allocation3 + $0xba0] sm:$0xff]  ;;  %v5728_v61 = vcombine.high %v241_v48, %v245_v49  ;;  %v205_v31 = vld [vmem:[#allocation3 + $0x228] sm:$0xff] }
  0xb1   :  { %2703 = vmatpush1.bf16.msra.mxu1 %v5663_v55  ;;  %v5990_v28 = vcombine.high %v504_v23, %v508_v25  ;;  %v496_v32 = vld [vmem:[#allocation3 + $0xb40] sm:$0xff]  ;;  %v5989_v36 = vcombine.low %v504_v23, %v508_v25  ;;  %v325_v25 = vld [vmem:[#allocation3 + $0x5e8] sm:$0xff] }
  0xb2   :  { %2625 = vmatpush1.bf16.msra.mxu0 %v5901_v54  ;;  %2704 = vmatprep.subr.bf16.mxu1 %v5656_v62  ;;  %v500_v34 = vld [vmem:[#allocation3 + $0xb60] sm:$0xff]  ;;  %v5735_v54 = vcombine.low %v249_v40, %v253_v41  ;;  %v449_v41 = vld [vmem:[#allocation3 + $0x9c8] sm:$0xff] }
  0xb3   :  { %2626 = vmatprep.subr.bf16.mxu0 %v5894_v56  ;;  %v5982_v39 = vcombine.high %v496_v32, %v500_v34  ;;  %v488_v42 = vld [vmem:[#allocation3 + $0xb00] sm:$0xff]  ;;  %v5981_v45 = vcombine.low %v496_v32, %v500_v34  ;;  %v233_v56 = vld [vmem:[#allocation3 + $0x308] sm:$0xff] }
  0xb4   :  { %v492_v44 = vld [vmem:[#allocation3 + $0xb20] sm:$0xff]  ;;  %v5720_v5 = vcombine.high %v233_v56, %v237_v57  ;;  %v313_v32 = vld [vmem:[#allocation3 + $0x588] sm:$0xff] }
  0xb5   :  { %2705 = vmatpush1.bf16.msra.mxu1 %v5655_v1  ;;  %v5974_v47 = vcombine.high %v488_v42, %v492_v44  ;;  %v480_v50 = vld [vmem:[#allocation3 + $0xac0] sm:$0xff]  ;;  %v5973_v53 = vcombine.low %v488_v42, %v492_v44  ;;  %v317_v34 = vld [vmem:[#allocation3 + $0x5a8] sm:$0xff] }
  0xb6   :  { %2627 = vmatpush1.bf16.msra.mxu0 %v5893_v0  ;;  %2706 = vmatprep.subr.bf16.mxu1 %v5648_v6  ;;  %v484_v52 = vld [vmem:[#allocation3 + $0xae0] sm:$0xff]  ;;  %v5727_v0 = vcombine.low %v241_v48, %v245_v49  ;;  %v5800_v40 = vcombine.high %v313_v32, %v317_v34  ;;  %v453_v42 = vld [vmem:[#allocation3 + $0x9e8] sm:$0xff] }
  0xb7   :  { %2628 = vmatprep.subr.bf16.mxu0 %v5886_v2  ;;  %v5966_v55 = vcombine.high %v480_v50, %v484_v52  ;;  %v472_v58 = vld [vmem:[#allocation3 + $0xa80] sm:$0xff]  ;;  %v5965_v63 = vcombine.low %v480_v50, %v484_v52  ;;  %v225_v2 = vld [vmem:[#allocation3 + $0x2c8] sm:$0xff]  ;;  %v5936_v52 = vcombine.high %v449_v41, %v453_v42 }
  0xb8   :  { %v476_v62 = vld [vmem:[#allocation3 + $0xaa0] sm:$0xff]  ;;  %v5712_v13 = vcombine.high %v225_v2, %v229_v3  ;;  %v305_v44 = vld [vmem:[#allocation3 + $0x548] sm:$0xff] }
  0xb9   :  { %2707 = vmatpush1.bf16.msra.mxu1 %v5647_v9  ;;  %v5958_v1 = vcombine.high %v472_v58, %v476_v62  ;;  %v464_v4 = vld [vmem:[#allocation3 + $0xa40] sm:$0xff]  ;;  %v5957_v7 = vcombine.low %v472_v58, %v476_v62  ;;  %v441_v49 = vld [vmem:[#allocation3 + $0x988] sm:$0xff] }
  0xba   :  { %2629 = vmatpush1.bf16.msra.mxu0 %v5885_v8  ;;  %2708 = vmatprep.subr.bf16.mxu1 %v5640_v14  ;;  %v468_v6 = vld [vmem:[#allocation3 + $0xa60] sm:$0xff]  ;;  %v5719_v8 = vcombine.low %v233_v56, %v237_v57  ;;  %v445_v50 = vld [vmem:[#allocation3 + $0x9a8] sm:$0xff] }
  0xbb   :  { %2630 = vmatprep.subr.bf16.mxu0 %v5878_v10  ;;  %v5950_v9 = vcombine.high %v464_v4, %v468_v6  ;;  %v217_v10 = vld [vmem:[#allocation3 + $0x288] sm:$0xff]  ;;  %v456_v12 = vld [vmem:[#allocation3 + $0xa00] sm:$0xff]  ;;  %v5949_v15 = vcombine.low %v464_v4, %v468_v6 }
  0xbc   :  { %v460_v14 = vld [vmem:[#allocation3 + $0xa20] sm:$0xff]  ;;  %v5704_v23 = vcombine.high %v217_v10, %v221_v11  ;;  %v433_v57 = vld [vmem:[#allocation3 + $0x948] sm:$0xff] }
  0xbd   :  { %2709 = vmatpush1.bf16.msra.mxu1 %v5639_v18  ;;  %v5942_v18 = vcombine.high %v456_v12, %v460_v14  ;;  %v437_v58 = vld [vmem:[#allocation3 + $0x968] sm:$0xff] }
  0xbe   :  { %2631 = vmatpush1.bf16.msra.mxu0 %v5877_v16  ;;  %2710 = vmatprep.subr.bf16.mxu1 %v5632_v24  ;;  %v5711_v16 = vcombine.low %v225_v2, %v229_v3  ;;  %v126_v24 = vld [vmem:[%s7290_s0 + $0x20] sm:$0xff]  ;;  %v293_v62 = vld [vmem:[#allocation3 + $0x4e8] sm:$0xff] }
  0xbf   :  { %2632 = vmatprep.subr.bf16.mxu0 %v5998_v19  ;;  %v209_v19 = vld [vmem:[#allocation3 + $0x248] sm:$0xff] }
  0xc0   :  { %v425_v3 = vld [vmem:[#allocation3 + $0x908] sm:$0xff] }
  0xc1   :  { %2711 = vmatpush1.bf16.msra.mxu1 %v5631_v27  ;;  %v5703_v27 = vcombine.low %v217_v10, %v221_v11  ;;  %v429_v4 = vld [vmem:[#allocation3 + $0x928] sm:$0xff] }
  0xc2   :  { %2633 = vmatpush2.bf16.msra.mxu0 %v5997_v26  ;;  %2712 = vmatprep.subr.bf16.mxu1 %v5624_v33  ;;  %v5941_v26 = vcombine.low %v456_v12, %v460_v14  ;;  %v5696_v33 = vcombine.high %v209_v19, %v213_v21  ;;  %v285_v6 = vld [vmem:[#allocation3 + $0x4a8] sm:$0xff] }
  0xc3   :  { %2634 = vmatprep.subr.bf16.mxu0 %v5990_v28  ;;  %v5808_v28 = vcombine.high %v321_v22, %v325_v25  ;;  %v417_v11 = vld [vmem:[#allocation3 + $0x8c8] sm:$0xff] }
  0xc4   :  { %v421_v12 = vld [vmem:[#allocation3 + $0x8e8] sm:$0xff] }
  0xc5   :  { %2713 = vmatpush1.bf16.msra.mxu1 %v5623_v37  ;;  %v5807_v37 = vcombine.low %v321_v22, %v325_v25  ;;  %v277_v14 = vld [vmem:[#allocation3 + $0x468] sm:$0xff] }
  0xc6   :  { %2635 = vmatpush2.bf16.msra.mxu0 %v5989_v36  ;;  %2714 = vmatprep.subr.bf16.mxu1 %v5744_v43  ;;  %v7115_v36 = vpack.c.bf16 %v126_v24, %v126_v24  ;;  %v5688_v43 = vcombine.high %v201_v30, %v205_v31  ;;  %v413_v22 = vld [vmem:[#allocation3 + $0x8a8] sm:$0xff] }
  0xc7   :  { %2636 = vmatprep.subr.bf16.mxu0 %v5982_v39  ;;  %v5695_v39 = vcombine.low %v209_v19, %v213_v21  ;;  %v409_v21 = vld [vmem:[#allocation3 + $0x888] sm:$0xff] }
  0xc8   :  { %v265_v24 = vld [vmem:[#allocation3 + $0x408] sm:$0xff] }
  0xc9   :  { %2715 = vmatpush2.bf16.msra.mxu1 %v5743_v46  ;;  %v5799_v46 = vcombine.low %v313_v32, %v317_v34  ;;  %v269_v25 = vld [vmem:[#allocation3 + $0x428] sm:$0xff]  ;;  %v5896_v32 = vcombine.high %v409_v21, %v413_v22 }
  0xca   :  { %2637 = vmatpush2.bf16.msra.mxu0 %v5981_v45  ;;  %2716 = vmatprep.subr.bf16.mxu1 %v5736_v51  ;;  %v309_v45 = vld [vmem:[#allocation3 + $0x568] sm:$0xff] }
  0xcb   :  { %2638 = vmatprep.subr.bf16.mxu0 %v5974_v47  ;;  %v5687_v47 = vcombine.low %v201_v30, %v205_v31  ;;  %v5792_v48 = vcombine.high %v305_v44, %v309_v45  ;;  %v297_v51 = vld [vmem:[#allocation3 + $0x508] sm:$0xff] }
  0xcc   :  { %v401_v30 = vld [vmem:[#allocation3 + $0x848] sm:$0xff] }
  0xcd   :  { %2717 = vmatpush2.bf16.msra.mxu1 %v5735_v54  ;;  %v5791_v54 = vcombine.low %v305_v44, %v309_v45  ;;  %v405_v31 = vld [vmem:[#allocation3 + $0x868] sm:$0xff] }
  0xce   :  { %2639 = vmatpush2.bf16.msra.mxu0 %v5973_v53  ;;  %2718 = vmatprep.subr.bf16.mxu1 %v5728_v61  ;;  %v301_v53 = vld [vmem:[#allocation3 + $0x528] sm:$0xff] }
  0xcf   :  { %2640 = vmatprep.subr.bf16.mxu0 %v5966_v55  ;;  %v5935_v55 = vcombine.low %v449_v41, %v453_v42  ;;  %v5784_v56 = vcombine.high %v297_v51, %v301_v53  ;;  %v289_v61 = vld [vmem:[#allocation3 + $0x4c8] sm:$0xff] }
  0xd0   :  { %v5776_v2 = vcombine.high %v289_v61, %v293_v62  ;;  %v389_v34 = vld [vmem:[#allocation3 + $0x7e8] sm:$0xff] }
  0xd1   :  { %2719 = vmatpush2.bf16.msra.mxu1 %v5727_v0  ;;  %v5783_v0 = vcombine.low %v297_v51, %v301_v53  ;;  %v393_v41 = vld [vmem:[#allocation3 + $0x808] sm:$0xff] }
  0xd2   :  { %2641 = vmatpush2.bf16.msra.mxu0 %v5965_v63  ;;  %2720 = vmatprep.subr.bf16.mxu1 %v5720_v5  ;;  %v5928_v63 = vcombine.high %v441_v49, %v445_v50  ;;  %v281_v5 = vld [vmem:[#allocation3 + $0x488] sm:$0xff] }
  0xd3   :  { %2642 = vmatprep.subr.bf16.mxu0 %v5958_v1  ;;  %v5927_v1 = vcombine.low %v441_v49, %v445_v50  ;;  %v5768_v10 = vcombine.high %v281_v5, %v285_v6  ;;  %v397_v42 = vld [vmem:[#allocation3 + $0x828] sm:$0xff] }
  0xd4   :  { %v377_v44 = vld [vmem:[#allocation3 + $0x788] sm:$0xff]  ;;  %v5880_v51 = vcombine.high %v393_v41, %v397_v42 }
  0xd5   :  { %2721 = vmatpush2.bf16.msra.mxu1 %v5719_v8  ;;  %v5775_v8 = vcombine.low %v289_v61, %v293_v62  ;;  %v381_v45 = vld [vmem:[#allocation3 + $0x7a8] sm:$0xff] }
  0xd6   :  { %2643 = vmatpush2.bf16.msra.mxu0 %v5957_v7  ;;  %2722 = vmatprep.subr.bf16.mxu1 %v5712_v13  ;;  %v5920_v7 = vcombine.high %v433_v57, %v437_v58  ;;  %v273_v13 = vld [vmem:[#allocation3 + $0x448] sm:$0xff] }
  0xd7   :  { %2644 = vmatprep.subr.bf16.mxu0 %v5950_v9  ;;  %v5919_v9 = vcombine.low %v433_v57, %v437_v58  ;;  %v5760_v19 = vcombine.high %v273_v13, %v277_v14  ;;  %v513_v49 = vld [vmem:[#allocation3 + $0xbc8] sm:$0xff] }
  0xd8   :  { %v517_v50 = vld [vmem:[#allocation3 + $0xbe8] sm:$0xff] }
  0xd9   :  { %2723 = vmatpush2.bf16.msra.mxu1 %v5711_v16  ;;  %v5767_v16 = vcombine.low %v281_v5, %v285_v6  ;;  %v373_v53 = vld [vmem:[#allocation3 + $0x768] sm:$0xff]  ;;  %v6000_v61 = vcombine.high %v513_v49, %v517_v50 }
  0xda   :  { %2645 = vmatpush2.bf16.msra.mxu0 %v5949_v15  ;;  %2724 = vmatprep.subr.bf16.mxu1 %v5704_v23  ;;  %v5912_v15 = vcombine.high %v425_v3, %v429_v4  ;;  %v5904_v23 = vcombine.high %v417_v11, %v421_v12  ;;  %v505_v57 = vld [vmem:[#allocation3 + $0xb88] sm:$0xff] }
  0xdb   :  { %2646 = vmatprep.subr.bf16.mxu0 %v5942_v18  ;;  %v5911_v18 = vcombine.low %v425_v3, %v429_v4  ;;  %v509_v58 = vld [vmem:[#allocation3 + $0xba8] sm:$0xff] }
  0xdc   :  { %v361_v62 = vld [vmem:[#allocation3 + $0x708] sm:$0xff]  ;;  %v5992_v5 = vcombine.high %v505_v57, %v509_v58 }
  0xdd   :  { %2725 = vmatpush2.bf16.msra.mxu1 %v5703_v27  ;;  %v5903_v27 = vcombine.low %v417_v11, %v421_v12  ;;  %v497_v3 = vld [vmem:[#allocation3 + $0xb48] sm:$0xff] }
  0xde   :  { %2647 = vmatpush2.bf16.msra.mxu0 %v5941_v26  ;;  %2726 = vmatprep.subr.bf16.mxu1 %v5696_v33  ;;  %v5759_v26 = vcombine.low %v273_v13, %v277_v14  ;;  %v385_v33 = vld [vmem:[#allocation3 + $0x7c8] sm:$0xff] }
  0xdf   :  { %2739 = vmatprep.subr.bf16.mxu0 %v5808_v28  ;;  %v5752_v28 = vcombine.high %v265_v24, %v269_v25  ;;  %v501_v4 = vld [vmem:[#allocation3 + $0xb68] sm:$0xff] }
  0xe0   :  { %v353_v6 = vld [vmem:[#allocation3 + $0x6c8] sm:$0xff]  ;;  %v5984_v13 = vcombine.high %v497_v3, %v501_v4 }
  0xe1   :  { %2649 = vmatmul.mubr.bf16.vlgmr.msra.gmra.mxu0 %v7115_v36  ;;  %2727 = vmatpush2.bf16.msra.mxu1 %v5695_v39  ;;  %v5895_v39 = vcombine.low %v409_v21, %v413_v22  ;;  %v489_v11 = vld [vmem:[#allocation3 + $0xb08] sm:$0xff] }
  0xe2   :  { %2740 = vmatpush1.bf16.msra.mxu0 %v5807_v37  ;;  %2771 = vmatprep.mubr.bf16.mxu0 %v7081_v60  ;;  %v5751_v37 = vcombine.low %v265_v24, %v269_v25  ;;  %v493_v12 = vld [vmem:[#allocation3 + $0xb28] sm:$0xff] }
  0xe3   :  { %2741 = vmatprep.subr.bf16.mxu0 %v5800_v40  ;;  %2728 = vmatprep.subr.bf16.mxu1 %v5688_v43  ;;  %v5872_v40 = vcombine.high %v385_v33, %v389_v34  ;;  %v5888_v43 = vcombine.high %v401_v30, %v405_v31  ;;  %v345_v14 = vld [vmem:[#allocation3 + $0x688] sm:$0xff] }
  0xe4   :  { %v481_v21 = vld [vmem:[#allocation3 + $0xac8] sm:$0xff] }
  0xe5   :  { %2729 = vmatpush2.bf16.msra.mxu1 %v5687_v47  ;;  %v5887_v47 = vcombine.low %v401_v30, %v405_v31  ;;  %v485_v22 = vld [vmem:[#allocation3 + $0xae8] sm:$0xff] }
  0xe6   :  { %2742 = vmatpush1.bf16.msra.mxu0 %v5799_v46  ;;  %2780 = vmatprep.subr.bf16.mxu1 %v5936_v52  ;;  %v5871_v46 = vcombine.low %v385_v33, %v389_v34  ;;  %v369_v52 = vld [vmem:[#allocation3 + $0x748] sm:$0xff] }
  0xe7   :  { %2743 = vmatprep.subr.bf16.mxu0 %v5792_v48  ;;  %v5864_v48 = vcombine.high %v377_v44, %v381_v45  ;;  %v337_v24 = vld [vmem:[#allocation3 + $0x648] sm:$0xff] }
  0xe8   :  { %2731 = vmatmul.mubr.bf16.vlgmr.msra.gmra.mxu1 %v7091_v17  ;;  %v341_v25 = vld [vmem:[#allocation3 + $0x668] sm:$0xff] }
  0xe9   :  { %2781 = vmatpush1.bf16.msra.mxu1 %v5935_v55  ;;  %2812 = vmatprep.mubr.bf16.mxu1 %v7102_v29  ;;  %v5879_v55 = vcombine.low %v393_v41, %v397_v42  ;;  %v473_v30 = vld [vmem:[#allocation3 + $0xa88] sm:$0xff] }
  0xea   :  { %2744 = vmatpush1.bf16.msra.mxu0 %v5791_v54  ;;  %2782 = vmatprep.subr.bf16.mxu1 %v5928_v63  ;;  %v5863_v54 = vcombine.low %v377_v44, %v381_v45  ;;  %v365_v63 = vld [vmem:[#allocation3 + $0x728] sm:$0xff] }
  0xeb   :  { %2745 = vmatprep.subr.bf16.mxu0 %v5784_v56  ;;  %v5856_v56 = vcombine.high %v369_v52, %v373_v53  ;;  %v477_v31 = vld [vmem:[#allocation3 + $0xaa8] sm:$0xff] }
  0xec   :  { %v329_v33 = vld [vmem:[#allocation3 + $0x608] sm:$0xff] }
  0xed   :  { %2783 = vmatpush1.bf16.msra.mxu1 %v5927_v1  ;;  %v5999_v1 = vcombine.low %v513_v49, %v517_v50  ;;  %v333_v34 = vld [vmem:[#allocation3 + $0x628] sm:$0xff] }
  0xee   :  { %2746 = vmatpush1.bf16.msra.mxu0 %v5783_v0  ;;  %2784 = vmatprep.subr.bf16.mxu1 %v5920_v7  ;;  %v5855_v0 = vcombine.low %v369_v52, %v373_v53  ;;  %v357_v7 = vld [vmem:[#allocation3 + $0x6e8] sm:$0xff]  ;;  %v194_v52 = vld [vmem:[#allocation3 + $0x1d0] sm:$0xff] }
  0xef   :  { %2747 = vmatprep.subr.bf16.mxu0 %v5776_v2  ;;  %v5848_v2 = vcombine.high %v361_v62, %v365_v63  ;;  %v465_v41 = vld [vmem:[#allocation3 + $0xa48] sm:$0xff]  ;;  %v198_v53 = vld [vmem:[#allocation3 + $0x1f0] sm:$0xff] }
  0xf0   :  { %v469_v42 = vld [vmem:[#allocation3 + $0xa68] sm:$0xff] }
  0xf1   :  { %2785 = vmatpush1.bf16.msra.mxu1 %v5919_v9  ;;  %v5991_v9 = vcombine.low %v505_v57, %v509_v58  ;;  %v521_v44 = vld [vmem:[#allocation3 + $0xc08] sm:$0xff]  ;;  %v322_v58 = vld [vmem:[#allocation3 + $0x5d0] sm:$0xff] }
  0xf2   :  { %2748 = vmatpush1.bf16.msra.mxu0 %v5775_v8  ;;  %2786 = vmatprep.subr.bf16.mxu1 %v5912_v15  ;;  %v5847_v8 = vcombine.low %v361_v62, %v365_v63  ;;  %v349_v15 = vld [vmem:[#allocation3 + $0x6a8] sm:$0xff]  ;;  %v186_v63 = vld [vmem:[#allocation3 + $0x190] sm:$0xff] }
  0xf3   :  { %2749 = vmatprep.subr.bf16.mxu0 %v5768_v10  ;;  %v5840_v10 = vcombine.high %v353_v6, %v357_v7  ;;  %v525_v45 = vld [vmem:[#allocation3 + $0xc28] sm:$0xff] }
  0xf4   :  { %v457_v49 = vld [vmem:[#allocation3 + $0xa08] sm:$0xff] }
  0xf5   :  { %2787 = vmatpush1.bf16.msra.mxu1 %v5911_v18  ;;  %v5983_v18 = vcombine.low %v497_v3, %v501_v4  ;;  %v461_v50 = vld [vmem:[#allocation3 + $0xa28] sm:$0xff]  ;;  %v318_v3 = vld [vmem:[#allocation3 + $0x5b0] sm:$0xff]  ;;  %v5681_v4 = vcombine.low %v194_v52, %v198_v53 }
  0xf6   :  { %2750 = vmatpush1.bf16.msra.mxu0 %v5767_v16  ;;  %2788 = vmatprep.subr.bf16.mxu1 %v5904_v23  ;;  %v5839_v16 = vcombine.low %v353_v6, %v357_v7  ;;  %v5976_v23 = vcombine.high %v489_v11, %v493_v12  ;;  %v5944_v57 = vcombine.high %v457_v49, %v461_v50  ;;  %v178_v7 = vld [vmem:[#allocation3 + $0x150] sm:$0xff] }
  0xf7   :  { %2751 = vmatprep.subr.bf16.mxu0 %v5760_v19  ;;  %v5832_v19 = vcombine.high %v345_v14, %v349_v15  ;;  %v5943_v62 = vcombine.low %v457_v49, %v461_v50  ;;  %v278_v49 = vld [vmem:[#allocation3 + $0x470] sm:$0xff] }
  0xf9   :  { %2789 = vmatpush1.bf16.msra.mxu1 %v5903_v27  ;;  %v5975_v27 = vcombine.low %v489_v11, %v493_v12  ;;  %v310_v11 = vld [vmem:[#allocation3 + $0x570] sm:$0xff] }
  0xfa   :  { %2752 = vmatpush1.bf16.msra.mxu0 %v5759_v26  ;;  %2790 = vmatprep.subr.bf16.mxu1 %v5896_v32  ;;  %v5831_v26 = vcombine.low %v345_v14, %v349_v15  ;;  %v5968_v32 = vcombine.high %v481_v21, %v485_v22  ;;  %v170_v15 = vld [vmem:[#allocation3 + $0x110] sm:$0xff] }
  0xfb   :  { %2753 = vmatprep.subr.bf16.mxu0 %v5752_v28  ;;  %v5824_v28 = vcombine.high %v337_v24, %v341_v25 }
  0xfd   :  { %2791 = vmatpush1.bf16.msra.mxu1 %v5895_v39  ;;  %v5967_v39 = vcombine.low %v481_v21, %v485_v22  ;;  %v302_v21 = vld [vmem:[#allocation3 + $0x530] sm:$0xff] }
  0xfe   :  { %2754 = vmatpush1.bf16.msra.mxu0 %v5751_v37  ;;  %2792 = vmatprep.subr.bf16.mxu1 %v5888_v43  ;;  %v5823_v37 = vcombine.low %v337_v24, %v341_v25  ;;  %v5960_v43 = vcombine.high %v473_v30, %v477_v31  ;;  %v162_v25 = vld [vmem:[#allocation3 + $0xd0] sm:$0xff] }
  0xff   :  { %2755 = vmatprep.subr.bf16.mxu0 %v5872_v40  ;;  %v5816_v40 = vcombine.high %v329_v33, %v333_v34 }
 0x101   :  { %2793 = vmatpush1.bf16.msra.mxu1 %v5887_v47  ;;  %v5959_v47 = vcombine.low %v473_v30, %v477_v31  ;;  %v294_v30 = vld [vmem:[#allocation3 + $0x4f0] sm:$0xff] }
 0x102   :  { %2756 = vmatpush2.bf16.msra.mxu0 %v5871_v46  ;;  %2794 = vmatprep.subr.bf16.mxu1 %v5880_v51  ;;  %v5815_v46 = vcombine.low %v329_v33, %v333_v34  ;;  %v5952_v51 = vcombine.high %v465_v41, %v469_v42  ;;  %v154_v34 = vld [vmem:[#allocation3 + $0x90] sm:$0xff] }
 0x103   :  { %2757 = vmatprep.subr.bf16.mxu0 %v5864_v48  ;;  %v6008_v48 = vcombine.high %v521_v44, %v525_v45 }
 0x105   :  { %2795 = vmatpush1.bf16.msra.mxu1 %v5879_v55  ;;  %v5951_v55 = vcombine.low %v465_v41, %v469_v42  ;;  %v286_v41 = vld [vmem:[#allocation3 + $0x4b0] sm:$0xff] }
 0x106   :  { %2758 = vmatpush2.bf16.msra.mxu0 %v5863_v54  ;;  %2796 = vmatprep.subr.bf16.mxu1 %v6000_v61  ;;  %v6007_v54 = vcombine.low %v521_v44, %v525_v45  ;;  %v326_v61 = vld [vmem:[#allocation3 + $0x5f0] sm:$0xff] }
 0x107   :  { %2759 = vmatprep.subr.bf16.mxu0 %v5856_v56  ;;  %v5682_v56 = vcombine.high %v194_v52, %v198_v53  ;;  %v146_v45 = vld [vmem:[#allocation3 + $0x50] sm:$0xff] }
 0x108   :  { %v138_v53 = vld [vmem:[#allocation3 + $0x10] sm:$0xff] }
 0x109   :  { %2797 = vmatpush2.bf16.msra.mxu1 %v5999_v1  ;;  %v5810_v1 = vcombine.high %v322_v58, %v326_v61 }
 0x10a   :  { %2760 = vmatpush2.bf16.msra.mxu0 %v5855_v0  ;;  %2798 = vmatprep.subr.bf16.mxu1 %v5992_v5  ;;  %v190_v0 = vld [vmem:[#allocation3 + $0x1b0] sm:$0xff]  ;;  %v5809_v5 = vcombine.low %v322_v58, %v326_v61 }
 0x10b   :  { %2761 = vmatprep.subr.bf16.mxu0 %v5848_v2  ;;  %v314_v2 = vld [vmem:[#allocation3 + $0x590] sm:$0xff]  ;;  %v5674_v6 = vcombine.high %v186_v63, %v190_v0  ;;  %v5673_v12 = vcombine.low %v186_v63, %v190_v0 }
 0x10c   :  { %v258_v0 = vld [vmem:[#allocation3 + $0x3d0] sm:$0xff] }
 0x10d   :  { %2799 = vmatpush2.bf16.msra.mxu1 %v5991_v9  ;;  %v5802_v9 = vcombine.high %v314_v2, %v318_v3 }
 0x10e   :  { %2762 = vmatpush2.bf16.msra.mxu0 %v5847_v8  ;;  %2800 = vmatprep.subr.bf16.mxu1 %v5984_v13  ;;  %v182_v8 = vld [vmem:[#allocation3 + $0x170] sm:$0xff]  ;;  %v5801_v13 = vcombine.low %v314_v2, %v318_v3 }
 0x10f   :  { %2763 = vmatprep.subr.bf16.mxu0 %v5840_v10  ;;  %v306_v10 = vld [vmem:[#allocation3 + $0x550] sm:$0xff]  ;;  %v5666_v14 = vcombine.high %v178_v7, %v182_v8  ;;  %v5665_v22 = vcombine.low %v178_v7, %v182_v8 }
 0x110   :  { %v386_v2 = vld [vmem:[#allocation3 + $0x7d0] sm:$0xff] }
 0x111   :  { %2801 = vmatpush2.bf16.msra.mxu1 %v5983_v18  ;;  %v5794_v18 = vcombine.high %v306_v10, %v310_v11  ;;  %v390_v3 = vld [vmem:[#allocation3 + $0x7f0] sm:$0xff] }
 0x112   :  { %2764 = vmatpush2.bf16.msra.mxu0 %v5839_v16  ;;  %2802 = vmatprep.subr.bf16.mxu1 %v5976_v23  ;;  %v174_v16 = vld [vmem:[#allocation3 + $0x130] sm:$0xff]  ;;  %v5793_v23 = vcombine.low %v306_v10, %v310_v11  ;;  %v5874_v7 = vcombine.high %v386_v2, %v390_v3 }
 0x113   :  { %2765 = vmatprep.subr.bf16.mxu0 %v5832_v19  ;;  %v298_v19 = vld [vmem:[#allocation3 + $0x510] sm:$0xff]  ;;  %v5658_v24 = vcombine.high %v170_v15, %v174_v16  ;;  %v5657_v31 = vcombine.low %v170_v15, %v174_v16 }
 0x114   :  { %v250_v8 = vld [vmem:[#allocation3 + $0x390] sm:$0xff] }
 0x115   :  { %2803 = vmatpush2.bf16.msra.mxu1 %v5975_v27  ;;  %v5786_v27 = vcombine.high %v298_v19, %v302_v21  ;;  %v378_v10 = vld [vmem:[#allocation3 + $0x790] sm:$0xff] }
 0x116   :  { %2766 = vmatpush2.bf16.msra.mxu0 %v5831_v26  ;;  %2804 = vmatprep.subr.bf16.mxu1 %v5968_v32  ;;  %v166_v26 = vld [vmem:[#allocation3 + $0xf0] sm:$0xff]  ;;  %v5785_v32 = vcombine.low %v298_v19, %v302_v21 }
 0x117   :  { %2767 = vmatprep.subr.bf16.mxu0 %v5824_v28  ;;  %v290_v28 = vld [vmem:[#allocation3 + $0x4d0] sm:$0xff]  ;;  %v5650_v33 = vcombine.high %v162_v25, %v166_v26  ;;  %v5649_v42 = vcombine.low %v162_v25, %v166_v26 }
 0x118   :  { %v382_v11 = vld [vmem:[#allocation3 + $0x7b0] sm:$0xff] }
 0x119   :  { %2805 = vmatpush2.bf16.msra.mxu1 %v5967_v39  ;;  %v5778_v39 = vcombine.high %v290_v28, %v294_v30  ;;  %v5866_v15 = vcombine.high %v378_v10, %v382_v11  ;;  %v242_v16 = vld [vmem:[#allocation3 + $0x350] sm:$0xff] }
 0x11a   :  { %2768 = vmatpush2.bf16.msra.mxu0 %v5823_v37  ;;  %2806 = vmatprep.subr.bf16.mxu1 %v5960_v43  ;;  %v158_v37 = vld [vmem:[#allocation3 + $0xb0] sm:$0xff]  ;;  %v5777_v43 = vcombine.low %v290_v28, %v294_v30 }
 0x11b   :  { %2769 = vmatprep.subr.bf16.mxu0 %v5816_v40  ;;  %v282_v40 = vld [vmem:[#allocation3 + $0x490] sm:$0xff]  ;;  %v5642_v44 = vcombine.high %v154_v34, %v158_v37  ;;  %v5641_v50 = vcombine.low %v154_v34, %v158_v37 }
 0x11c   :  { %v370_v19 = vld [vmem:[#allocation3 + $0x750] sm:$0xff] }
 0x11d   :  { %2807 = vmatpush2.bf16.msra.mxu1 %v5959_v47  ;;  %v5770_v47 = vcombine.high %v282_v40, %v286_v41  ;;  %v374_v21 = vld [vmem:[#allocation3 + $0x770] sm:$0xff] }
 0x11e   :  { %2770 = vmatpush2.bf16.msra.mxu0 %v5815_v46  ;;  %2808 = vmatprep.subr.bf16.mxu1 %v5952_v51  ;;  %v150_v46 = vld [vmem:[#allocation3 + $0x70] sm:$0xff]  ;;  %v5769_v51 = vcombine.low %v282_v40, %v286_v41  ;;  %v5858_v25 = vcombine.high %v370_v19, %v374_v21 }
 0x11f   :  { %2835 = vmatprep.subr.bf16.mxu0 %v6008_v48  ;;  %v274_v48 = vld [vmem:[#allocation3 + $0x450] sm:$0xff]  ;;  %v5634_v52 = vcombine.high %v146_v45, %v150_v46  ;;  %v5633_v58 = vcombine.low %v146_v45, %v150_v46 }
 0x120   :  { %v5761_v61 = vcombine.low %v274_v48, %v278_v49  ;;  %v234_v26 = vld [vmem:[#allocation3 + $0x310] sm:$0xff] }
 0x121   :  { %2772 = vmatmul.mubr.bf16.vlgmr.msra.gmra.mxu0 %v7093_v20  ;;  %2809 = vmatpush2.bf16.msra.mxu1 %v5951_v55  ;;  %v5762_v55 = vcombine.high %v274_v48, %v278_v49  ;;  %v362_v28 = vld [vmem:[#allocation3 + $0x710] sm:$0xff] }
 0x122   :  { %2836 = vmatpush1.bf16.msra.mxu0 %v6007_v54  ;;  %2853 = vmatprep.mubr.bf16.mxu0 %v6998_v35  ;;  %v142_v54 = vld [vmem:[#allocation3 + $0x30] sm:$0xff] }
 0x123   :  { %2862 = vmatprep.subr.bf16.mxu0 %v5682_v56  ;;  %2810 = vmatprep.subr.bf16.mxu1 %v5944_v57  ;;  %v266_v56 = vld [vmem:[#allocation3 + $0x410] sm:$0xff] }
 0x124   :  { %v270_v57 = vld [vmem:[#allocation3 + $0x430] sm:$0xff] }
 0x125   :  { %2811 = vmatpush2.bf16.msra.mxu1 %v5943_v62  ;;  %v5626_v62 = vcombine.high %v138_v53, %v142_v54  ;;  %v5754_v63 = vcombine.high %v266_v56, %v270_v57  ;;  %v366_v30 = vld [vmem:[#allocation3 + $0x730] sm:$0xff] }
 0x126   :  { %2903 = vmatprep.subr.bf16.mxu1 %v5810_v1  ;;  %v262_v1 = vld [vmem:[#allocation3 + $0x3f0] sm:$0xff]  ;;  %v5850_v34 = vcombine.high %v362_v28, %v366_v30 }
 0x127   :  { %v226_v37 = vld [vmem:[#allocation3 + $0x2d0] sm:$0xff] }
 0x128   :  { %2813 = vmatmul.mubr.bf16.vlgmr.msra.gmra.mxu1 %v7115_v36  ;;  %v354_v40 = vld [vmem:[#allocation3 + $0x6d0] sm:$0xff] }
 0x129   :  { %6014 = vmatmul.mubr.msk.bf16.vlgmr.msra.gmra.mxu0 %vm2530_vm0, %v7107_v38  ;;  %2904 = vmatpush1.bf16.msra.mxu1 %v5809_v5  ;;  %v5753_v5 = vcombine.low %v266_v56, %v270_v57  ;;  %v358_v41 = vld [vmem:[#allocation3 + $0x6f0] sm:$0xff] }
 0x12a   :  { %2863 = vmatpush1.bf16.msra.mxu0 %v5681_v4  ;;  %2905 = vmatprep.subr.bf16.mxu1 %v5802_v9  ;;  %v5625_v4 = vcombine.low %v138_v53, %v142_v54  ;;  %v254_v9 = vld [vmem:[#allocation3 + $0x3b0] sm:$0xff]  ;;  %v5842_v46 = vcombine.high %v354_v40, %v358_v41  ;;  %v5841_v53 = vcombine.low %v354_v40, %v358_v41  ;;  %v199_v40 = vld [vmem:[#allocation3 + $0x1f8] sm:$0xff] }
 0x12b   :  { %2864 = vmatprep.subr.bf16.mxu0 %v5674_v6  ;;  %2894 = vmatprep.mubr.bf16.mxu0 %v7079_v59  ;;  %v5746_v6 = vcombine.high %v258_v0, %v262_v1  ;;  %v222_v48 = vld [vmem:[#allocation3 + $0x2b0] sm:$0xff] }
 0x12c   :  { %2935 = vmatprep.mubr.bf16.mxu1 %v7081_v60  ;;  %v346_v49 = vld [vmem:[#allocation3 + $0x690] sm:$0xff] }
 0x12d   :  { %2906 = vmatpush1.bf16.msra.mxu1 %v5801_v13  ;;  %v5873_v13 = vcombine.low %v386_v2, %v390_v3  ;;  %v210_v56 = vld [vmem:[#allocation3 + $0x250] sm:$0xff]  ;;  %v7133_v2 = vld [vmem:[#allocation5] sm:$0xff] }
 0x12e   :  { %2865 = vmatpush1.bf16.msra.mxu0 %v5673_v12  ;;  %2907 = vmatprep.subr.bf16.mxu1 %v5794_v18  ;;  %v5745_v12 = vcombine.low %v258_v0, %v262_v1  ;;  %v246_v18 = vld [vmem:[#allocation3 + $0x370] sm:$0xff] }
 0x12f   :  { %2866 = vmatprep.subr.bf16.mxu0 %v5666_v14  ;;  %v5738_v14 = vcombine.high %v250_v8, %v254_v9  ;;  %v214_v57 = vld [vmem:[#allocation3 + $0x270] sm:$0xff] }
 0x130   :  { %v5698_v1 = vcombine.high %v210_v56, %v214_v57 }
 0x131   :  { %2908 = vmatpush1.bf16.msra.mxu1 %v5793_v23  ;;  %v5865_v23 = vcombine.low %v378_v10, %v382_v11 }
 0x132   :  { %2867 = vmatpush1.bf16.msra.mxu0 %v5665_v22  ;;  %2909 = vmatprep.subr.bf16.mxu1 %v5786_v27  ;;  %v5737_v22 = vcombine.low %v250_v8, %v254_v9  ;;  %v238_v27 = vld [vmem:[#allocation3 + $0x330] sm:$0xff]  ;;  %v5697_v9 = vcombine.low %v210_v56, %v214_v57 }
 0x133   :  { %2868 = vmatprep.subr.bf16.mxu0 %v5658_v24  ;;  %v5730_v24 = vcombine.high %v242_v16, %v246_v18  ;;  %v334_v8 = vld [vmem:[#allocation3 + $0x630] sm:$0xff] }
 0x134   :  { %v426_v56 = vld [vmem:[#allocation3 + $0x910] sm:$0xff] }
 0x135   :  { %2910 = vmatpush1.bf16.msra.mxu1 %v5785_v32  ;;  %v5857_v32 = vcombine.low %v370_v19, %v374_v21  ;;  %v522_v19 = vld [vmem:[#allocation3 + $0xc10] sm:$0xff] }
 0x136   :  { %2869 = vmatpush1.bf16.msra.mxu0 %v5657_v31  ;;  %2911 = vmatprep.subr.bf16.mxu1 %v5778_v39  ;;  %v5729_v31 = vcombine.low %v242_v16, %v246_v18  ;;  %v230_v39 = vld [vmem:[#allocation3 + $0x2f0] sm:$0xff] }
 0x137   :  { %2870 = vmatprep.subr.bf16.mxu0 %v5650_v33  ;;  %v5722_v33 = vcombine.high %v234_v26, %v238_v27  ;;  %v5714_v45 = vcombine.high %v226_v37, %v230_v39  ;;  %v454_v16 = vld [vmem:[#allocation3 + $0x9f0] sm:$0xff] }
 0x138   :  { %v526_v21 = vld [vmem:[#allocation3 + $0xc30] sm:$0xff] }
 0x139   :  { %2912 = vmatpush1.bf16.msra.mxu1 %v5777_v43  ;;  %v530_v43 = vlaneseq  ;;  %v430_v57 = vld [vmem:[#allocation3 + $0x930] sm:$0xff] }
 0x13a   :  { %2871 = vmatpush1.bf16.msra.mxu0 %v5649_v42  ;;  %2913 = vmatprep.subr.bf16.mxu1 %v5770_v47  ;;  %v5721_v42 = vcombine.low %v234_v26, %v238_v27  ;;  %v218_v47 = vld [vmem:[#allocation3 + $0x290] sm:$0xff] }
 0x13b   :  { %2872 = vmatprep.subr.bf16.mxu0 %v5642_v44  ;;  %v5849_v44 = vcombine.low %v362_v28, %v366_v30  ;;  %v5706_v54 = vcombine.high %v218_v47, %v222_v48 }
 0x13d   :  { %2914 = vmatpush1.bf16.msra.mxu1 %v5769_v51  ;;  %v5713_v51 = vcombine.low %v226_v37, %v230_v39  ;;  %v195_v39 = vld [vmem:[#allocation3 + $0x1d8] sm:$0xff] }
 0x13e   :  { %2873 = vmatpush1.bf16.msra.mxu0 %v5641_v50  ;;  %2915 = vmatprep.subr.bf16.mxu1 %v5762_v55  ;;  %v350_v50 = vld [vmem:[#allocation3 + $0x6b0] sm:$0xff] }
 0x13f   :  { %2874 = vmatprep.subr.bf16.mxu0 %v5634_v52  ;;  %v7128_v52 = vshrl.u32 %v530_v43, 7  ;;  %v5834_v55 = vcombine.high %v346_v49, %v350_v50  ;;  %v5833_v0 = vcombine.low %v346_v49, %v350_v50  ;;  %v434_v49 = vld [vmem:[#allocation3 + $0x950] sm:$0xff] }
 0x140   :  { %v438_v50 = vld [vmem:[#allocation3 + $0x970] sm:$0xff] }
 0x141   :  { %2916 = vmatpush1.bf16.msra.mxu1 %v5761_v61  ;;  %v342_v61 = vld [vmem:[#allocation3 + $0x670] sm:$0xff] }
 0x142   :  { %2875 = vmatpush1.bf16.msra.mxu0 %v5633_v58  ;;  %2917 = vmatprep.subr.bf16.mxu1 %v5754_v63  ;;  %v338_v58 = vld [vmem:[#allocation3 + $0x650] sm:$0xff]  ;;  %v7131_v63 = vsub.s32 0, %v7128_v52 }
 0x143   :  { %2876 = vmatprep.subr.bf16.mxu0 %v5626_v62  ;;  %v5705_v62 = vcombine.low %v218_v47, %v222_v48  ;;  %v5826_v3 = vcombine.high %v338_v58, %v342_v61  ;;  %v5825_v11 = vcombine.low %v338_v58, %v342_v61  ;;  %v5684_v48 = vcombine.high %v195_v39, %v199_v40  ;;  %v187_v58 = vld [vmem:[#allocation3 + $0x198] sm:$0xff] }
 0x144   :  { %v533_v10 = vrot.slane %v7133_v2, %v7131_v63  ;;  %v191_v61 = vld [vmem:[#allocation3 + $0x1b8] sm:$0xff] }
 0x145   :  { %2918 = vmatpush1.bf16.msra.mxu1 %v5753_v5  ;;  %v202_v5 = vld [vmem:[#allocation3 + $0x210] sm:$0xff] }
 0x146   :  { %2877 = vmatpush1.bf16.msra.mxu0 %v5625_v4  ;;  %2919 = vmatprep.subr.bf16.mxu1 %v5874_v7  ;;  %v7136_v4 = vsub.s32 1, %v7128_v52  ;;  %v330_v7 = vld [vmem:[#allocation3 + $0x610] sm:$0xff] }
 0x147   :  { %2878 = vmatprep.subr.bf16.mxu0 %v5746_v6  ;;  %v206_v6 = vld [vmem:[#allocation3 + $0x230] sm:$0xff]  ;;  %v5817_v26 = vcombine.low %v330_v7, %v334_v8 }
 0x149   :  { %2920 = vmatpush2.bf16.msra.mxu1 %v5873_v13  ;;  %v537_v13 = vrot.slane %v7133_v2, %v7136_v4 }
 0x14a   :  { %2879 = vmatpush2.bf16.msra.mxu0 %v5745_v12  ;;  %2921 = vmatprep.subr.bf16.mxu1 %v5866_v15  ;;  %v5690_v12 = vcombine.high %v202_v5, %v206_v6  ;;  %v450_v15 = vld [vmem:[#allocation3 + $0x9d0] sm:$0xff] }
 0x14b   :  { %2880 = vmatprep.subr.bf16.mxu0 %v5738_v14  ;;  %v5818_v14 = vcombine.high %v330_v7, %v334_v8  ;;  %v5938_v27 = vcombine.high %v450_v15, %v454_v16  ;;  %v5937_v43 = vcombine.low %v450_v15, %v454_v16  ;;  %v418_v7 = vld [vmem:[#allocation3 + $0x8d0] sm:$0xff] }
 0x14c   :  { %v422_v8 = vld [vmem:[#allocation3 + $0x8f0] sm:$0xff] }
 0x14d   :  { %2922 = vmatpush2.bf16.msra.mxu1 %v5865_v23  ;;  %v410_v15 = vld [vmem:[#allocation3 + $0x890] sm:$0xff] }
 0x14e   :  { %2881 = vmatpush2.bf16.msra.mxu0 %v5737_v22  ;;  %2923 = vmatprep.subr.bf16.mxu1 %v5858_v25  ;;  %v414_v16 = vld [vmem:[#allocation3 + $0x8b0] sm:$0xff] }
 0x14f   :  { %2882 = vmatprep.subr.bf16.mxu0 %v5730_v24  ;;  %v5689_v24 = vcombine.low %v202_v5, %v206_v6  ;;  %v5676_v6 = vcombine.high %v187_v58, %v191_v61 }
 0x151   :  { %2924 = vmatpush2.bf16.msra.mxu1 %v5857_v32  ;;  %v6010_v32 = vcombine.high %v522_v19, %v526_v21 }
 0x152   :  { %2883 = vmatpush2.bf16.msra.mxu0 %v5729_v31  ;;  %2925 = vmatprep.subr.bf16.mxu1 %v5850_v34  ;;  %v446_v34 = vld [vmem:[#allocation3 + $0x9b0] sm:$0xff] }
 0x153   :  { %2884 = vmatprep.subr.bf16.mxu0 %v5722_v33  ;;  %v442_v33 = vld [vmem:[#allocation3 + $0x990] sm:$0xff] }
 0x155   :  { %2926 = vmatpush2.bf16.msra.mxu1 %v5849_v44 }
 0x156   :  { %2885 = vmatpush2.bf16.msra.mxu0 %v5721_v42  ;;  %2927 = vmatprep.subr.bf16.mxu1 %v5842_v46  ;;  %v5930_v46 = vcombine.high %v442_v33, %v446_v34 }
 0x157   :  { %2886 = vmatprep.subr.bf16.mxu0 %v5714_v45  ;;  %v6009_v45 = vcombine.low %v522_v19, %v526_v21  ;;  %v175_v19 = vld [vmem:[#allocation3 + $0x138] sm:$0xff]  ;;  %v5905_v21 = vcombine.low %v418_v7, %v422_v8 }
 0x159   :  { %2928 = vmatpush2.bf16.msra.mxu1 %v5841_v53  ;;  %v5929_v53 = vcombine.low %v442_v33, %v446_v34  ;;  %v394_v34 = vld [vmem:[#allocation3 + $0x810] sm:$0xff] }
 0x15a   :  { %2887 = vmatpush2.bf16.msra.mxu0 %v5713_v51  ;;  %2929 = vmatprep.subr.bf16.mxu1 %v5834_v55 }
 0x15b   :  { %2888 = vmatprep.subr.bf16.mxu0 %v5706_v54  ;;  %v5922_v54 = vcombine.high %v434_v49, %v438_v50 }
 0x15d   :  { %2930 = vmatpush2.bf16.msra.mxu1 %v5833_v0  ;;  %v5921_v0 = vcombine.low %v434_v49, %v438_v50  ;;  %v151_v49 = vld [vmem:[#allocation3 + $0x78] sm:$0xff] }
 0x15e   :  { %2889 = vmatpush2.bf16.msra.mxu0 %v5705_v62  ;;  %2931 = vmatprep.subr.bf16.mxu1 %v5826_v3  ;;  %v5914_v3 = vcombine.high %v426_v56, %v430_v57 }
 0x15f   :  { %2890 = vmatprep.subr.bf16.mxu0 %v5698_v1  ;;  %v5683_v1 = vcombine.low %v195_v39, %v199_v40  ;;  %v155_v39 = vld [vmem:[#allocation3 + $0x98] sm:$0xff] }
 0x160   :  { %v2609_v23 = vpop.f32.mrf.mxu1  ;;  %v159_v40 = vld [vmem:[#allocation3 + $0xb8] sm:$0xff] }
 0x161   :  { %v2568_v18 = vpop.f32.mrf.mxu0  ;;  %2932 = vmatpush2.bf16.msra.mxu1 %v5825_v11  ;;  %v5913_v11 = vcombine.low %v426_v56, %v430_v57  ;;  %v506_v57 = vld [vmem:[#allocation3 + $0xb90] sm:$0xff] }
 0x162   :  { %v2569_v22 = vadd.f32 %v2568_v18, %v533_v10  ;;  %2891 = vmatpush2.bf16.msra.mxu0 %v5697_v9  ;;  %v2611_v31 = vpop.f32.mrf.mxu1  ;;  %2933 = vmatprep.subr.bf16.mxu1 %v5818_v14  ;;  %v179_v9 = vld [vmem:[#allocation3 + $0x158] sm:$0xff] }
 0x163   :  { %v2570_v25 = vpop.f32.mrf.mxu0  ;;  %2892 = vmatprep.subr.bf16.mxu0 %v5690_v12  ;;  %v183_v10 = vld [vmem:[#allocation3 + $0x178] sm:$0xff]  ;;  %v5675_v12 = vcombine.low %v187_v58, %v191_v61  ;;  %v510_v58 = vld [vmem:[#allocation3 + $0xbb0] sm:$0xff] }
 0x164   :  { %v7142_v28 = vadd.f32 %v2609_v23, %v2569_v22  ;;  %v2571_v30 = vadd.f32 %v2570_v25, %v537_v13  ;;  %v2613_v42 = vpop.f32.mrf.mxu1  ;;  %v5906_v13 = vcombine.high %v418_v7, %v422_v8  ;;  %v5668_v14 = vcombine.high %v179_v9, %v183_v10  ;;  %v171_v18 = vld [vmem:[#allocation3 + $0x118] sm:$0xff]  ;;  %v402_v25 = vld [vmem:[#allocation3 + $0x850] sm:$0xff] }
 0x165   :  { %v2572_v37 = vpop.f32.mrf.mxu0  ;;  %2934 = vmatpush2.bf16.msra.mxu1 %v5817_v26  ;;  %v5667_v22 = vcombine.low %v179_v9, %v183_v10  ;;  %v5898_v23 = vcombine.high %v410_v15, %v414_v16  ;;  %v406_v26 = vld [vmem:[#allocation3 + $0x870] sm:$0xff]  ;;  %v139_v61 = vld [vmem:[#allocation3 + $0x18] sm:$0xff]  ;;  %v5993_v10 = vcombine.low %v506_v57, %v510_v58 }
 0x166   :  { %v7144_v41 = vadd.f32 %v2611_v31, %v2571_v30  ;;  %2893 = vmatpush2.bf16.msra.mxu0 %v5689_v24  ;;  %v2614_v47 = vpop.f32.mrf.mxu1  ;;  %2999 = vmatprep.subr.bf16.mxu1 %v6010_v32  ;;  %v5660_v24 = vcombine.high %v171_v18, %v175_v19  ;;  %v167_v30 = vld [vmem:[#allocation3 + $0xf8] sm:$0xff]  ;;  %v5897_v31 = vcombine.low %v410_v15, %v414_v16  ;;  %v398_v37 = vld [vmem:[#allocation3 + $0x830] sm:$0xff] }
 0x167   :  { %v2573_v44 = vpop.f32.mrf.mxu0  ;;  %2944 = vmatprep.subr.bf16.mxu0 %v5938_v27  ;;  %v163_v27 = vld [vmem:[#allocation3 + $0xd8] sm:$0xff]  ;;  %v5659_v32 = vcombine.low %v171_v18, %v175_v19  ;;  %v5889_v42 = vcombine.low %v402_v25, %v406_v26  ;;  %v518_v47 = vld [vmem:[#allocation3 + $0xbf0] sm:$0xff]  ;;  %v5881_v50 = vcombine.low %v394_v34, %v398_v37 }
 0x168   :  { %2936 = vmatmul.mubr.bf16.vlgmr.msra.gmra.mxu1 %v7093_v20  ;;  %v7148_v51 = vpop.f32.mrf.mxu1  ;;  %v5652_v33 = vcombine.high %v163_v27, %v167_v30  ;;  %v5882_v44 = vcombine.high %v394_v34, %v398_v37  ;;  %v502_v7 = vld [vmem:[#allocation3 + $0xb70] sm:$0xff]  ;;  %v259_v8 = vld [vmem:[#allocation3 + $0x3d8] sm:$0xff] }
 0x169   :  { %2895 = vmatmul.mubr.bf16.vlgmr.msra.gmra.mxu0 %v7091_v17  ;;  %3000 = vmatpush1.bf16.msra.mxu1 %v6009_v45  ;;  %v5644_v45 = vcombine.high %v155_v39, %v159_v40  ;;  %v263_v9 = vld [vmem:[#allocation3 + $0x3f8] sm:$0xff]  ;;  %v494_v15 = vld [vmem:[#allocation3 + $0xb30] sm:$0xff] }
 0x16a   :  { %2945 = vmatpush1.bf16.msra.mxu0 %v5937_v43  ;;  %v7150_v55 = vpop.f32.mrf.mxu1  ;;  %3017 = vmatprep.mubr.bf16.mxu1 %v6998_v35  ;;  %v5651_v43 = vcombine.low %v163_v27, %v167_v30  ;;  %v251_v16 = vld [vmem:[#allocation3 + $0x398] sm:$0xff]  ;;  %v478_v34 = vld [vmem:[#allocation3 + $0xab0] sm:$0xff] }
 0x16b   :  { %2946 = vmatprep.subr.bf16.mxu0 %v5930_v46  ;;  %3026 = vmatprep.subr.bf16.mxu1 %v5684_v48  ;;  %v514_v46 = vld [vmem:[#allocation3 + $0xbd0] sm:$0xff]  ;;  %v147_v48 = vld [vmem:[#allocation3 + $0x58] sm:$0xff] }
 0x16c   :  { %2976 = vmatprep.mubr.bf16.mxu0 %v7102_v29  ;;  %v2695_v62 = vpop.f32.mrf.mxu1  ;;  %v5636_v56 = vcombine.high %v147_v48, %v151_v49  ;;  %v255_v18 = vld [vmem:[#allocation3 + $0x3b8] sm:$0xff] }
 0x16d   :  { %v143_v62 = vld [vmem:[#allocation3 + $0x38] sm:$0xff] }
 0x16e   :  { %2947 = vmatpush1.bf16.msra.mxu0 %v5929_v53  ;;  %v2696_v5 = vpop.f32.mrf.mxu1  ;;  %v5643_v53 = vcombine.low %v155_v39, %v159_v40  ;;  %v247_v27 = vld [vmem:[#allocation3 + $0x378] sm:$0xff] }
 0x16f   :  { %2948 = vmatprep.subr.bf16.mxu0 %v5922_v54  ;;  %v6002_v54 = vcombine.high %v514_v46, %v518_v47  ;;  %v5628_v5 = vcombine.high %v139_v61, %v143_v62  ;;  %v235_v37 = vld [vmem:[#allocation3 + $0x318] sm:$0xff] }
 0x170   :  { %6015 = vmatmul.mubr.msk.bf16.vlgmr.msra.gmra.mxu1 %vm2530_vm0, %v7107_v38  ;;  %v239_v39 = vld [vmem:[#allocation3 + $0x338] sm:$0xff] }
 0x171   :  { %3027 = vmatpush1.bf16.msra.mxu1 %v5683_v1  ;;  %3058 = vmatprep.mubr.bf16.mxu1 %v7079_v59  ;;  %v5890_v59 = vcombine.high %v402_v25, %v406_v26  ;;  %v5635_v1 = vcombine.low %v147_v48, %v151_v49  ;;  %v486_v25 = vld [vmem:[#allocation3 + $0xaf0] sm:$0xff]  ;;  %v243_v26 = vld [vmem:[#allocation3 + $0x358] sm:$0xff] }
 0x172   :  { %2949 = vmatpush1.bf16.msra.mxu0 %v5921_v0  ;;  %3028 = vmatprep.subr.bf16.mxu1 %v5676_v6  ;;  %v6001_v0 = vcombine.low %v514_v46, %v518_v47  ;;  %v498_v6 = vld [vmem:[#allocation3 + $0xb50] sm:$0xff]  ;;  %v227_v47 = vld [vmem:[#allocation3 + $0x2d8] sm:$0xff] }
 0x173   :  { %2950 = vmatprep.subr.bf16.mxu0 %v5914_v3  ;;  %v5994_v3 = vcombine.high %v506_v57, %v510_v58  ;;  %v5985_v19 = vcombine.low %v498_v6, %v502_v7  ;;  %v470_v46 = vld [vmem:[#allocation3 + $0xa70] sm:$0xff]  ;;  %v231_v48 = vld [vmem:[#allocation3 + $0x2f8] sm:$0xff] }
 0x174   :  { %v462_v57 = vld [vmem:[#allocation3 + $0xa30] sm:$0xff]  ;;  %v219_v58 = vld [vmem:[#allocation3 + $0x298] sm:$0xff] }
 0x175   :  { %3029 = vmatpush1.bf16.msra.mxu1 %v5675_v12  ;;  %v5986_v12 = vcombine.high %v498_v6, %v502_v7  ;;  %v327_v6 = vld [vmem:[#allocation3 + $0x5f8] sm:$0xff] }
 0x176   :  { %2951 = vmatpush1.bf16.msra.mxu0 %v5913_v11  ;;  %3030 = vmatprep.subr.bf16.mxu1 %v5668_v14  ;;  %v5627_v11 = vcombine.low %v139_v61, %v143_v62  ;;  %v490_v14 = vld [vmem:[#allocation3 + $0xb10] sm:$0xff]  ;;  %v223_v61 = vld [vmem:[#allocation3 + $0x2b8] sm:$0xff] }
 0x177   :  { %2952 = vmatprep.subr.bf16.mxu0 %v5906_v13  ;;  %v5748_v13 = vcombine.high %v259_v8, %v263_v9  ;;  %v5977_v30 = vcombine.low %v490_v14, %v494_v15 }
 0x179   :  { %3031 = vmatpush1.bf16.msra.mxu1 %v5667_v22  ;;  %v5978_v22 = vcombine.high %v490_v14, %v494_v15 }
 0x17a   :  { %2953 = vmatpush1.bf16.msra.mxu0 %v5905_v21  ;;  %3032 = vmatprep.subr.bf16.mxu1 %v5660_v24  ;;  %v5747_v21 = vcombine.low %v259_v8, %v263_v9  ;;  %v482_v24 = vld [vmem:[#allocation3 + $0xad0] sm:$0xff]  ;;  %v211_v8 = vld [vmem:[#allocation3 + $0x258] sm:$0xff] }
 0x17b   :  { %2954 = vmatprep.subr.bf16.mxu0 %v5898_v23  ;;  %v5740_v23 = vcombine.high %v251_v16, %v255_v18  ;;  %v5969_v40 = vcombine.low %v482_v24, %v486_v25  ;;  %v215_v9 = vld [vmem:[#allocation3 + $0x278] sm:$0xff] }
 0x17d   :  { %3033 = vmatpush1.bf16.msra.mxu1 %v5659_v32  ;;  %v5970_v32 = vcombine.high %v482_v24, %v486_v25  ;;  %v207_v24 = vld [vmem:[#allocation3 + $0x238] sm:$0xff] }
 0x17e   :  { %2955 = vmatpush1.bf16.msra.mxu0 %v5897_v31  ;;  %3034 = vmatprep.subr.bf16.mxu1 %v5652_v33  ;;  %v5739_v31 = vcombine.low %v251_v16, %v255_v18  ;;  %v474_v33 = vld [vmem:[#allocation3 + $0xa90] sm:$0xff]  ;;  %v5700_v18 = vcombine.high %v211_v8, %v215_v9 }
 0x17f   :  { %2956 = vmatprep.subr.bf16.mxu0 %v5890_v59  ;;  %v5732_v59 = vcombine.high %v243_v26, %v247_v27  ;;  %v5961_v49 = vcombine.low %v474_v33, %v478_v34 }
 0x181   :  { %3035 = vmatpush1.bf16.msra.mxu1 %v5651_v43  ;;  %v5962_v43 = vcombine.high %v474_v33, %v478_v34 }
 0x182   :  { %2957 = vmatpush1.bf16.msra.mxu0 %v5889_v42  ;;  %3036 = vmatprep.subr.bf16.mxu1 %v5644_v45  ;;  %v5731_v42 = vcombine.low %v243_v26, %v247_v27  ;;  %v466_v45 = vld [vmem:[#allocation3 + $0xa50] sm:$0xff]  ;;  %v5699_v27 = vcombine.low %v211_v8, %v215_v9 }
 0x183   :  { %2958 = vmatprep.subr.bf16.mxu0 %v5882_v44  ;;  %v5724_v44 = vcombine.high %v235_v37, %v239_v39  ;;  %v5953_v62 = vcombine.low %v466_v45, %v470_v46 }
 0x185   :  { %3037 = vmatpush1.bf16.msra.mxu1 %v5643_v53  ;;  %v5954_v53 = vcombine.high %v466_v45, %v470_v46  ;;  %v447_v45 = vld [vmem:[#allocation3 + $0x9b8] sm:$0xff] }
 0x186   :  { %2959 = vmatpush1.bf16.msra.mxu0 %v5881_v50  ;;  %3038 = vmatprep.subr.bf16.mxu1 %v5636_v56  ;;  %v5723_v50 = vcombine.low %v235_v37, %v239_v39  ;;  %v458_v56 = vld [vmem:[#allocation3 + $0xa10] sm:$0xff] }
 0x187   :  { %2960 = vmatprep.subr.bf16.mxu0 %v6002_v54  ;;  %v5716_v54 = vcombine.high %v227_v47, %v231_v48 }
 0x189   :  { %3039 = vmatpush1.bf16.msra.mxu1 %v5635_v1  ;;  %v5946_v1 = vcombine.high %v458_v56, %v462_v57 }
 0x18a   :  { %2961 = vmatpush2.bf16.msra.mxu0 %v6001_v0  ;;  %3040 = vmatprep.subr.bf16.mxu1 %v5628_v5  ;;  %v5715_v0 = vcombine.low %v227_v47, %v231_v48  ;;  %v323_v5 = vld [vmem:[#allocation3 + $0x5d8] sm:$0xff] }
 0x18b   :  { %2962 = vmatprep.subr.bf16.mxu0 %v5994_v3  ;;  %v5708_v3 = vcombine.high %v219_v58, %v223_v61  ;;  %v5812_v14 = vcombine.high %v323_v5, %v327_v6  ;;  %v5811_v25 = vcombine.low %v323_v5, %v327_v6  ;;  %v427_v5 = vld [vmem:[#allocation3 + $0x918] sm:$0xff] }
 0x18c   :  { %v431_v6 = vld [vmem:[#allocation3 + $0x938] sm:$0xff] }
 0x18d   :  { %3041 = vmatpush1.bf16.msra.mxu1 %v5627_v11  ;;  %v5945_v11 = vcombine.low %v458_v56, %v462_v57  ;;  %v435_v56 = vld [vmem:[#allocation3 + $0x958] sm:$0xff]  ;;  %v5916_v9 = vcombine.high %v427_v5, %v431_v6 }
 0x18e   :  { %2963 = vmatpush2.bf16.msra.mxu0 %v5993_v10  ;;  %3042 = vmatprep.subr.bf16.mxu1 %v5748_v13  ;;  %v5707_v13 = vcombine.low %v219_v58, %v223_v61  ;;  %v439_v57 = vld [vmem:[#allocation3 + $0x978] sm:$0xff] }
 0x18f   :  { %2964 = vmatprep.subr.bf16.mxu0 %v5986_v12  ;;  %v5923_v8 = vcombine.low %v435_v56, %v439_v57 }
 0x191   :  { %3043 = vmatpush2.bf16.msra.mxu1 %v5747_v21  ;;  %v319_v21 = vld [vmem:[#allocation3 + $0x5b8] sm:$0xff] }
 0x192   :  { %2965 = vmatpush2.bf16.msra.mxu0 %v5985_v19  ;;  %3044 = vmatprep.subr.bf16.mxu1 %v5740_v23  ;;  %v315_v19 = vld [vmem:[#allocation3 + $0x598] sm:$0xff] }
 0x193   :  { %2966 = vmatprep.subr.bf16.mxu0 %v5978_v22  ;;  %v203_v23 = vld [vmem:[#allocation3 + $0x218] sm:$0xff] }
 0x194   :  { %v5691_v34 = vcombine.low %v203_v23, %v207_v24 }
 0x195   :  { %3045 = vmatpush2.bf16.msra.mxu1 %v5739_v31  ;;  %v311_v31 = vld [vmem:[#allocation3 + $0x578] sm:$0xff] }
 0x196   :  { %2967 = vmatpush2.bf16.msra.mxu0 %v5977_v30  ;;  %3046 = vmatprep.subr.bf16.mxu1 %v5732_v59  ;;  %v5692_v30 = vcombine.high %v203_v23, %v207_v24  ;;  %v455_v59 = vld [vmem:[#allocation3 + $0x9f8] sm:$0xff] }
 0x197   :  { %2968 = vmatprep.subr.bf16.mxu0 %v5970_v32  ;;  %v451_v32 = vld [vmem:[#allocation3 + $0x9d8] sm:$0xff] }
 0x198   :  { %v5939_v48 = vcombine.low %v451_v32, %v455_v59  ;;  %v415_v23 = vld [vmem:[#allocation3 + $0x8b8] sm:$0xff] }
 0x199   :  { %3047 = vmatpush2.bf16.msra.mxu1 %v5731_v42  ;;  %v299_v42 = vld [vmem:[#allocation3 + $0x518] sm:$0xff] }
 0x19a   :  { %2969 = vmatpush2.bf16.msra.mxu0 %v5969_v40  ;;  %3048 = vmatprep.subr.bf16.mxu1 %v5724_v44  ;;  %v5940_v40 = vcombine.high %v451_v32, %v455_v59  ;;  %v443_v44 = vld [vmem:[#allocation3 + $0x998] sm:$0xff] }
 0x19b   :  { %2970 = vmatprep.subr.bf16.mxu0 %v5962_v43  ;;  %v303_v43 = vld [vmem:[#allocation3 + $0x538] sm:$0xff]  ;;  %v5931_v61 = vcombine.low %v443_v44, %v447_v45 }
 0x19c   :  { %v5787_v58 = vcombine.low %v299_v42, %v303_v43 }
 0x19d   :  { %3049 = vmatpush2.bf16.msra.mxu1 %v5723_v50  ;;  %v5932_v50 = vcombine.high %v443_v44, %v447_v45 }
 0x19e   :  { %2971 = vmatpush2.bf16.msra.mxu0 %v5961_v49  ;;  %3050 = vmatprep.subr.bf16.mxu1 %v5716_v54  ;;  %v5788_v49 = vcombine.high %v299_v42, %v303_v43  ;;  %v295_v54 = vld [vmem:[#allocation3 + $0x4f8] sm:$0xff] }
 0x19f   :  { %2972 = vmatprep.subr.bf16.mxu0 %v5954_v53  ;;  %v291_v53 = vld [vmem:[#allocation3 + $0x4d8] sm:$0xff] }
 0x1a0   :  { %v395_v42 = vld [vmem:[#allocation3 + $0x818] sm:$0xff] }
 0x1a1   :  { %v2650_v7 = vpop.f32.mrf.mxu0  ;;  %3051 = vmatpush2.bf16.msra.mxu1 %v5715_v0  ;;  %v5924_v0 = vcombine.high %v435_v56, %v439_v57  ;;  %v399_v43 = vld [vmem:[#allocation3 + $0x838] sm:$0xff] }
 0x1a2   :  { %v2651_v10 = vadd.f32 %v2650_v7, %v7142_v28  ;;  %2973 = vmatpush2.bf16.msra.mxu0 %v5953_v62  ;;  %3052 = vmatprep.subr.bf16.mxu1 %v5708_v3  ;;  %v5780_v62 = vcombine.high %v291_v53, %v295_v54  ;;  %v287_v3 = vld [vmem:[#allocation3 + $0x4b8] sm:$0xff]  ;;  %v5779_v7 = vcombine.low %v291_v53, %v295_v54 }
 0x1a3   :  { %v2652_v12 = vpop.f32.mrf.mxu0  ;;  %2974 = vmatprep.subr.bf16.mxu0 %v5946_v1  ;;  %v283_v1 = vld [vmem:[#allocation3 + $0x498] sm:$0xff]  ;;  %v5883_v54 = vcombine.low %v395_v42, %v399_v43 }
 0x1a4   :  { %v7159_v15 = vadd.f32 %v7148_v51, %v2651_v10  ;;  %v2653_v16 = vadd.f32 %v2652_v12, %v7144_v41  ;;  %v5804_v51 = vcombine.high %v315_v19, %v319_v21  ;;  %v307_v41 = vld [vmem:[#allocation3 + $0x558] sm:$0xff] }
 0x1a5   :  { %v2654_v22 = vpop.f32.mrf.mxu0  ;;  %3053 = vmatpush2.bf16.msra.mxu1 %v5707_v13  ;;  %v5796_v37 = vcombine.high %v307_v41, %v311_v31  ;;  %v5795_v47 = vcombine.low %v307_v41, %v311_v31  ;;  %v275_v10 = vld [vmem:[#allocation3 + $0x458] sm:$0xff] }
 0x1a6   :  { %v7163_v28 = vadd.f32 %v7150_v55, %v2653_v16  ;;  %2975 = vmatpush2.bf16.msra.mxu0 %v5945_v11  ;;  %3054 = vmatprep.subr.bf16.mxu1 %v5700_v18  ;;  %v5803_v55 = vcombine.low %v315_v19, %v319_v21  ;;  %v279_v11 = vld [vmem:[#allocation3 + $0x478] sm:$0xff]  ;;  %v5915_v16 = vcombine.low %v427_v5, %v431_v6 }
 0x1a7   :  { %v2655_v26 = vpop.f32.mrf.mxu0  ;;  %3067 = vmatprep.subr.bf16.mxu0 %v5812_v14  ;;  %v419_v12 = vld [vmem:[#allocation3 + $0x8d8] sm:$0xff]  ;;  %v5771_v14 = vcombine.low %v283_v1, %v287_v3  ;;  %v5763_v24 = vcombine.low %v275_v10, %v279_v11 }
 0x1a8   :  { %v7166_v33 = vpop.f32.mrf.mxu1  ;;  %v423_v13 = vld [vmem:[#allocation3 + $0x8f8] sm:$0xff] }
 0x1a9   :  { %2977 = vmatmul.mubr.bf16.vlgmr.msra.gmra.mxu0 %v7115_v36  ;;  %3055 = vmatpush2.bf16.msra.mxu1 %v5699_v27  ;;  %v5908_v18 = vcombine.high %v419_v12, %v423_v13  ;;  %v267_v19 = vld [vmem:[#allocation3 + $0x418] sm:$0xff] }
 0x1aa   :  { %3068 = vmatpush1.bf16.msra.mxu0 %v5811_v25  ;;  %3099 = vmatprep.mubr.bf16.mxu0 %v7081_v60  ;;  %v7169_v39 = vpop.f32.mrf.mxu1  ;;  %v271_v21 = vld [vmem:[#allocation3 + $0x438] sm:$0xff]  ;;  %v5907_v25 = vcombine.low %v419_v12, %v423_v13 }
 0x1ab   :  { %3069 = vmatprep.subr.bf16.mxu0 %v5804_v51  ;;  %3056 = vmatprep.subr.bf16.mxu1 %v5692_v30  ;;  %v411_v22 = vld [vmem:[#allocation3 + $0x898] sm:$0xff]  ;;  %v5756_v26 = vcombine.high %v267_v19, %v271_v21  ;;  %v5755_v32 = vcombine.low %v267_v19, %v271_v21 }
 0x1ac   :  { %v2736_v46 = vpop.f32.mrf.mxu1  ;;  %v5900_v27 = vcombine.high %v411_v22, %v415_v23  ;;  %v387_v51 = vld [vmem:[#allocation3 + $0x7d8] sm:$0xff]  ;;  %v5899_v59 = vcombine.low %v411_v22, %v415_v23  ;;  %v540_v23 = vsub.s32 2, %v7128_v52 }
 0x1ad   :  { %3057 = vmatpush2.bf16.msra.mxu1 %v5691_v34  ;;  %v391_v30 = vld [vmem:[#allocation3 + $0x7f8] sm:$0xff] }
 0x1ae   :  { %3070 = vmatpush1.bf16.msra.mxu0 %v5803_v55  ;;  %v2737_v60 = vpop.f32.mrf.mxu1  ;;  %3108 = vmatprep.subr.bf16.mxu1 %v5940_v40  ;;  %v403_v41 = vld [vmem:[#allocation3 + $0x858] sm:$0xff]  ;;  %v5876_v55 = vcombine.high %v387_v51, %v391_v30  ;;  %v5875_v44 = vcombine.low %v387_v51, %v391_v30 }
 0x1af   :  { %3071 = vmatprep.subr.bf16.mxu0 %v5796_v37  ;;  %v407_v31 = vld [vmem:[#allocation3 + $0x878] sm:$0xff] }
 0x1b0   :  { %3059 = vmatmul.mubr.bf16.vlgmr.msra.gmra.mxu1 %v7091_v17  ;;  %v5772_v17 = vcombine.high %v283_v1, %v287_v3  ;;  %v5892_v34 = vcombine.high %v403_v41, %v407_v31  ;;  %v379_v37 = vld [vmem:[#allocation3 + $0x798] sm:$0xff]  ;;  %v5891_v45 = vcombine.low %v403_v41, %v407_v31 }
 0x1b1   :  { %3109 = vmatpush1.bf16.msra.mxu1 %v5939_v48  ;;  %3140 = vmatprep.mubr.bf16.mxu1 %v7102_v29  ;;  %v5764_v29 = vcombine.high %v275_v10, %v279_v11  ;;  %v383_v40 = vld [vmem:[#allocation3 + $0x7b8] sm:$0xff] }
 0x1b2   :  { %3072 = vmatpush1.bf16.msra.mxu0 %v5795_v47  ;;  %3110 = vmatprep.subr.bf16.mxu1 %v5932_v50  ;;  %v5868_v46 = vcombine.high %v379_v37, %v383_v40  ;;  %v5884_v47 = vcombine.high %v395_v42, %v399_v43  ;;  %v371_v48 = vld [vmem:[#allocation3 + $0x758] sm:$0xff]  ;;  %v5867_v53 = vcombine.low %v379_v37, %v383_v40 }
 0x1b3   :  { %3073 = vmatprep.subr.bf16.mxu0 %v5788_v49  ;;  %v375_v49 = vld [vmem:[#allocation3 + $0x778] sm:$0xff] }
 0x1b4   :  { %v515_v60 = vld [vmem:[#allocation3 + $0xbd8] sm:$0xff]  ;;  %v5860_v56 = vcombine.high %v371_v48, %v375_v49  ;;  %v5859_v1 = vcombine.low %v371_v48, %v375_v49  ;;  %v544_v49 = vsub.s32 3, %v7128_v52 }
 0x1b5   :  { %3111 = vmatpush1.bf16.msra.mxu1 %v5931_v61  ;;  %v519_v50 = vld [vmem:[#allocation3 + $0xbf8] sm:$0xff] }
 0x1b6   :  { %3074 = vmatpush1.bf16.msra.mxu0 %v5787_v58  ;;  %3112 = vmatprep.subr.bf16.mxu1 %v5924_v0  ;;  %v6004_v57 = vcombine.high %v515_v60, %v519_v50  ;;  %v363_v58 = vld [vmem:[#allocation3 + $0x718] sm:$0xff]  ;;  %v6003_v3 = vcombine.low %v515_v60, %v519_v50 }
 0x1b7   :  { %3075 = vmatprep.subr.bf16.mxu0 %v5780_v62  ;;  %v367_v61 = vld [vmem:[#allocation3 + $0x738] sm:$0xff] }
 0x1b8   :  { %v507_v62 = vld [vmem:[#allocation3 + $0xb98] sm:$0xff]  ;;  %v5852_v5 = vcombine.high %v363_v58, %v367_v61  ;;  %v5851_v10 = vcombine.low %v363_v58, %v367_v61 }
 0x1b9   :  { %3113 = vmatpush1.bf16.msra.mxu1 %v5923_v8  ;;  %v511_v0 = vld [vmem:[#allocation3 + $0xbb8] sm:$0xff] }
 0x1ba   :  { %3076 = vmatpush1.bf16.msra.mxu0 %v5779_v7  ;;  %3114 = vmatprep.subr.bf16.mxu1 %v5916_v9  ;;  %v5996_v6 = vcombine.high %v507_v62, %v511_v0  ;;  %v355_v7 = vld [vmem:[#allocation3 + $0x6d8] sm:$0xff]  ;;  %v5995_v11 = vcombine.low %v507_v62, %v511_v0 }
 0x1bb   :  { %3077 = vmatprep.subr.bf16.mxu0 %v5772_v17  ;;  %v359_v8 = vld [vmem:[#allocation3 + $0x6f8] sm:$0xff] }
 0x1bc   :  { %v499_v17 = vld [vmem:[#allocation3 + $0xb58] sm:$0xff]  ;;  %v5844_v12 = vcombine.high %v355_v7, %v359_v8  ;;  %v5843_v19 = vcombine.low %v355_v7, %v359_v8 }
 0x1bd   :  { %3115 = vmatpush1.bf16.msra.mxu1 %v5915_v16  ;;  %v503_v9 = vld [vmem:[#allocation3 + $0xb78] sm:$0xff] }
 0x1be   :  { %3078 = vmatpush1.bf16.msra.mxu0 %v5771_v14  ;;  %3116 = vmatprep.subr.bf16.mxu1 %v5908_v18  ;;  %v5988_v13 = vcombine.high %v499_v17, %v503_v9  ;;  %v347_v14 = vld [vmem:[#allocation3 + $0x698] sm:$0xff]  ;;  %v5987_v21 = vcombine.low %v499_v17, %v503_v9 }
 0x1bf   :  { %3079 = vmatprep.subr.bf16.mxu0 %v5764_v29  ;;  %v351_v16 = vld [vmem:[#allocation3 + $0x6b8] sm:$0xff] }
 0x1c0   :  { %v491_v29 = vld [vmem:[#allocation3 + $0xb18] sm:$0xff]  ;;  %v5836_v22 = vcombine.high %v347_v14, %v351_v16  ;;  %v5835_v30 = vcombine.low %v347_v14, %v351_v16 }
 0x1c1   :  { %3117 = vmatpush1.bf16.msra.mxu1 %v5907_v25  ;;  %v495_v18 = vld [vmem:[#allocation3 + $0xb38] sm:$0xff] }
 0x1c2   :  { %3080 = vmatpush1.bf16.msra.mxu0 %v5763_v24  ;;  %3118 = vmatprep.subr.bf16.mxu1 %v5900_v27  ;;  %v5980_v24 = vcombine.high %v491_v29, %v495_v18  ;;  %v339_v25 = vld [vmem:[#allocation3 + $0x658] sm:$0xff]  ;;  %v5979_v41 = vcombine.low %v491_v29, %v495_v18  ;;  %v3191_v18 = vmax.f32 %v7163_v28, 0.0 }
 0x1c3   :  { %3081 = vmatprep.subr.bf16.mxu0 %v5756_v26  ;;  %v343_v26 = vld [vmem:[#allocation3 + $0x678] sm:$0xff] }
 0x1c4   :  { %v483_v27 = vld [vmem:[#allocation3 + $0xad8] sm:$0xff]  ;;  %v5828_v31 = vcombine.high %v339_v25, %v343_v26  ;;  %v5827_v42 = vcombine.low %v339_v25, %v343_v26 }
 0x1c5   :  { %3119 = vmatpush1.bf16.msra.mxu1 %v5899_v59  ;;  %v487_v51 = vld [vmem:[#allocation3 + $0xaf8] sm:$0xff] }
 0x1c6   :  { %3082 = vmatpush1.bf16.msra.mxu0 %v5755_v32  ;;  %3120 = vmatprep.subr.bf16.mxu1 %v5892_v34  ;;  %v541_v32 = vrot.slane %v7133_v2, %v540_v23  ;;  %v5972_v59 = vcombine.high %v483_v27, %v487_v51  ;;  %v335_v34 = vld [vmem:[#allocation3 + $0x638] sm:$0xff]  ;;  %v5971_v43 = vcombine.low %v483_v27, %v487_v51 }
 0x1c7   :  { %3083 = vmatprep.subr.bf16.mxu0 %v5876_v55  ;;  %v331_v55 = vld [vmem:[#allocation3 + $0x618] sm:$0xff] }
 0x1c8   :  { %v475_v37 = vld [vmem:[#allocation3 + $0xa98] sm:$0xff] }
 0x1c9   :  { %3121 = vmatpush1.bf16.msra.mxu1 %v5891_v45  ;;  %v479_v40 = vld [vmem:[#allocation3 + $0xab8] sm:$0xff]  ;;  %v2733_v45 = vadd.f32 %v7166_v33, %v541_v32  ;;  %v545_v33 = vrot.slane %v7133_v2, %v544_v49 }
 0x1ca   :  { %3084 = vmatpush2.bf16.msra.mxu0 %v5875_v44  ;;  %3122 = vmatprep.subr.bf16.mxu1 %v5884_v47  ;;  %v5820_v44 = vcombine.high %v331_v55, %v335_v34  ;;  %v523_v47 = vld [vmem:[#allocation3 + $0xc18] sm:$0xff]  ;;  %v5963_v58 = vcombine.low %v475_v37, %v479_v40 }
 0x1cb   :  { %3085 = vmatprep.subr.bf16.mxu0 %v5868_v46  ;;  %v5964_v46 = vcombine.high %v475_v37, %v479_v40  ;;  %v527_v48 = vld [vmem:[#allocation3 + $0xc38] sm:$0xff]  ;;  %v2735_v9 = vadd.f32 %v7169_v39, %v545_v33 }
 0x1cc   :  { %v467_v50 = vld [vmem:[#allocation3 + $0xa58] sm:$0xff]  ;;  %v6012_v61 = vcombine.high %v523_v47, %v527_v48 }
 0x1cd   :  { %3123 = vmatpush1.bf16.msra.mxu1 %v5883_v54  ;;  %v6354_v8 = vld [vmem:[#allocation7 + $0xe4] ss:$16 sps:$4 sm:$0xff]   ;;  %v6355_v25 = vld [vmem:[#allocation7 + $0x2e0] ss:$16 sps:$4 sm:$0xff]  }
 0x1ce   :  { %3086 = vmatpush2.bf16.msra.mxu0 %v5867_v53  ;;  %3124 = vmatprep.subr.bf16.mxu1 %v6004_v57  ;;  %v471_v53 = vld [vmem:[#allocation3 + $0xa78] sm:$0xff] }
 0x1cf   :  { %3087 = vmatprep.subr.bf16.mxu0 %v5860_v56  ;;  %v5819_v56 = vcombine.low %v331_v55, %v335_v34  ;;  %v5956_v62 = vcombine.high %v467_v50, %v471_v53  ;;  %v5955_v7 = vcombine.low %v467_v50, %v471_v53  ;;  %v6357_v29 = vld [vmem:[#allocation7 + $0x2e4] ss:$16 sps:$4 sm:$0xff]   ;;  %v6358_v28 = vld [vmem:[#allocation7 + $0xc0] ss:$16 sps:$4 sm:$0xff]  }
 0x1d0   :  { %v6360_v27 = vld [vmem:[#allocation7 + $0xc4] ss:$16 sps:$4 sm:$0xff]   ;;  %v6361_v32 = vld [vmem:[#allocation7 + $0x2c0] ss:$16 sps:$4 sm:$0xff]  }
 0x1d1   :  { %3125 = vmatpush2.bf16.msra.mxu1 %v6003_v3  ;;  %v463_v3 = vld [vmem:[#allocation3 + $0xa38] sm:$0xff] }
 0x1d2   :  { %3088 = vmatpush2.bf16.msra.mxu0 %v5859_v1  ;;  %3126 = vmatprep.subr.bf16.mxu1 %v5996_v6  ;;  %v459_v1 = vld [vmem:[#allocation3 + $0xa18] sm:$0xff] }
 0x1d3   :  { %3089 = vmatprep.subr.bf16.mxu0 %v5852_v5  ;;  %v6011_v5 = vcombine.low %v523_v47, %v527_v48  ;;  %v5948_v17 = vcombine.high %v459_v1, %v463_v3  ;;  %v5947_v14 = vcombine.low %v459_v1, %v463_v3  ;;  %v6363_v51 = vld [vmem:[#allocation7 + $0x2c4] ss:$16 sps:$4 sm:$0xff]   ;;  %v6364_v34 = vld [vmem:[#allocation7 + $0xa0] ss:$16 sps:$4 sm:$0xff]  }
 0x1d4   :  { %v6369_v55 = vld [vmem:[#allocation7 + $0x2a4] ss:$16 sps:$4 sm:$0xff]   ;;  %v6370_v40 = vld [vmem:[#allocation7 + $0x80] ss:$16 sps:$4 sm:$0xff]  }
 0x1d5   :  { %3127 = vmatpush2.bf16.msra.mxu1 %v5995_v11  ;;  %v6375_v37 = vld [vmem:[#allocation7 + $0x284] ss:$16 sps:$4 sm:$0xff]   ;;  %v6385_v50 = vld [vmem:[#allocation7 + $0x240] ss:$16 sps:$4 sm:$0xff]  }
 0x1d6   :  { %3090 = vmatpush2.bf16.msra.mxu0 %v5851_v10  ;;  %3128 = vmatprep.subr.bf16.mxu1 %v5988_v13  ;;  %v6384_v47 = vld [vmem:[#allocation7 + $0x44] ss:$16 sps:$4 sm:$0xff]   ;;  %v6397_v33 = vld [vmem:[#allocation7 + $0x200] ss:$16 sps:$4 sm:$0xff]  }
 0x1d7   :  { %3091 = vmatprep.subr.bf16.mxu0 %v5844_v12  ;;  %v6387_v48 = vld [vmem:[#allocation7 + $0x244] ss:$16 sps:$4 sm:$0xff]   ;;  %v6400_v3 = vld [vmem:[#allocation7 + $0x1e0] ss:$16 sps:$4 sm:$0xff]  }
 0x1d8   :  { %v6390_v53 = vld [vmem:[#allocation7 + $0x24] ss:$16 sps:$4 sm:$0xff]  }
 0x1d9   :  { %3129 = vmatpush2.bf16.msra.mxu1 %v5987_v21  ;;  %v6405_v1 = vld [vmem:[#allocation7 + $0x3e4] ss:$16 sps:$4 sm:$0xff]  }
 0x1da   :  { %3092 = vmatpush2.bf16.msra.mxu0 %v5843_v19  ;;  %3130 = vmatprep.subr.bf16.mxu1 %v5980_v24 }
 0x1db   :  { %3093 = vmatprep.subr.bf16.mxu0 %v5836_v22  ;;  %v6352_v22 = vld [vmem:[#allocation7 + $0xe0] ss:$16 sps:$4 sm:$0xff]  }
 0x1dd   :  { %3131 = vmatpush2.bf16.msra.mxu1 %v5979_v41 }
 0x1de   :  { %3094 = vmatpush2.bf16.msra.mxu0 %v5835_v30  ;;  %3132 = vmatprep.subr.bf16.mxu1 %v5972_v59  ;;  %v7188_v30 = vpack.c.bf16 %v3191_v18, %v3191_v18  ;;  %v6366_v59 = vld [vmem:[#allocation7 + $0xa4] ss:$16 sps:$4 sm:$0xff]  }
 0x1df   :  { %3095 = vmatprep.subr.bf16.mxu0 %v5828_v31  ;;  %v6429_v18 = vld [vmem:[#allocation7 + $0x364] ss:$16 sps:$4 sm:$0xff]  }
 0x1e1   :  { %v2773_v60 = vpop.f32.mrf.mxu0  ;;  %3133 = vmatpush2.bf16.msra.mxu1 %v5971_v43  ;;  %v6378_v43 = vld [vmem:[#allocation7 + $0x64] ss:$16 sps:$4 sm:$0xff]  }
 0x1e2   :  { %v2774_v54 = vadd.f32 %v2773_v60, %v2733_v45  ;;  %3096 = vmatpush2.bf16.msra.mxu0 %v5827_v42  ;;  %3134 = vmatprep.subr.bf16.mxu1 %v5964_v46  ;;  %v6373_v42 = vld [vmem:[#allocation7 + $0x280] ss:$16 sps:$4 sm:$0xff]  }
 0x1e3   :  { %v2775_v57 = vpop.f32.mrf.mxu0  ;;  %3097 = vmatprep.subr.bf16.mxu0 %v5820_v44  ;;  %v6381_v44 = vld [vmem:[#allocation7 + $0x264] ss:$16 sps:$4 sm:$0xff]   ;;  %v6376_v45 = vld [vmem:[#allocation7 + $0x60] ss:$16 sps:$4 sm:$0xff]  }
 0x1e4   :  { %v2776_v2 = vadd.f32 %v2775_v57, %v2735_v9  ;;  %v6379_v46 = vld [vmem:[#allocation7 + $0x260] ss:$16 sps:$4 sm:$0xff]   ;;  %v6414_v9 = vld [vmem:[#allocation7 + $0x1a4] ss:$16 sps:$4 sm:$0xff]  }
 0x1e5   :  { %v2777_v0 = vpop.f32.mrf.mxu0  ;;  %3135 = vmatpush2.bf16.msra.mxu1 %v5963_v58  ;;  %v6382_v60 = vld [vmem:[#allocation7 + $0x40] ss:$16 sps:$4 sm:$0xff]   ;;  %v6396_v58 = vld [vmem:[#allocation7 + $0x4] ss:$16 sps:$4 sm:$0xff]  }
 0x1e6   :  { %3098 = vmatpush2.bf16.msra.mxu0 %v5819_v56  ;;  %3136 = vmatprep.subr.bf16.mxu1 %v5956_v62  ;;  %v6388_v56 = vld [vmem:[#allocation7 + $0x20] ss:$16 sps:$4 sm:$0xff]   ;;  %v6402_v0 = vld [vmem:[#allocation7 + $0x1e4] ss:$16 sps:$4 sm:$0xff]  }
 0x1e7   :  { %v2778_v6 = vpop.f32.mrf.mxu0  ;;  %3163 = vmatprep.subr.bf16.mxu0 %v6012_v61  ;;  %v6391_v57 = vld [vmem:[#allocation7 + $0x220] ss:$16 sps:$4 sm:$0xff]   ;;  %v6399_v61 = vld [vmem:[#allocation7 + $0x204] ss:$16 sps:$4 sm:$0xff]  }
 0x1e8   :  { %v2814_v11 = vpop.f32.mrf.mxu1  ;;  %v6394_v62 = vld [vmem:[#allocation7] ss:$16 sps:$4 sm:$0xff]   ;;  %v6408_v6 = vld [vmem:[#allocation7 + $0x1c4] ss:$16 sps:$4 sm:$0xff]  }
 0x1e9   :  { %3100 = vmatmul.mubr.bf16.vlgmr.msra.gmra.mxu0 %v7093_v20  ;;  %v2855_v10 = vpop.f32.mrf.mxu0  ;;  %v2815_v12 = vadd.f32 %v2814_v11, %v2774_v54  ;;  %3137 = vmatpush2.bf16.msra.mxu1 %v5955_v7  ;;  %v6393_v54 = vld [vmem:[#allocation7 + $0x224] ss:$16 sps:$4 sm:$0xff]   ;;  %v6412_v11 = vld [vmem:[#allocation7 + $0x1a0] ss:$16 sps:$4 sm:$0xff]  }
 0x1ea   :  { %3164 = vmatpush1.bf16.msra.mxu0 %v6011_v5  ;;  %3181 = vmatprep.mubr.bf16.mxu0 %v6998_v35  ;;  %v2816_v16 = vpop.f32.mrf.mxu1  ;;  %v6403_v5 = vld [vmem:[#allocation7 + $0x3e0] ss:$16 sps:$4 sm:$0xff]   ;;  %v6411_v7 = vld [vmem:[#allocation7 + $0x3c4] ss:$16 sps:$4 sm:$0xff]  }
 0x1eb   :  { %v2857_v13 = vpop.f32.mrf.mxu0  ;;  %4764 = vmatprep.subr.bf16.mxu0 %v6354_v8  ;;  %3138 = vmatprep.subr.bf16.mxu1 %v5948_v17  ;;  %v7186_v19 = vadd.f32 %v2855_v10, %v2815_v12  ;;  %v2817_v39 = vadd.f32 %v2816_v16, %v2776_v2  ;;  %v6406_v8 = vld [vmem:[#allocation7 + $0x1c0] ss:$16 sps:$4 sm:$0xff]   ;;  %v6417_v10 = vld [vmem:[#allocation7 + $0x3a4] ss:$16 sps:$4 sm:$0xff]  }
 0x1ec   :  { %v2818_v21 = vpop.f32.mrf.mxu1  ;;  %v6409_v17 = vld [vmem:[#allocation7 + $0x3c0] ss:$16 sps:$4 sm:$0xff]   ;;  %v6420_v12 = vld [vmem:[#allocation7 + $0x184] ss:$16 sps:$4 sm:$0xff]  }
 0x1ed   :  { %v2859_v20 = vpop.f32.mrf.mxu0  ;;  %v2858_v24 = vadd.f32 %v2857_v13, %v2817_v39  ;;  %3139 = vmatpush2.bf16.msra.mxu1 %v5947_v14  ;;  %v6415_v2 = vld [vmem:[#allocation7 + $0x3a0] ss:$16 sps:$4 sm:$0xff]   ;;  %v6423_v13 = vld [vmem:[#allocation7 + $0x384] ss:$16 sps:$4 sm:$0xff]  }
 0x1ee   :  { %v2819_v26 = vpop.f32.mrf.mxu1  ;;  %4805 = vmatprep.subr.bf16.mxu1 %v6357_v29  ;;  %v6418_v14 = vld [vmem:[#allocation7 + $0x180] ss:$16 sps:$4 sm:$0xff]   ;;  %v6426_v29 = vld [vmem:[#allocation7 + $0x164] ss:$16 sps:$4 sm:$0xff]  }
 0x1ef   :  { %v2860_v35 = vpop.f32.mrf.mxu0  ;;  %v3193_v41 = vmax.f32 %v2858_v24, 0.0  ;;  %v6421_v16 = vld [vmem:[#allocation7 + $0x380] ss:$16 sps:$4 sm:$0xff]   ;;  %v6432_v21 = vld [vmem:[#allocation7 + $0x144] ss:$16 sps:$4 sm:$0xff]  }
 0x1f0   :  { %3141 = vmatmul.mubr.bf16.vlgmr.msra.gmra.mxu1 %v7115_v36  ;;  %v6372_v36 = vld [vmem:[#allocation7 + $0x84] ss:$16 sps:$4 sm:$0xff]   ;;  %v6424_v39 = vld [vmem:[#allocation7 + $0x160] ss:$16 sps:$4 sm:$0xff]  }
 0x1f1   :  { %6016 = vmatmul.mubr.msk.bf16.vlgmr.msra.gmra.mxu0 %vm2530_vm0, %v7107_v38  ;;  %v7193_v31 = vpack.c.bf16 %v3193_v41, %v3193_v41  ;;  %4806 = vmatpush1.bf16.msra.mxu1 %v6355_v25  ;;  %v6367_v38 = vld [vmem:[#allocation7 + $0x2a0] ss:$16 sps:$4 sm:$0xff]   ;;  %v6438_v25 = vld [vmem:[#allocation7 + $0x124] ss:$16 sps:$4 sm:$0xff]  }
 0x1f2   :  { %4765 = vmatpush1.bf16.msra.mxu0 %v6352_v22  ;;  %4796 = vmatprep.mubr.bf16.mxu0 %v7188_v30  ;;  %v6427_v20 = vld [vmem:[#allocation7 + $0x360] ss:$16 sps:$4 sm:$0xff]   ;;  %v6435_v22 = vld [vmem:[#allocation7 + $0x344] ss:$16 sps:$4 sm:$0xff]  }
 0x1f3   :  { %4766 = vmatprep.subr.bf16.mxu0 %v6360_v27  ;;  %4807 = vmatprep.subr.bf16.mxu1 %v6363_v51  ;;  %v6430_v24 = vld [vmem:[#allocation7 + $0x140] ss:$16 sps:$4 sm:$0xff]   ;;  %v6441_v26 = vld [vmem:[#allocation7 + $0x324] ss:$16 sps:$4 sm:$0xff]  }
 0x1f4   :  { %4837 = vmatprep.mubr.bf16.mxu1 %v7193_v31  ;;  %v6433_v35 = vld [vmem:[#allocation7 + $0x340] ss:$16 sps:$4 sm:$0xff]   ;;  %v6444_v41 = vld [vmem:[#allocation7 + $0x104] ss:$16 sps:$4 sm:$0xff]  }
 0x1f5   :  { %4808 = vmatpush1.bf16.msra.mxu1 %v6361_v32  ;;  %v6436_v27 = vld [vmem:[#allocation7 + $0x120] ss:$16 sps:$4 sm:$0xff]  }
 0x1f6   :  { %4767 = vmatpush1.bf16.msra.mxu0 %v6358_v28  ;;  %4809 = vmatprep.subr.bf16.mxu1 %v6369_v55  ;;  %v6439_v51 = vld [vmem:[#allocation7 + $0x320] ss:$16 sps:$4 sm:$0xff]   ;;  %v6447_v28 = vld [vmem:[#allocation7 + $0x304] ss:$16 sps:$4 sm:$0xff]  }
 0x1f7   :  { %4768 = vmatprep.subr.bf16.mxu0 %v6366_v59  ;;  %v6442_v55 = vld [vmem:[#allocation7 + $0x100] ss:$16 sps:$4 sm:$0xff]  }
 0x1f9   :  { %4810 = vmatpush1.bf16.msra.mxu1 %v6367_v38 }
 0x1fa   :  { %4769 = vmatpush1.bf16.msra.mxu0 %v6364_v34  ;;  %4811 = vmatprep.subr.bf16.mxu1 %v6375_v37  ;;  %v3190_v34 = vmax.f32 %v7159_v15, 0.0  ;;  %v6450_v37 = vld [vmem:[#allocation7 + $0x4e4] ss:$16 sps:$4 sm:$0xff]  }
 0x1fb   :  { %4770 = vmatprep.subr.bf16.mxu0 %v6372_v36  ;;  %v6445_v36 = vld [vmem:[#allocation7 + $0x300] ss:$16 sps:$4 sm:$0xff]  }
 0x1fd   :  { %4812 = vmatpush1.bf16.msra.mxu1 %v6373_v42 }
 0x1fe   :  { %4771 = vmatpush1.bf16.msra.mxu0 %v6370_v40  ;;  %4813 = vmatprep.subr.bf16.mxu1 %v6381_v44  ;;  %v3192_v40 = vmax.f32 %v7186_v19, 0.0  ;;  %v6510_v19 = vld [vmem:[#allocation7 + $0x6c4] ss:$16 sps:$4 sm:$0xff]  }
 0x1ff   :  { %4772 = vmatprep.subr.bf16.mxu0 %v6378_v43  ;;  %v6504_v43 = vld [vmem:[#allocation7 + $0x6e4] ss:$16 sps:$4 sm:$0xff]  }
 0x201   :  { %4814 = vmatpush1.bf16.msra.mxu1 %v6379_v46  ;;  %v6448_v46 = vld [vmem:[#allocation7 + $0x4e0] ss:$16 sps:$4 sm:$0xff]  }
 0x202   :  { %4773 = vmatpush1.bf16.msra.mxu0 %v6376_v45  ;;  %4815 = vmatprep.subr.bf16.mxu1 %v6387_v48  ;;  %v6453_v48 = vld [vmem:[#allocation7 + $0x4c4] ss:$16 sps:$4 sm:$0xff]  }
 0x203   :  { %4774 = vmatprep.subr.bf16.mxu0 %v6384_v47  ;;  %v7207_v47 = vpack.c.bf16 %v3190_v34, %v3190_v34  ;;  %v6556_v34 = vld [vmem:[#allocation7 + $0x7c0] ss:$16 sps:$4 sm:$0xff]  }
 0x205   :  { %4816 = vmatpush1.bf16.msra.mxu1 %v6385_v50  ;;  %v7209_v50 = vpack.c.bf16 %v3192_v40, %v3192_v40  ;;  %v6483_v40 = vld [vmem:[#allocation7 + $0x584] ss:$16 sps:$4 sm:$0xff]  }
 0x206   :  { %4775 = vmatpush1.bf16.msra.mxu0 %v6382_v60  ;;  %4817 = vmatprep.subr.bf16.mxu1 %v6393_v54  ;;  %v6502_v60 = vld [vmem:[#allocation7 + $0x6e0] ss:$16 sps:$4 sm:$0xff]  }
 0x207   :  { %4776 = vmatprep.subr.bf16.mxu0 %v6390_v53 }
 0x209   :  { %4818 = vmatpush1.bf16.msra.mxu1 %v6391_v57  ;;  %v6456_v57 = vld [vmem:[#allocation7 + $0x4a4] ss:$16 sps:$4 sm:$0xff]  }
 0x20a   :  { %4777 = vmatpush1.bf16.msra.mxu0 %v6388_v56  ;;  %4819 = vmatprep.subr.bf16.mxu1 %v6399_v61  ;;  %v6451_v56 = vld [vmem:[#allocation7 + $0x4c0] ss:$16 sps:$4 sm:$0xff]  }
 0x20b   :  { %4778 = vmatprep.subr.bf16.mxu0 %v6396_v58  ;;  %v6508_v58 = vld [vmem:[#allocation7 + $0x6c0] ss:$16 sps:$4 sm:$0xff]  }
 0x20d   :  { %4820 = vmatpush1.bf16.msra.mxu1 %v6397_v33 }
 0x20e   :  { %4779 = vmatpush1.bf16.msra.mxu0 %v6394_v62  ;;  %4821 = vmatprep.subr.bf16.mxu1 %v6405_v1  ;;  %v6516_v62 = vld [vmem:[#allocation7 + $0x6a4] ss:$16 sps:$4 sm:$0xff]  }
 0x20f   :  { %4780 = vmatprep.subr.bf16.mxu0 %v6402_v0  ;;  %v6454_v0 = vld [vmem:[#allocation7 + $0x4a0] ss:$16 sps:$4 sm:$0xff]   ;;  %v6459_v1 = vld [vmem:[#allocation7 + $0x484] ss:$16 sps:$4 sm:$0xff]  }
 0x211   :  { %4822 = vmatpush2.bf16.msra.mxu1 %v6403_v5 }
 0x212   :  { %4781 = vmatpush2.bf16.msra.mxu0 %v6400_v3  ;;  %4823 = vmatprep.subr.bf16.mxu1 %v6411_v7  ;;  %v6514_v3 = vld [vmem:[#allocation7 + $0x6a0] ss:$16 sps:$4 sm:$0xff]  }
 0x213   :  { %4782 = vmatprep.subr.bf16.mxu0 %v6408_v6  ;;  %v6522_v6 = vld [vmem:[#allocation7 + $0x684] ss:$16 sps:$4 sm:$0xff]   ;;  %v6457_v7 = vld [vmem:[#allocation7 + $0x480] ss:$16 sps:$4 sm:$0xff]  }
 0x215   :  { %4824 = vmatpush2.bf16.msra.mxu1 %v6409_v17  ;;  %v6520_v17 = vld [vmem:[#allocation7 + $0x680] ss:$16 sps:$4 sm:$0xff]  }
 0x216   :  { %4783 = vmatpush2.bf16.msra.mxu0 %v6406_v8  ;;  %4825 = vmatprep.subr.bf16.mxu1 %v6417_v10  ;;  %v6462_v8 = vld [vmem:[#allocation7 + $0x464] ss:$16 sps:$4 sm:$0xff]   ;;  %v6460_v10 = vld [vmem:[#allocation7 + $0x460] ss:$16 sps:$4 sm:$0xff]  }
 0x217   :  { %4784 = vmatprep.subr.bf16.mxu0 %v6414_v9  ;;  %v6528_v9 = vld [vmem:[#allocation7 + $0x664] ss:$16 sps:$4 sm:$0xff]  }
 0x219   :  { %4826 = vmatpush2.bf16.msra.mxu1 %v6415_v2  ;;  %v6526_v2 = vld [vmem:[#allocation7 + $0x660] ss:$16 sps:$4 sm:$0xff]  }
 0x21a   :  { %4785 = vmatpush2.bf16.msra.mxu0 %v6412_v11  ;;  %4827 = vmatprep.subr.bf16.mxu1 %v6423_v13  ;;  %v6465_v11 = vld [vmem:[#allocation7 + $0x444] ss:$16 sps:$4 sm:$0xff]   ;;  %v6463_v13 = vld [vmem:[#allocation7 + $0x440] ss:$16 sps:$4 sm:$0xff]  }
 0x21b   :  { %4786 = vmatprep.subr.bf16.mxu0 %v6420_v12  ;;  %v6534_v12 = vld [vmem:[#allocation7 + $0x644] ss:$16 sps:$4 sm:$0xff]  }
 0x21d   :  { %4828 = vmatpush2.bf16.msra.mxu1 %v6421_v16  ;;  %v6532_v16 = vld [vmem:[#allocation7 + $0x640] ss:$16 sps:$4 sm:$0xff]  }
 0x21e   :  { %4787 = vmatpush2.bf16.msra.mxu0 %v6418_v14  ;;  %4829 = vmatprep.subr.bf16.mxu1 %v6429_v18  ;;  %v6468_v14 = vld [vmem:[#allocation7 + $0x424] ss:$16 sps:$4 sm:$0xff]   ;;  %v6466_v18 = vld [vmem:[#allocation7 + $0x420] ss:$16 sps:$4 sm:$0xff]  }
 0x21f   :  { %4788 = vmatprep.subr.bf16.mxu0 %v6426_v29  ;;  %v6540_v29 = vld [vmem:[#allocation7 + $0x624] ss:$16 sps:$4 sm:$0xff]  }
 0x221   :  { %4830 = vmatpush2.bf16.msra.mxu1 %v6427_v20  ;;  %v6538_v20 = vld [vmem:[#allocation7 + $0x620] ss:$16 sps:$4 sm:$0xff]  }
 0x222   :  { %4789 = vmatpush2.bf16.msra.mxu0 %v6424_v39  ;;  %4831 = vmatprep.subr.bf16.mxu1 %v6435_v22  ;;  %v6471_v39 = vld [vmem:[#allocation7 + $0x404] ss:$16 sps:$4 sm:$0xff]   ;;  %v6469_v22 = vld [vmem:[#allocation7 + $0x400] ss:$16 sps:$4 sm:$0xff]  }
 0x223   :  { %4790 = vmatprep.subr.bf16.mxu0 %v6432_v21  ;;  %v6546_v21 = vld [vmem:[#allocation7 + $0x604] ss:$16 sps:$4 sm:$0xff]  }
 0x225   :  { %4832 = vmatpush2.bf16.msra.mxu1 %v6433_v35  ;;  %v6544_v35 = vld [vmem:[#allocation7 + $0x600] ss:$16 sps:$4 sm:$0xff]  }
 0x226   :  { %4791 = vmatpush2.bf16.msra.mxu0 %v6430_v24  ;;  %4833 = vmatprep.subr.bf16.mxu1 %v6441_v26  ;;  %v6474_v24 = vld [vmem:[#allocation7 + $0x5e4] ss:$16 sps:$4 sm:$0xff]   ;;  %v6472_v26 = vld [vmem:[#allocation7 + $0x5e0] ss:$16 sps:$4 sm:$0xff]  }
 0x227   :  { %4792 = vmatprep.subr.bf16.mxu0 %v6438_v25  ;;  %v6552_v25 = vld [vmem:[#allocation7 + $0x7e4] ss:$16 sps:$4 sm:$0xff]  }
 0x228   :  { %v7199_v59 = vpop.f32.mrf.mxu1 }
 0x229   :  { %v7197_v32 = vpop.f32.mrf.mxu0  ;;  %4834 = vmatpush2.bf16.msra.mxu1 %v6439_v51  ;;  %v6550_v51 = vld [vmem:[#allocation7 + $0x7e0] ss:$16 sps:$4 sm:$0xff]  }
 0x22a   :  { %4793 = vmatpush2.bf16.msra.mxu0 %v6436_v27  ;;  %v7205_v42 = vpop.f32.mrf.mxu1  ;;  %4835 = vmatprep.subr.bf16.mxu1 %v6447_v28  ;;  %v6477_v27 = vld [vmem:[#allocation7 + $0x5c4] ss:$16 sps:$4 sm:$0xff]   ;;  %v6475_v28 = vld [vmem:[#allocation7 + $0x5c0] ss:$16 sps:$4 sm:$0xff]  }
 0x22b   :  { %v7202_v38 = vpop.f32.mrf.mxu0  ;;  %4794 = vmatprep.subr.bf16.mxu0 %v6444_v41  ;;  %v6558_v41 = vld [vmem:[#allocation7 + $0x7c4] ss:$16 sps:$4 sm:$0xff]  }
 0x22c   :  { %v2941_v45 = vpop.f32.mrf.mxu1 }
 0x22d   :  { %v2900_v44 = vpop.f32.mrf.mxu0  ;;  %4836 = vmatpush2.bf16.msra.mxu1 %v6445_v36  ;;  %v6564_v36 = vld [vmem:[#allocation7 + $0x7a4] ss:$16 sps:$4 sm:$0xff]   ;;  %v6481_v45 = vld [vmem:[#allocation7 + $0x580] ss:$16 sps:$4 sm:$0xff]  }
 0x22e   :  { %4795 = vmatpush2.bf16.msra.mxu0 %v6442_v55  ;;  %v2942_v53 = vpop.f32.mrf.mxu1  ;;  %4887 = vmatprep.subr.bf16.mxu1 %v6504_v43  ;;  %v6480_v55 = vld [vmem:[#allocation7 + $0x5a4] ss:$16 sps:$4 sm:$0xff]   ;;  %v6562_v43 = vld [vmem:[#allocation7 + $0x7a0] ss:$16 sps:$4 sm:$0xff]  }
 0x22f   :  { %v2901_v15 = vpop.f32.mrf.mxu0  ;;  %4846 = vmatprep.subr.bf16.mxu0 %v6450_v37  ;;  %v6478_v37 = vld [vmem:[#allocation7 + $0x5a0] ss:$16 sps:$4 sm:$0xff]   ;;  %v6570_v44 = vld [vmem:[#allocation7 + $0x784] ss:$16 sps:$4 sm:$0xff]   ;;  %v552_v53 = vsub.s32 5, %v7128_v52 }
 0x230   :  { %4838 = vmatmul.mubr.bf16.vlgmr.msra.gmra.mxu1 %v7209_v50  ;;  %v7213_v54 = vpop.f32.mrf.mxu1  ;;  %v6568_v15 = vld [vmem:[#allocation7 + $0x780] ss:$16 sps:$4 sm:$0xff]  }
 0x231   :  { %4797 = vmatmul.mubr.bf16.vlgmr.msra.gmra.mxu0 %v7207_v47  ;;  %4888 = vmatpush1.bf16.msra.mxu1 %v6502_v60  ;;  %v6576_v60 = vld [vmem:[#allocation7 + $0x764] ss:$16 sps:$4 sm:$0xff]  }
 0x232   :  { %4847 = vmatpush1.bf16.msra.mxu0 %v6448_v46  ;;  %v7215_v61 = vpop.f32.mrf.mxu1  ;;  %4889 = vmatprep.subr.bf16.mxu1 %v6510_v19  ;;  %v6486_v46 = vld [vmem:[#allocation7 + $0x564] ss:$16 sps:$4 sm:$0xff]   ;;  %v6484_v19 = vld [vmem:[#allocation7 + $0x560] ss:$16 sps:$4 sm:$0xff]  }
 0x233   :  { %4848 = vmatprep.subr.bf16.mxu0 %v6453_v48  ;;  %v548_v48 = vsub.s32 4, %v7128_v52 }
 0x234   :  { %v3023_v33 = vpop.f32.mrf.mxu1 }
 0x235   :  { %4890 = vmatpush1.bf16.msra.mxu1 %v6508_v58  ;;  %v7219_v58 = vld [vmem:[#allocation5] sm:$0xff]  ;;  %v6582_v33 = vld [vmem:[#allocation7 + $0x744] ss:$16 sps:$4 sm:$0xff]  }
 0x236   :  { %4849 = vmatpush1.bf16.msra.mxu0 %v6451_v56  ;;  %v3024_v5 = vpop.f32.mrf.mxu1  ;;  %4891 = vmatprep.subr.bf16.mxu1 %v6516_v62  ;;  %v6489_v56 = vld [vmem:[#allocation7 + $0x544] ss:$16 sps:$4 sm:$0xff]   ;;  %v549_v62 = vrot.slane %v7219_v58, %v548_v48  ;;  %v6535_v48 = vld [vmem:[#allocation7 + $0x8] ss:$16 sps:$4 sm:$0xff]  }
 0x237   :  { %4850 = vmatprep.subr.bf16.mxu0 %v6456_v57  ;;  %v6574_v57 = vld [vmem:[#allocation7 + $0x760] ss:$16 sps:$4 sm:$0xff]  }
 0x238   :  { %v6580_v5 = vld [vmem:[#allocation7 + $0x740] ss:$16 sps:$4 sm:$0xff]  }
 0x239   :  { %4892 = vmatpush1.bf16.msra.mxu1 %v6514_v3  ;;  %v6492_v3 = vld [vmem:[#allocation7 + $0x524] ss:$16 sps:$4 sm:$0xff]  }
 0x23a   :  { %4851 = vmatpush1.bf16.msra.mxu0 %v6454_v0  ;;  %4893 = vmatprep.subr.bf16.mxu1 %v6522_v6  ;;  %v553_v0 = vrot.slane %v7219_v58, %v552_v53  ;;  %v2897_v6 = vadd.f32 %v7197_v32, %v549_v62  ;;  %v6493_v32 = vld [vmem:[#allocation7 + $0x500] ss:$16 sps:$4 sm:$0xff]   ;;  %v6541_v53 = vld [vmem:[#allocation7 + $0x1e8] ss:$16 sps:$4 sm:$0xff]  }
 0x23b   :  { %4852 = vmatprep.subr.bf16.mxu0 %v6459_v1  ;;  %v6487_v1 = vld [vmem:[#allocation7 + $0x540] ss:$16 sps:$4 sm:$0xff]   ;;  %v6553_v62 = vld [vmem:[#allocation7 + $0x1a8] ss:$16 sps:$4 sm:$0xff]  }
 0x23d   :  { %4894 = vmatpush1.bf16.msra.mxu1 %v6520_v17  ;;  %v6490_v17 = vld [vmem:[#allocation7 + $0x520] ss:$16 sps:$4 sm:$0xff]  }
 0x23e   :  { %4853 = vmatpush1.bf16.msra.mxu0 %v6457_v7  ;;  %4895 = vmatprep.subr.bf16.mxu1 %v6528_v9  ;;  %v6588_v7 = vld [vmem:[#allocation7 + $0x724] ss:$16 sps:$4 sm:$0xff]  }
 0x23f   :  { %4854 = vmatprep.subr.bf16.mxu0 %v6462_v8  ;;  %v2899_v8 = vadd.f32 %v7202_v38, %v553_v0  ;;  %v6495_v9 = vld [vmem:[#allocation7 + $0x504] ss:$16 sps:$4 sm:$0xff]   ;;  %v6592_v38 = vld [vmem:[#allocation7 + $0x700] ss:$16 sps:$4 sm:$0xff]   ;;  %v6559_v0 = vld [vmem:[#allocation7 + $0x188] ss:$16 sps:$4 sm:$0xff]  }
 0x241   :  { %4896 = vmatpush1.bf16.msra.mxu1 %v6526_v2  ;;  %v6594_v2 = vld [vmem:[#allocation7 + $0x704] ss:$16 sps:$4 sm:$0xff]  }
 0x242   :  { %4855 = vmatpush1.bf16.msra.mxu0 %v6460_v10  ;;  %4897 = vmatprep.subr.bf16.mxu1 %v6534_v12  ;;  %v6586_v10 = vld [vmem:[#allocation7 + $0x720] ss:$16 sps:$4 sm:$0xff]  }
 0x243   :  { %4856 = vmatprep.subr.bf16.mxu0 %v6465_v11  ;;  %v2938_v11 = vadd.f32 %v7199_v59, %v2897_v6  ;;  %v6571_v6 = vld [vmem:[#allocation7 + $0x148] ss:$16 sps:$4 sm:$0xff]  }
 0x245   :  { %4898 = vmatpush1.bf16.msra.mxu1 %v6532_v16 }
 0x246   :  { %4857 = vmatpush1.bf16.msra.mxu0 %v6463_v13  ;;  %4899 = vmatprep.subr.bf16.mxu1 %v6540_v29  ;;  %v2940_v13 = vadd.f32 %v7205_v42, %v2899_v8  ;;  %v6498_v29 = vld [vmem:[#allocation7 + $0xec] ss:$16 sps:$4 sm:$0xff]  }
 0x247   :  { %4858 = vmatprep.subr.bf16.mxu0 %v6468_v14  ;;  %v6579_v8 = vld [vmem:[#allocation7 + $0x12c] ss:$16 sps:$4 sm:$0xff]  }
 0x249   :  { %4900 = vmatpush1.bf16.msra.mxu1 %v6538_v20  ;;  %v6600_v20 = vld [vmem:[#allocation7 + $0x2ec] ss:$16 sps:$4 sm:$0xff]  }
 0x24a   :  { %4859 = vmatpush1.bf16.msra.mxu0 %v6466_v18  ;;  %4901 = vmatprep.subr.bf16.mxu1 %v6546_v21 }
 0x24b   :  { %4860 = vmatprep.subr.bf16.mxu0 %v6471_v39 }
 0x24d   :  { %4902 = vmatpush1.bf16.msra.mxu1 %v6544_v35 }
 0x24e   :  { %4861 = vmatpush1.bf16.msra.mxu0 %v6469_v22  ;;  %4903 = vmatprep.subr.bf16.mxu1 %v6552_v25 }
 0x24f   :  { %4862 = vmatprep.subr.bf16.mxu0 %v6474_v24 }
 0x251   :  { %4904 = vmatpush2.bf16.msra.mxu1 %v6550_v51 }
 0x252   :  { %4863 = vmatpush2.bf16.msra.mxu0 %v6472_v26  ;;  %4905 = vmatprep.subr.bf16.mxu1 %v6558_v41  ;;  %v6496_v26 = vld [vmem:[#allocation7 + $0xe8] ss:$16 sps:$4 sm:$0xff]  }
 0x253   :  { %4864 = vmatprep.subr.bf16.mxu0 %v6477_v27  ;;  %v6499_v41 = vld [vmem:[#allocation7 + $0xc8] ss:$16 sps:$4 sm:$0xff]  }
 0x255   :  { %4906 = vmatpush2.bf16.msra.mxu1 %v6556_v34  ;;  %v6505_v34 = vld [vmem:[#allocation7 + $0xa8] ss:$16 sps:$4 sm:$0xff]  }
 0x256   :  { %4865 = vmatpush2.bf16.msra.mxu0 %v6475_v28  ;;  %4907 = vmatprep.subr.bf16.mxu1 %v6564_v36  ;;  %v6507_v28 = vld [vmem:[#allocation7 + $0xac] ss:$16 sps:$4 sm:$0xff]  }
 0x257   :  { %4866 = vmatprep.subr.bf16.mxu0 %v6480_v55  ;;  %v6513_v36 = vld [vmem:[#allocation7 + $0x8c] ss:$16 sps:$4 sm:$0xff]  }
 0x259   :  { %4908 = vmatpush2.bf16.msra.mxu1 %v6562_v43  ;;  %v6517_v43 = vld [vmem:[#allocation7 + $0x68] ss:$16 sps:$4 sm:$0xff]  }
 0x25a   :  { %4867 = vmatpush2.bf16.msra.mxu0 %v6478_v37  ;;  %4909 = vmatprep.subr.bf16.mxu1 %v6570_v44  ;;  %v6511_v37 = vld [vmem:[#allocation7 + $0x88] ss:$16 sps:$4 sm:$0xff]   ;;  %v6525_v44 = vld [vmem:[#allocation7 + $0x4c] ss:$16 sps:$4 sm:$0xff]  }
 0x25b   :  { %4868 = vmatprep.subr.bf16.mxu0 %v6483_v40  ;;  %v6519_v40 = vld [vmem:[#allocation7 + $0x6c] ss:$16 sps:$4 sm:$0xff]  }
 0x25d   :  { %4910 = vmatpush2.bf16.msra.mxu1 %v6568_v15  ;;  %v6537_v15 = vld [vmem:[#allocation7 + $0xc] ss:$16 sps:$4 sm:$0xff]  }
 0x25e   :  { %4869 = vmatpush2.bf16.msra.mxu0 %v6481_v45  ;;  %4911 = vmatprep.subr.bf16.mxu1 %v6576_v60  ;;  %v6523_v45 = vld [vmem:[#allocation7 + $0x48] ss:$16 sps:$4 sm:$0xff]   ;;  %v6543_v60 = vld [vmem:[#allocation7 + $0x1ec] ss:$16 sps:$4 sm:$0xff]  }
 0x25f   :  { %4870 = vmatprep.subr.bf16.mxu0 %v6486_v46  ;;  %v6529_v46 = vld [vmem:[#allocation7 + $0x28] ss:$16 sps:$4 sm:$0xff]  }
 0x261   :  { %4912 = vmatpush2.bf16.msra.mxu1 %v6574_v57  ;;  %v6555_v57 = vld [vmem:[#allocation7 + $0x1ac] ss:$16 sps:$4 sm:$0xff]  }
 0x262   :  { %4871 = vmatpush2.bf16.msra.mxu0 %v6484_v19  ;;  %4913 = vmatprep.subr.bf16.mxu1 %v6582_v33  ;;  %v6549_v19 = vld [vmem:[#allocation7 + $0x1cc] ss:$16 sps:$4 sm:$0xff]  }
 0x263   :  { %4872 = vmatprep.subr.bf16.mxu0 %v6489_v56  ;;  %v6547_v56 = vld [vmem:[#allocation7 + $0x1c8] ss:$16 sps:$4 sm:$0xff]   ;;  %v6561_v33 = vld [vmem:[#allocation7 + $0x18c] ss:$16 sps:$4 sm:$0xff]  }
 0x265   :  { %4914 = vmatpush2.bf16.msra.mxu1 %v6580_v5  ;;  %v6573_v5 = vld [vmem:[#allocation7 + $0x14c] ss:$16 sps:$4 sm:$0xff]  }
 0x266   :  { %4873 = vmatpush2.bf16.msra.mxu0 %v6487_v1  ;;  %4915 = vmatprep.subr.bf16.mxu1 %v6588_v7  ;;  %v6567_v1 = vld [vmem:[#allocation7 + $0x16c] ss:$16 sps:$4 sm:$0xff]   ;;  %v556_v7 = vsub.s32 6, %v7128_v52 }
 0x267   :  { %4874 = vmatprep.subr.bf16.mxu0 %v6492_v3  ;;  %v6565_v3 = vld [vmem:[#allocation7 + $0x168] ss:$16 sps:$4 sm:$0xff]  }
 0x269   :  { %v2978_v12 = vpop.f32.mrf.mxu0  ;;  %4916 = vmatpush2.bf16.msra.mxu1 %v6586_v10  ;;  %v6577_v10 = vld [vmem:[#allocation7 + $0x128] ss:$16 sps:$4 sm:$0xff]  }
 0x26a   :  { %v2979_v14 = vadd.f32 %v2978_v12, %v2938_v11  ;;  %4875 = vmatpush2.bf16.msra.mxu0 %v6490_v17  ;;  %4917 = vmatprep.subr.bf16.mxu1 %v6594_v2  ;;  %v560_v17 = vsub.s32 7, %v7128_v52  ;;  %v557_v11 = vrot.slane %v7219_v58, %v556_v7  ;;  %v6585_v12 = vld [vmem:[#allocation7 + $0x10c] ss:$16 sps:$4 sm:$0xff]   ;;  %v6631_v7 = vld [vmem:[#allocation7 + $0x408] ss:$16 sps:$4 sm:$0xff]  }
 0x26b   :  { %v2980_v16 = vpop.f32.mrf.mxu0  ;;  %4876 = vmatprep.subr.bf16.mxu0 %v6495_v9 }
 0x26c   :  { %v3020_v18 = vadd.f32 %v7213_v54, %v2979_v14  ;;  %v2981_v39 = vadd.f32 %v2980_v16, %v2940_v13  ;;  %v6501_v54 = vld [vmem:[#allocation7 + $0xcc] ss:$16 sps:$4 sm:$0xff]   ;;  %v561_v13 = vrot.slane %v7219_v58, %v560_v17 }
 0x26d   :  { %v2982_v21 = vpop.f32.mrf.mxu0  ;;  %4918 = vmatpush2.bf16.msra.mxu1 %v6592_v38  ;;  %v6591_v38 = vld [vmem:[#allocation7 + $0x4ec] ss:$16 sps:$4 sm:$0xff]  }
 0x26e   :  { %v3022_v59 = vadd.f32 %v7215_v61, %v2981_v39  ;;  %4877 = vmatpush2.bf16.msra.mxu0 %v6493_v32  ;;  %v3194_v22 = vmax.f32 %v3020_v18, 0.0  ;;  %4969 = vmatprep.subr.bf16.mxu1 %v6600_v20  ;;  %v6583_v32 = vld [vmem:[#allocation7 + $0x108] ss:$16 sps:$4 sm:$0xff]   ;;  %v6597_v58 = vld [vmem:[#allocation7 + $0x4cc] ss:$16 sps:$4 sm:$0xff]  }
 0x26f   :  { %v2983_v24 = vpop.f32.mrf.mxu0  ;;  %4928 = vmatprep.subr.bf16.mxu0 %v6498_v29  ;;  %v6639_v17 = vld [vmem:[#allocation7 + $0x5ec] ss:$16 sps:$4 sm:$0xff]  }
 0x270   :  { %v3195_v42 = vmax.f32 %v3022_v59, 0.0  ;;  %v7231_v25 = vpop.f32.mrf.mxu1  ;;  %v7233_v27 = vpack.c.bf16 %v3194_v22, %v3194_v22  ;;  %v6589_v59 = vld [vmem:[#allocation7 + $0x4e8] ss:$16 sps:$4 sm:$0xff]  }
 0x271   :  { %v3061_v16 = vadd.f32 %v7231_v25, %v557_v11  ;;  %v6634_v11 = vld [vmem:[#allocation7 + $0x228] ss:$16 sps:$4 sm:$0xff]  }
 0x272   :  { %v7229_v35 = vpack.c.bf16 %v3195_v42, %v3195_v42  ;;  %v7235_v51 = vpop.f32.mrf.mxu1 }
 0x273   :  { %v3063_v18 = vadd.f32 %v7235_v51, %v561_v13  ;;  %v6595_v51 = vld [vmem:[#allocation7 + $0x4c8] ss:$16 sps:$4 sm:$0xff]  }
 0x274   :  { %4878 = vmatprep.mubr.bf16.mxu0 %v7229_v35  ;;  %v3064_v61 = vpop.f32.mrf.mxu1  ;;  %v6643_v13 = vld [vmem:[#allocation7 + $0x5c8] ss:$16 sps:$4 sm:$0xff]  }
 0x275   :  { %4879 = vmatmul.mubr.bf16.vlgmr.msra.gmra.mxu0 %v7233_v27 }
 0x276   :  { %4929 = vmatpush1.bf16.msra.mxu0 %v6496_v26  ;;  %4960 = vmatprep.mubr.bf16.mxu0 %v7188_v30  ;;  %v3065_v55 = vpop.f32.mrf.mxu1  ;;  %v6531_v30 = vld [vmem:[#allocation7 + $0x2c] ss:$16 sps:$4 sm:$0xff]  }
 0x277   :  { %4930 = vmatprep.subr.bf16.mxu0 %v6501_v54 }
 0x27a   :  { %4931 = vmatpush1.bf16.msra.mxu0 %v6499_v41 }
 0x27b   :  { %4932 = vmatprep.subr.bf16.mxu0 %v6507_v28 }
 0x27e   :  { %4933 = vmatpush1.bf16.msra.mxu0 %v6505_v34  ;;  %v6603_v34 = vld [vmem:[#allocation7 + $0x4ac] ss:$16 sps:$4 sm:$0xff]  }
 0x27f   :  { %4934 = vmatprep.subr.bf16.mxu0 %v6513_v36 }
 0x282   :  { %4935 = vmatpush1.bf16.msra.mxu0 %v6511_v37 }
 0x283   :  { %4936 = vmatprep.subr.bf16.mxu0 %v6519_v40 }
 0x286   :  { %4937 = vmatpush1.bf16.msra.mxu0 %v6517_v43  ;;  %v6601_v43 = vld [vmem:[#allocation7 + $0x4a8] ss:$16 sps:$4 sm:$0xff]  }
 0x287   :  { %4938 = vmatprep.subr.bf16.mxu0 %v6525_v44 }
 0x28a   :  { %4939 = vmatpush1.bf16.msra.mxu0 %v6523_v45  ;;  %v6598_v45 = vld [vmem:[#allocation7 + $0x2e8] ss:$16 sps:$4 sm:$0xff]  }
 0x28b   :  { %4940 = vmatprep.subr.bf16.mxu0 %v6531_v30  ;;  %v6606_v30 = vld [vmem:[#allocation7 + $0x2cc] ss:$16 sps:$4 sm:$0xff]  }
 0x28e   :  { %4941 = vmatpush1.bf16.msra.mxu0 %v6529_v46  ;;  %v6609_v46 = vld [vmem:[#allocation7 + $0x48c] ss:$16 sps:$4 sm:$0xff]  }
 0x28f   :  { %4942 = vmatprep.subr.bf16.mxu0 %v6537_v15  ;;  %v6604_v15 = vld [vmem:[#allocation7 + $0x2c8] ss:$16 sps:$4 sm:$0xff]  }
 0x292   :  { %4943 = vmatpush1.bf16.msra.mxu0 %v6535_v48  ;;  %v6615_v48 = vld [vmem:[#allocation7 + $0x46c] ss:$16 sps:$4 sm:$0xff]  }
 0x293   :  { %4944 = vmatprep.subr.bf16.mxu0 %v6543_v60  ;;  %v6612_v60 = vld [vmem:[#allocation7 + $0x2ac] ss:$16 sps:$4 sm:$0xff]  }
 0x296   :  { %4945 = vmatpush2.bf16.msra.mxu0 %v6541_v53  ;;  %v6613_v53 = vld [vmem:[#allocation7 + $0x468] ss:$16 sps:$4 sm:$0xff]  }
 0x297   :  { %4946 = vmatprep.subr.bf16.mxu0 %v6549_v19  ;;  %v6610_v19 = vld [vmem:[#allocation7 + $0x2a8] ss:$16 sps:$4 sm:$0xff]  }
 0x29a   :  { %4947 = vmatpush2.bf16.msra.mxu0 %v6547_v56  ;;  %v6621_v56 = vld [vmem:[#allocation7 + $0x44c] ss:$16 sps:$4 sm:$0xff]  }
 0x29b   :  { %4948 = vmatprep.subr.bf16.mxu0 %v6555_v57  ;;  %v6618_v57 = vld [vmem:[#allocation7 + $0x28c] ss:$16 sps:$4 sm:$0xff]  }
 0x29e   :  { %4949 = vmatpush2.bf16.msra.mxu0 %v6553_v62  ;;  %v6619_v62 = vld [vmem:[#allocation7 + $0x448] ss:$16 sps:$4 sm:$0xff]  }
 0x29f   :  { %4950 = vmatprep.subr.bf16.mxu0 %v6561_v33  ;;  %v6616_v33 = vld [vmem:[#allocation7 + $0x288] ss:$16 sps:$4 sm:$0xff]  }
 0x2a2   :  { %4951 = vmatpush2.bf16.msra.mxu0 %v6559_v0  ;;  %v6627_v0 = vld [vmem:[#allocation7 + $0x42c] ss:$16 sps:$4 sm:$0xff]  }
 0x2a3   :  { %4952 = vmatprep.subr.bf16.mxu0 %v6567_v1  ;;  %v6625_v1 = vld [vmem:[#allocation7 + $0x428] ss:$16 sps:$4 sm:$0xff]  }
 0x2a6   :  { %4953 = vmatpush2.bf16.msra.mxu0 %v6565_v3  ;;  %v6622_v3 = vld [vmem:[#allocation7 + $0x268] ss:$16 sps:$4 sm:$0xff]  }
 0x2a7   :  { %4954 = vmatprep.subr.bf16.mxu0 %v6573_v5  ;;  %v6633_v5 = vld [vmem:[#allocation7 + $0x40c] ss:$16 sps:$4 sm:$0xff]  }
 0x2a9   :  { %v3101_v9 = vpop.f32.mrf.mxu0 }
 0x2aa   :  { %4955 = vmatpush2.bf16.msra.mxu0 %v6571_v6  ;;  %v3102_v39 = vadd.f32 %v3101_v9, %v3061_v16  ;;  %v6630_v6 = vld [vmem:[#allocation7 + $0x24c] ss:$16 sps:$4 sm:$0xff]  }
 0x2ab   :  { %v3103_v2 = vpop.f32.mrf.mxu0  ;;  %4956 = vmatprep.subr.bf16.mxu0 %v6579_v8  ;;  %v6628_v8 = vld [vmem:[#allocation7 + $0x248] ss:$16 sps:$4 sm:$0xff]   ;;  %v6636_v9 = vld [vmem:[#allocation7 + $0x22c] ss:$16 sps:$4 sm:$0xff]  }
 0x2ac   :  { %v3104_v22 = vadd.f32 %v3103_v2, %v3063_v18  ;;  %v6645_v2 = vld [vmem:[#allocation7 + $0x5cc] ss:$16 sps:$4 sm:$0xff]  }
 0x2ad   :  { %v3105_v14 = vpop.f32.mrf.mxu0  ;;  %v6648_v16 = vld [vmem:[#allocation7 + $0x3ec] ss:$16 sps:$4 sm:$0xff]  }
 0x2ae   :  { %4957 = vmatpush2.bf16.msra.mxu0 %v6577_v10  ;;  %v6637_v10 = vld [vmem:[#allocation7 + $0x5e8] ss:$16 sps:$4 sm:$0xff]   ;;  %v6657_v18 = vld [vmem:[#allocation7 + $0x58c] ss:$16 sps:$4 sm:$0xff]  }
 0x2af   :  { %v3106_v29 = vpop.f32.mrf.mxu0  ;;  %4958 = vmatprep.subr.bf16.mxu0 %v6585_v12  ;;  %v6642_v12 = vld [vmem:[#allocation7 + $0x20c] ss:$16 sps:$4 sm:$0xff]   ;;  %v6640_v14 = vld [vmem:[#allocation7 + $0x208] ss:$16 sps:$4 sm:$0xff]  }
 0x2b0   :  { %v3142_v21 = vpop.f32.mrf.mxu1  ;;  %v6649_v29 = vld [vmem:[#allocation7 + $0x5a8] ss:$16 sps:$4 sm:$0xff]  }
 0x2b1   :  { %v3183_v20 = vpop.f32.mrf.mxu0  ;;  %v3143_v24 = vadd.f32 %v3142_v21, %v3102_v39  ;;  %v6654_v39 = vld [vmem:[#allocation7 + $0x3cc] ss:$16 sps:$4 sm:$0xff]   ;;  %v6652_v21 = vld [vmem:[#allocation7 + $0x3c8] ss:$16 sps:$4 sm:$0xff]  }
 0x2b2   :  { %4959 = vmatpush2.bf16.msra.mxu0 %v6583_v32  ;;  %v3144_v26 = vpop.f32.mrf.mxu1  ;;  %v6651_v32 = vld [vmem:[#allocation7 + $0x5ac] ss:$16 sps:$4 sm:$0xff]  }
 0x2b3   :  { %v3185_v42 = vpop.f32.mrf.mxu0  ;;  %5010 = vmatprep.subr.bf16.mxu0 %v6591_v38  ;;  %v3184_v54 = vadd.f32 %v3183_v20, %v3143_v24  ;;  %v3145_v61 = vadd.f32 %v3144_v26, %v3104_v22  ;;  %v6646_v38 = vld [vmem:[#allocation7 + $0x3e8] ss:$16 sps:$4 sm:$0xff]   ;;  %v6660_v22 = vld [vmem:[#allocation7 + $0x3ac] ss:$16 sps:$4 sm:$0xff]  }
 0x2b4   :  { %v3146_v41 = vpop.f32.mrf.mxu1  ;;  %v6655_v20 = vld [vmem:[#allocation7 + $0x588] ss:$16 sps:$4 sm:$0xff]   ;;  %v6666_v26 = vld [vmem:[#allocation7 + $0x38c] ss:$16 sps:$4 sm:$0xff]  }
 0x2b5   :  { %4961 = vmatmul.mubr.bf16.vlgmr.msra.gmra.mxu0 %v7207_v47  ;;  %v3187_v25 = vpop.f32.mrf.mxu0  ;;  %v3186_v28 = vadd.f32 %v3185_v42, %v3145_v61  ;;  %v3196_v36 = vmax.f32 %v3184_v54, 0.0  ;;  %v6661_v24 = vld [vmem:[#allocation7 + $0x568] ss:$16 sps:$4 sm:$0xff]   ;;  %v6672_v41 = vld [vmem:[#allocation7 + $0x36c] ss:$16 sps:$4 sm:$0xff]  }
 0x2b6   :  { %5011 = vmatpush1.bf16.msra.mxu0 %v6589_v59  ;;  %5042 = vmatprep.mubr.bf16.mxu0 %v7229_v35  ;;  %v3147_v37 = vpop.f32.mrf.mxu1  ;;  %v6607_v35 = vld [vmem:[#allocation7 + $0x488] ss:$16 sps:$4 sm:$0xff]   ;;  %v6663_v59 = vld [vmem:[#allocation7 + $0x56c] ss:$16 sps:$4 sm:$0xff]  }
 0x2b7   :  { %v3188_v55 = vpop.f32.mrf.mxu0  ;;  %5012 = vmatprep.subr.bf16.mxu0 %v6597_v58  ;;  %v3197_v40 = vmax.f32 %v3186_v28, 0.0  ;;  %v7250_v47 = vpack.c.bf16 %v3196_v36, %v3196_v36  ;;  %v6658_v42 = vld [vmem:[#allocation7 + $0x3a8] ss:$16 sps:$4 sm:$0xff]   ;;  %v6669_v58 = vld [vmem:[#allocation7 + $0x54c] ss:$16 sps:$4 sm:$0xff]  }
 0x2b8   :  { %v6667_v54 = vld [vmem:[#allocation7 + $0x548] ss:$16 sps:$4 sm:$0xff]   ;;  %v6675_v25 = vld [vmem:[#allocation7 + $0x52c] ss:$16 sps:$4 sm:$0xff]   ;;  %v7255_v55 = vld [vmem:[#allocation8] sm:$0xf] }
 0x2b9   :  { %v7248_v44 = vpack.c.bf16 %v3197_v40, %v3197_v40  ;;  %v6664_v61 = vld [vmem:[#allocation7 + $0x388] ss:$16 sps:$4 sm:$0xff]   ;;  %v6678_v36 = vld [vmem:[#allocation7 + $0x34c] ss:$16 sps:$4 sm:$0xff]   ;;  %v3467_v37 = vrot.slane %v7255_v55, %v7131_v63 }
 0x2ba   :  { %5013 = vmatpush1.bf16.msra.mxu0 %v6595_v51  ;;  %v6673_v51 = vld [vmem:[#allocation7 + $0x528] ss:$16 sps:$4 sm:$0xff]  }
 0x2bb   :  { %5014 = vmatprep.subr.bf16.mxu0 %v6603_v34  ;;  %4919 = vmatprep.mubr.bf16.mxu1 %v7248_v44  ;;  %v6670_v28 = vld [vmem:[#allocation7 + $0x368] ss:$16 sps:$4 sm:$0xff]   ;;  %v6681_v34 = vld [vmem:[#allocation7 + $0x50c] ss:$16 sps:$4 sm:$0xff]  }
 0x2bc   :  { %4920 = vmatmul.mubr.bf16.vlgmr.msra.gmra.mxu1 %v7250_v47  ;;  %v6679_v40 = vld [vmem:[#allocation7 + $0x508] ss:$16 sps:$4 sm:$0xff]  }
 0x2bd   :  { %4970 = vmatpush1.bf16.msra.mxu1 %v6598_v45  ;;  %5001 = vmatprep.mubr.bf16.mxu1 %v7193_v31  ;;  %v6624_v31 = vld [vmem:[#allocation7 + $0x26c] ss:$16 sps:$4 sm:$0xff]   ;;  %v6738_v45 = vld [vmem:[#allocation10 + $0x74] ss:$8 sps:$4 sm:$0xff]  }
 0x2be   :  { %5015 = vmatpush1.bf16.msra.mxu0 %v6601_v43  ;;  %4971 = vmatprep.subr.bf16.mxu1 %v6606_v30  ;;  %v6676_v43 = vld [vmem:[#allocation7 + $0x348] ss:$16 sps:$4 sm:$0xff]   ;;  %v3471_v30 = vrot.slane %v7255_v55, %v7136_v4 }
 0x2bf   :  { %5016 = vmatprep.subr.bf16.mxu0 %v6609_v46  ;;  %v6684_v46 = vld [vmem:[#allocation7 + $0x32c] ss:$16 sps:$4 sm:$0xff]  }
 0x2c1   :  { %4972 = vmatpush1.bf16.msra.mxu1 %v6604_v15 }
 0x2c2   :  { %5017 = vmatpush1.bf16.msra.mxu0 %v6607_v35  ;;  %4973 = vmatprep.subr.bf16.mxu1 %v6612_v60  ;;  %v6736_v60 = vld [vmem:[#allocation10 + $0x70] ss:$8 sps:$4 sm:$0xff]  }
 0x2c3   :  { %5018 = vmatprep.subr.bf16.mxu0 %v6615_v48 }
 0x2c5   :  { %4974 = vmatpush1.bf16.msra.mxu1 %v6610_v19  ;;  %v6682_v19 = vld [vmem:[#allocation7 + $0x328] ss:$16 sps:$4 sm:$0xff]  }
 0x2c6   :  { %5019 = vmatpush1.bf16.msra.mxu0 %v6613_v53  ;;  %4975 = vmatprep.subr.bf16.mxu1 %v6618_v57 }
 0x2c7   :  { %5020 = vmatprep.subr.bf16.mxu0 %v6621_v56  ;;  %v6741_v56 = vld [vmem:[#allocation10 + $0x64] ss:$8 sps:$4 sm:$0xff]  }
 0x2c9   :  { %4976 = vmatpush1.bf16.msra.mxu1 %v6616_v33 }
 0x2ca   :  { %5021 = vmatpush1.bf16.msra.mxu0 %v6619_v62  ;;  %4977 = vmatprep.subr.bf16.mxu1 %v6624_v31 }
 0x2cb   :  { %5022 = vmatprep.subr.bf16.mxu0 %v6627_v0  ;;  %v6687_v0 = vld [vmem:[#allocation7 + $0x30c] ss:$16 sps:$4 sm:$0xff]  }
 0x2cd   :  { %4978 = vmatpush1.bf16.msra.mxu1 %v6622_v3 }
 0x2ce   :  { %5023 = vmatpush1.bf16.msra.mxu0 %v6625_v1  ;;  %4979 = vmatprep.subr.bf16.mxu1 %v6630_v6 }
 0x2cf   :  { %5024 = vmatprep.subr.bf16.mxu0 %v6633_v5  ;;  %v6739_v5 = vld [vmem:[#allocation10 + $0x60] ss:$8 sps:$4 sm:$0xff]  }
 0x2d1   :  { %4980 = vmatpush1.bf16.msra.mxu1 %v6628_v8  ;;  %v6744_v8 = vld [vmem:[#allocation10 + $0x54] ss:$8 sps:$4 sm:$0xff]  }
 0x2d2   :  { %5025 = vmatpush1.bf16.msra.mxu0 %v6631_v7  ;;  %4981 = vmatprep.subr.bf16.mxu1 %v6636_v9  ;;  %v6685_v7 = vld [vmem:[#allocation7 + $0x308] ss:$16 sps:$4 sm:$0xff]   ;;  %v6690_v9 = vld [vmem:[#allocation7 + $0x6ec] ss:$16 sps:$4 sm:$0xff]  }
 0x2d3   :  { %5026 = vmatprep.subr.bf16.mxu0 %v6639_v17 }
 0x2d5   :  { %4982 = vmatpush1.bf16.msra.mxu1 %v6634_v11  ;;  %v6688_v11 = vld [vmem:[#allocation7 + $0x6e8] ss:$16 sps:$4 sm:$0xff]  }
 0x2d6   :  { %5027 = vmatpush2.bf16.msra.mxu0 %v6637_v10  ;;  %4983 = vmatprep.subr.bf16.mxu1 %v6642_v12  ;;  %v6742_v10 = vld [vmem:[#allocation10 + $0x50] ss:$8 sps:$4 sm:$0xff]   ;;  %v6745_v12 = vld [vmem:[#allocation10 + $0x40] ss:$8 sps:$4 sm:$0xff]  }
 0x2d7   :  { %5028 = vmatprep.subr.bf16.mxu0 %v6645_v2  ;;  %v6747_v2 = vld [vmem:[#allocation10 + $0x44] ss:$8 sps:$4 sm:$0xff]  }
 0x2d9   :  { %4984 = vmatpush1.bf16.msra.mxu1 %v6640_v14  ;;  %v6750_v14 = vld [vmem:[#allocation10 + $0x34] ss:$8 sps:$4 sm:$0xff]  }
 0x2da   :  { %5029 = vmatpush2.bf16.msra.mxu0 %v6643_v13  ;;  %4985 = vmatprep.subr.bf16.mxu1 %v6648_v16  ;;  %v6691_v13 = vld [vmem:[#allocation7 + $0x6c8] ss:$16 sps:$4 sm:$0xff]   ;;  %v6748_v16 = vld [vmem:[#allocation10 + $0x30] ss:$8 sps:$4 sm:$0xff]  }
 0x2db   :  { %5030 = vmatprep.subr.bf16.mxu0 %v6651_v32  ;;  %v6696_v32 = vld [vmem:[#allocation7 + $0x6ac] ss:$16 sps:$4 sm:$0xff]  }
 0x2dd   :  { %4986 = vmatpush2.bf16.msra.mxu1 %v6646_v38  ;;  %v6753_v38 = vld [vmem:[#allocation10 + $0x24] ss:$8 sps:$4 sm:$0xff]  }
 0x2de   :  { %5031 = vmatpush2.bf16.msra.mxu0 %v6649_v29  ;;  %4987 = vmatprep.subr.bf16.mxu1 %v6654_v39  ;;  %v6694_v29 = vld [vmem:[#allocation7 + $0x6a8] ss:$16 sps:$4 sm:$0xff]  }
 0x2df   :  { %5032 = vmatprep.subr.bf16.mxu0 %v6657_v18  ;;  %v6699_v18 = vld [vmem:[#allocation7 + $0x68c] ss:$16 sps:$4 sm:$0xff]   ;;  %v6697_v39 = vld [vmem:[#allocation7 + $0x688] ss:$16 sps:$4 sm:$0xff]  }
 0x2e1   :  { %4988 = vmatpush2.bf16.msra.mxu1 %v6652_v21  ;;  %v6754_v21 = vld [vmem:[#allocation10 + $0x10] ss:$8 sps:$4 sm:$0xff]  }
 0x2e2   :  { %5033 = vmatpush2.bf16.msra.mxu0 %v6655_v20  ;;  %4989 = vmatprep.subr.bf16.mxu1 %v6660_v22  ;;  %v6756_v20 = vld [vmem:[#allocation10 + $0x14] ss:$8 sps:$4 sm:$0xff]   ;;  %v6759_v22 = vld [vmem:[#allocation10 + $0x4] ss:$8 sps:$4 sm:$0xff]  }
 0x2e3   :  { %5034 = vmatprep.subr.bf16.mxu0 %v6663_v59  ;;  %v6700_v59 = vld [vmem:[#allocation7 + $0x668] ss:$16 sps:$4 sm:$0xff]  }
 0x2e5   :  { %4990 = vmatpush2.bf16.msra.mxu1 %v6658_v42  ;;  %v6757_v42 = vld [vmem:[#allocation10] ss:$8 sps:$4 sm:$0xff]  }
 0x2e6   :  { %5035 = vmatpush2.bf16.msra.mxu0 %v6661_v24  ;;  %4991 = vmatprep.subr.bf16.mxu1 %v6666_v26  ;;  %v6705_v24 = vld [vmem:[#allocation7 + $0x64c] ss:$16 sps:$4 sm:$0xff]   ;;  %v6762_v26 = vld [vmem:[#allocation10 + $0xf4] ss:$8 sps:$4 sm:$0xff]  }
 0x2e7   :  { %5036 = vmatprep.subr.bf16.mxu0 %v6669_v58  ;;  %v6703_v58 = vld [vmem:[#allocation7 + $0x648] ss:$16 sps:$4 sm:$0xff]  }
 0x2e9   :  { %4992 = vmatpush2.bf16.msra.mxu1 %v6664_v61  ;;  %v6760_v61 = vld [vmem:[#allocation10 + $0xf0] ss:$8 sps:$4 sm:$0xff]  }
 0x2ea   :  { %5037 = vmatpush2.bf16.msra.mxu0 %v6667_v54  ;;  %4993 = vmatprep.subr.bf16.mxu1 %v6672_v41  ;;  %v6708_v54 = vld [vmem:[#allocation7 + $0x62c] ss:$16 sps:$4 sm:$0xff]   ;;  %v6765_v41 = vld [vmem:[#allocation10 + $0xe4] ss:$8 sps:$4 sm:$0xff]  }
 0x2eb   :  { %5038 = vmatprep.subr.bf16.mxu0 %v6675_v25  ;;  %v6706_v25 = vld [vmem:[#allocation7 + $0x628] ss:$16 sps:$4 sm:$0xff]  }
 0x2ed   :  { %4994 = vmatpush2.bf16.msra.mxu1 %v6670_v28  ;;  %v6763_v28 = vld [vmem:[#allocation10 + $0xe0] ss:$8 sps:$4 sm:$0xff]  }
 0x2ee   :  { %5039 = vmatpush2.bf16.msra.mxu0 %v6673_v51  ;;  %4995 = vmatprep.subr.bf16.mxu1 %v6678_v36  ;;  %v6711_v51 = vld [vmem:[#allocation7 + $0x60c] ss:$16 sps:$4 sm:$0xff]   ;;  %v6768_v36 = vld [vmem:[#allocation10 + $0xd4] ss:$8 sps:$4 sm:$0xff]  }
 0x2ef   :  { %5040 = vmatprep.subr.bf16.mxu0 %v6681_v34  ;;  %v6709_v34 = vld [vmem:[#allocation7 + $0x608] ss:$16 sps:$4 sm:$0xff]  }
 0x2f0   :  { %v4839_v48 = vpop.f32.mrf.mxu1 }
 0x2f1   :  { %v4798_v35 = vpop.f32.mrf.mxu0  ;;  %4996 = vmatpush2.bf16.msra.mxu1 %v6676_v43  ;;  %v6712_v43 = vld [vmem:[#allocation7 + $0x7e8] ss:$16 sps:$4 sm:$0xff]  }
 0x2f2   :  { %v4799_v15 = vadd.f32 %v4798_v35, %v3467_v37  ;;  %5041 = vmatpush2.bf16.msra.mxu0 %v6679_v40  ;;  %v4841_v33 = vpop.f32.mrf.mxu1  ;;  %4997 = vmatprep.subr.bf16.mxu1 %v6684_v46  ;;  %v6714_v37 = vld [vmem:[#allocation7 + $0x7ec] ss:$16 sps:$4 sm:$0xff]   ;;  %v6715_v35 = vld [vmem:[#allocation7 + $0x7c8] ss:$16 sps:$4 sm:$0xff]  }
 0x2f3   :  { %v4800_v53 = vpop.f32.mrf.mxu0  ;;  %5496 = vmatprep.subr.bf16.mxu0 %v6738_v45  ;;  %v6766_v40 = vld [vmem:[#allocation10 + $0xd0] ss:$8 sps:$4 sm:$0xff]   ;;  %v6771_v45 = vld [vmem:[#allocation10 + $0xc4] ss:$8 sps:$4 sm:$0xff]   ;;  %v6769_v46 = vld [vmem:[#allocation10 + $0xc0] ss:$8 sps:$4 sm:$0xff]  }
 0x2f4   :  { %v7261_v57 = vadd.f32 %v4839_v48, %v4799_v15  ;;  %v4801_v62 = vadd.f32 %v4800_v53, %v3471_v30  ;;  %v4843_v3 = vpop.f32.mrf.mxu1  ;;  %v6717_v30 = vld [vmem:[#allocation7 + $0x7cc] ss:$16 sps:$4 sm:$0xff]   ;;  %v6774_v15 = vld [vmem:[#allocation10 + $0xb4] ss:$8 sps:$4 sm:$0xff]  }
 0x2f5   :  { %v4802_v31 = vpop.f32.mrf.mxu0  ;;  %5043 = vmatmul.mubr.bf16.vlgmr.msra.gmra.mxu0 %v7233_v27  ;;  %4998 = vmatpush2.bf16.msra.mxu1 %v6682_v19  ;;  %v6693_v27 = vld [vmem:[#allocation7 + $0x6cc] ss:$16 sps:$4 sm:$0xff]   ;;  %v6718_v53 = vld [vmem:[#allocation7 + $0x7a8] ss:$16 sps:$4 sm:$0xff]  }
 0x2f6   :  { %v7264_v1 = vadd.f32 %v4841_v33, %v4801_v62  ;;  %5497 = vmatpush1.bf16.msra.mxu0 %v6736_v60  ;;  %v4844_v17 = vpop.f32.mrf.mxu1  ;;  %4999 = vmatprep.subr.bf16.mxu1 %v6687_v0  ;;  %v6720_v48 = vld [vmem:[#allocation7 + $0x7ac] ss:$16 sps:$4 sm:$0xff]   ;;  %v6777_v19 = vld [vmem:[#allocation10 + $0xa4] ss:$8 sps:$4 sm:$0xff]   ;;  %v6780_v0 = vld [vmem:[#allocation10 + $0x94] ss:$8 sps:$4 sm:$0xff]  }
 0x2f7   :  { %v4803_v6 = vpop.f32.mrf.mxu0  ;;  %5498 = vmatprep.subr.bf16.mxu0 %v6741_v56  ;;  %v6772_v60 = vld [vmem:[#allocation10 + $0xb0] ss:$8 sps:$4 sm:$0xff]   ;;  %v6775_v62 = vld [vmem:[#allocation10 + $0xa0] ss:$8 sps:$4 sm:$0xff]   ;;  %v6721_v33 = vld [vmem:[#allocation7 + $0x788] ss:$16 sps:$4 sm:$0xff]  }
 0x2f8   :  { %v6723_v56 = vld [vmem:[#allocation7 + $0x78c] ss:$16 sps:$4 sm:$0xff]   ;;  %v6783_v6 = vld [vmem:[#allocation10 + $0x84] ss:$8 sps:$4 sm:$0xff]  }
 0x2f9   :  { %5000 = vmatpush2.bf16.msra.mxu1 %v6685_v7  ;;  %v6726_v31 = vld [vmem:[#allocation7 + $0x76c] ss:$16 sps:$4 sm:$0xff]   ;;  %v6727_v17 = vld [vmem:[#allocation7 + $0x748] ss:$16 sps:$4 sm:$0xff]  }
 0x2fa   :  { %5499 = vmatpush1.bf16.msra.mxu0 %v6739_v5  ;;  %5051 = vmatprep.subr.bf16.mxu1 %v6690_v9  ;;  %v6778_v3 = vld [vmem:[#allocation10 + $0x90] ss:$8 sps:$4 sm:$0xff]   ;;  %v6724_v5 = vld [vmem:[#allocation7 + $0x768] ss:$16 sps:$4 sm:$0xff]  }
 0x2fb   :  { %5500 = vmatprep.subr.bf16.mxu0 %v6744_v8  ;;  %v6729_v7 = vld [vmem:[#allocation7 + $0x74c] ss:$16 sps:$4 sm:$0xff]  }
 0x2fc   :  { %5002 = vmatmul.mubr.bf16.vlgmr.msra.gmra.mxu1 %v7209_v50  ;;  %v6751_v50 = vld [vmem:[#allocation10 + $0x20] ss:$8 sps:$4 sm:$0xff]  }
 0x2fd   :  { %5052 = vmatpush1.bf16.msra.mxu1 %v6688_v11  ;;  %5083 = vmatprep.mubr.bf16.mxu1 %v7248_v44  ;;  %v6702_v44 = vld [vmem:[#allocation7 + $0x66c] ss:$16 sps:$4 sm:$0xff]  }
 0x2fe   :  { %5501 = vmatpush1.bf16.msra.mxu0 %v6742_v10  ;;  %5053 = vmatprep.subr.bf16.mxu1 %v6693_v27  ;;  %v6781_v8 = vld [vmem:[#allocation10 + $0x80] ss:$8 sps:$4 sm:$0xff]   ;;  %v6730_v10 = vld [vmem:[#allocation7 + $0x728] ss:$16 sps:$4 sm:$0xff]  }
 0x2ff   :  { %5502 = vmatprep.subr.bf16.mxu0 %v6747_v2  ;;  %v6732_v9 = vld [vmem:[#allocation7 + $0x72c] ss:$16 sps:$4 sm:$0xff]  }
 0x300   :  { %v6735_v11 = vld [vmem:[#allocation7 + $0x70c] ss:$16 sps:$4 sm:$0xff]  }
 0x301   :  { %5054 = vmatpush1.bf16.msra.mxu1 %v6691_v13  ;;  %v6733_v13 = vld [vmem:[#allocation7 + $0x708] ss:$16 sps:$4 sm:$0xff]  }
 0x302   :  { %5503 = vmatpush1.bf16.msra.mxu0 %v6745_v12  ;;  %5055 = vmatprep.subr.bf16.mxu1 %v6696_v32 }
 0x303   :  { %5504 = vmatprep.subr.bf16.mxu0 %v6750_v14 }
 0x305   :  { %5056 = vmatpush1.bf16.msra.mxu1 %v6694_v29  ;;  %v6784_v29 = vld [vmem:[#allocation10 + $0x170] ss:$8 sps:$4 sm:$0xff]  }
 0x306   :  { %5505 = vmatpush1.bf16.msra.mxu0 %v6748_v16  ;;  %5057 = vmatprep.subr.bf16.mxu1 %v6699_v18  ;;  %v6789_v18 = vld [vmem:[#allocation10 + $0x164] ss:$8 sps:$4 sm:$0xff]  }
 0x307   :  { %5506 = vmatprep.subr.bf16.mxu0 %v6753_v38  ;;  %v6786_v38 = vld [vmem:[#allocation10 + $0x174] ss:$8 sps:$4 sm:$0xff]  }
 0x309   :  { %5058 = vmatpush1.bf16.msra.mxu1 %v6697_v39  ;;  %v6790_v39 = vld [vmem:[#allocation10 + $0x150] ss:$8 sps:$4 sm:$0xff]  }
 0x30a   :  { %5507 = vmatpush1.bf16.msra.mxu0 %v6751_v50  ;;  %5059 = vmatprep.subr.bf16.mxu1 %v6702_v44  ;;  %v6787_v50 = vld [vmem:[#allocation10 + $0x160] ss:$8 sps:$4 sm:$0xff]   ;;  %v6798_v44 = vld [vmem:[#allocation10 + $0x134] ss:$8 sps:$4 sm:$0xff]  }
 0x30b   :  { %5508 = vmatprep.subr.bf16.mxu0 %v6756_v20  ;;  %v6795_v20 = vld [vmem:[#allocation10 + $0x144] ss:$8 sps:$4 sm:$0xff]  }
 0x30d   :  { %5060 = vmatpush1.bf16.msra.mxu1 %v6700_v59  ;;  %v6799_v59 = vld [vmem:[#allocation10 + $0x120] ss:$8 sps:$4 sm:$0xff]  }
 0x30e   :  { %5509 = vmatpush1.bf16.msra.mxu0 %v6754_v21  ;;  %5061 = vmatprep.subr.bf16.mxu1 %v6705_v24  ;;  %v6796_v21 = vld [vmem:[#allocation10 + $0x130] ss:$8 sps:$4 sm:$0xff]  }
 0x30f   :  { %5510 = vmatprep.subr.bf16.mxu0 %v6759_v22  ;;  %v6804_v22 = vld [vmem:[#allocation10 + $0x114] ss:$8 sps:$4 sm:$0xff]   ;;  %v6802_v24 = vld [vmem:[#allocation10 + $0x110] ss:$8 sps:$4 sm:$0xff]  }
 0x311   :  { %5062 = vmatpush1.bf16.msra.mxu1 %v6703_v58  ;;  %v6805_v58 = vld [vmem:[#allocation10 + $0x100] ss:$8 sps:$4 sm:$0xff]  }
 0x312   :  { %5511 = vmatpush1.bf16.msra.mxu0 %v6757_v42  ;;  %5063 = vmatprep.subr.bf16.mxu1 %v6708_v54  ;;  %v6807_v42 = vld [vmem:[#allocation10 + $0x104] ss:$8 sps:$4 sm:$0xff]   ;;  %v6808_v54 = vld [vmem:[#allocation10 + $0x1f0] ss:$8 sps:$4 sm:$0xff]  }
 0x313   :  { %5512 = vmatprep.subr.bf16.mxu0 %v6762_v26  ;;  %v6810_v26 = vld [vmem:[#allocation10 + $0x1f4] ss:$8 sps:$4 sm:$0xff]  }
 0x315   :  { %5064 = vmatpush1.bf16.msra.mxu1 %v6706_v25  ;;  %v6811_v25 = vld [vmem:[#allocation10 + $0x1e0] ss:$8 sps:$4 sm:$0xff]  }
 0x316   :  { %5513 = vmatpush2.bf16.msra.mxu0 %v6760_v61  ;;  %5065 = vmatprep.subr.bf16.mxu1 %v6711_v51  ;;  %v6813_v61 = vld [vmem:[#allocation10 + $0x1e4] ss:$8 sps:$4 sm:$0xff]   ;;  %v6814_v51 = vld [vmem:[#allocation10 + $0x1d0] ss:$8 sps:$4 sm:$0xff]  }
 0x317   :  { %5514 = vmatprep.subr.bf16.mxu0 %v6765_v41  ;;  %v6816_v41 = vld [vmem:[#allocation10 + $0x1d4] ss:$8 sps:$4 sm:$0xff]  }
 0x319   :  { %5066 = vmatpush1.bf16.msra.mxu1 %v6709_v34  ;;  %v6817_v34 = vld [vmem:[#allocation10 + $0x1c0] ss:$8 sps:$4 sm:$0xff]  }
 0x31a   :  { %5515 = vmatpush2.bf16.msra.mxu0 %v6763_v28  ;;  %5067 = vmatprep.subr.bf16.mxu1 %v6714_v37  ;;  %v6819_v28 = vld [vmem:[#allocation10 + $0x1c4] ss:$8 sps:$4 sm:$0xff]   ;;  %v6820_v37 = vld [vmem:[#allocation10 + $0x1b0] ss:$8 sps:$4 sm:$0xff]  }
 0x31b   :  { %5516 = vmatprep.subr.bf16.mxu0 %v6768_v36  ;;  %v6822_v36 = vld [vmem:[#allocation10 + $0x1b4] ss:$8 sps:$4 sm:$0xff]  }
 0x31d   :  { %5068 = vmatpush2.bf16.msra.mxu1 %v6712_v43 }
 0x31e   :  { %5517 = vmatpush2.bf16.msra.mxu0 %v6766_v40  ;;  %5069 = vmatprep.subr.bf16.mxu1 %v6717_v30  ;;  %v6825_v40 = vld [vmem:[#allocation10 + $0x1a4] ss:$8 sps:$4 sm:$0xff]   ;;  %v6823_v30 = vld [vmem:[#allocation10 + $0x1a0] ss:$8 sps:$4 sm:$0xff]  }
 0x31f   :  { %5518 = vmatprep.subr.bf16.mxu0 %v6771_v45 }
 0x321   :  { %5070 = vmatpush2.bf16.msra.mxu1 %v6715_v35 }
 0x322   :  { %5519 = vmatpush2.bf16.msra.mxu0 %v6769_v46  ;;  %5071 = vmatprep.subr.bf16.mxu1 %v6720_v48  ;;  %v6828_v48 = vld [vmem:[#allocation10 + $0x194] ss:$8 sps:$4 sm:$0xff]  }
 0x323   :  { %5520 = vmatprep.subr.bf16.mxu0 %v6774_v15 }
 0x325   :  { %5072 = vmatpush2.bf16.msra.mxu1 %v6718_v53  ;;  %v6826_v53 = vld [vmem:[#allocation10 + $0x190] ss:$8 sps:$4 sm:$0xff]  }
 0x326   :  { %5521 = vmatpush2.bf16.msra.mxu0 %v6772_v60  ;;  %5073 = vmatprep.subr.bf16.mxu1 %v6723_v56 }
 0x327   :  { %5522 = vmatprep.subr.bf16.mxu0 %v6777_v19 }
 0x329   :  { %5074 = vmatpush2.bf16.msra.mxu1 %v6721_v33 }
 0x32a   :  { %5523 = vmatpush2.bf16.msra.mxu0 %v6775_v62  ;;  %5075 = vmatprep.subr.bf16.mxu1 %v6726_v31 }
 0x32b   :  { %5524 = vmatprep.subr.bf16.mxu0 %v6780_v0  ;;  %v6831_v0 = vld [vmem:[#allocation10 + $0x184] ss:$8 sps:$4 sm:$0xff]  }
 0x32d   :  { %5076 = vmatpush2.bf16.msra.mxu1 %v6724_v5 }
 0x32e   :  { %5525 = vmatpush2.bf16.msra.mxu0 %v6778_v3  ;;  %5077 = vmatprep.subr.bf16.mxu1 %v6729_v7  ;;  %v6829_v3 = vld [vmem:[#allocation10 + $0x180] ss:$8 sps:$4 sm:$0xff]  }
 0x32f   :  { %5526 = vmatprep.subr.bf16.mxu0 %v6783_v6 }
 0x331   :  { %5078 = vmatpush2.bf16.msra.mxu1 %v6727_v17 }
 0x332   :  { %5527 = vmatpush2.bf16.msra.mxu0 %v6781_v8  ;;  %5079 = vmatprep.subr.bf16.mxu1 %v6732_v9  ;;  %v3475_v9 = vrot.slane %v7255_v55, %v540_v23 }
 0x335   :  { %v4880_v27 = vpop.f32.mrf.mxu0  ;;  %5080 = vmatpush2.bf16.msra.mxu1 %v6730_v10 }
 0x336   :  { %v7269_v2 = vadd.f32 %v4880_v27, %v7261_v57  ;;  %5081 = vmatprep.subr.bf16.mxu1 %v6735_v11  ;;  %v6792_v57 = vld [vmem:[#allocation10 + $0x154] ss:$8 sps:$4 sm:$0xff]   ;;  %v3479_v11 = vrot.slane %v7255_v55, %v544_v49 }
 0x337   :  { %v4882_v12 = vpop.f32.mrf.mxu0 }
 0x338   :  { %v7272_v14 = vadd.f32 %v4882_v12, %v7264_v1  ;;  %v6793_v1 = vld [vmem:[#allocation10 + $0x140] ss:$8 sps:$4 sm:$0xff]  }
 0x339   :  { %v4884_v32 = vpop.f32.mrf.mxu0  ;;  %5082 = vmatpush2.bf16.msra.mxu1 %v6733_v13 }
 0x33a   :  { %5537 = vmatprep.subr.bf16.mxu1 %v6786_v38 }
 0x33b   :  { %v4885_v16 = vpop.f32.mrf.mxu0 }
 0x33c   :  { %5084 = vmatmul.mubr.bf16.vlgmr.msra.gmra.mxu1 %v7250_v47  ;;  %v6801_v47 = vld [vmem:[#allocation10 + $0x124] ss:$8 sps:$4 sm:$0xff]  }
 0x33d   :  { %5538 = vmatpush1.bf16.msra.mxu1 %v6784_v29 }
 0x33e   :  { %5539 = vmatprep.subr.bf16.mxu1 %v6789_v18 }
 0x341   :  { %5540 = vmatpush1.bf16.msra.mxu1 %v6787_v50 }
 0x342   :  { %5541 = vmatprep.subr.bf16.mxu1 %v6792_v57 }
 0x345   :  { %5542 = vmatpush1.bf16.msra.mxu1 %v6790_v39 }
 0x346   :  { %5543 = vmatprep.subr.bf16.mxu1 %v6795_v20 }
 0x349   :  { %5544 = vmatpush1.bf16.msra.mxu1 %v6793_v1 }
 0x34a   :  { %5545 = vmatprep.subr.bf16.mxu1 %v6798_v44 }
 0x34d   :  { %5546 = vmatpush1.bf16.msra.mxu1 %v6796_v21 }
 0x34e   :  { %5547 = vmatprep.subr.bf16.mxu1 %v6801_v47 }
 0x351   :  { %5548 = vmatpush1.bf16.msra.mxu1 %v6799_v59 }
 0x352   :  { %5549 = vmatprep.subr.bf16.mxu1 %v6804_v22 }
 0x355   :  { %5550 = vmatpush1.bf16.msra.mxu1 %v6802_v24 }
 0x356   :  { %5551 = vmatprep.subr.bf16.mxu1 %v6807_v42  ;;  %v5164_v42 = vld [vmem:[#allocation11] sm:$0x3] }
 0x359   :  { %5552 = vmatpush1.bf16.msra.mxu1 %v6805_v58  ;;  %v5169_v58 = vrot.slane %v5164_v42, %v7131_v63 }
 0x35a   :  { %5553 = vmatprep.subr.bf16.mxu1 %v6810_v26  ;;  %v5173_v26 = vrot.slane %v5164_v42, %v7136_v4 }
 0x35d   :  { %5554 = vmatpush2.bf16.msra.mxu1 %v6808_v54 }
 0x35e   :  { %5555 = vmatprep.subr.bf16.mxu1 %v6813_v61 }
 0x361   :  { %5556 = vmatpush2.bf16.msra.mxu1 %v6811_v25  ;;  %v5580_v25 = vld [vmem:[#allocation13] sm:$0x3] }
 0x362   :  { %5557 = vmatprep.subr.bf16.mxu1 %v6816_v41 }
 0x365   :  { %5558 = vmatpush2.bf16.msra.mxu1 %v6814_v51 }
 0x366   :  { %5559 = vmatprep.subr.bf16.mxu1 %v6819_v28 }
 0x369   :  { %5560 = vmatpush2.bf16.msra.mxu1 %v6817_v34 }
 0x36a   :  { %5561 = vmatprep.subr.bf16.mxu1 %v6822_v36 }
 0x36d   :  { %5562 = vmatpush2.bf16.msra.mxu1 %v6820_v37  ;;  %v5585_v37 = vrot.slane %v5580_v25, %v7131_v63 }
 0x36e   :  { %5563 = vmatprep.subr.bf16.mxu1 %v6825_v40  ;;  %v5589_v40 = vrot.slane %v5580_v25, %v7136_v4 }
 0x371   :  { %5564 = vmatpush2.bf16.msra.mxu1 %v6823_v30 }
 0x372   :  { %5565 = vmatprep.subr.bf16.mxu1 %v6828_v48  ;;  %v6337_v48 = vld [vmem:[#allocation2] ss:$0 sm:$0xff] }
 0x375   :  { %v4962_v43 = vpop.f32.mrf.mxu0  ;;  %5566 = vmatpush2.bf16.msra.mxu1 %v6826_v53 }
 0x376   :  { %5567 = vmatprep.subr.bf16.mxu1 %v6831_v0 }
 0x377   :  { %v4964_v45 = vpop.f32.mrf.mxu0 }
 0x378   :  { %v4965_v13 = vadd.f32 %v4964_v45, %v3479_v11 }
 0x379   :  { %v4966_v46 = vpop.f32.mrf.mxu0  ;;  %5568 = vmatpush2.bf16.msra.mxu1 %v6829_v3 }
 0x37b   :  { %v4967_v35 = vpop.f32.mrf.mxu0 }
 0x37c   :  { %v4921_v15 = vpop.f32.mrf.mxu1 }
 0x37d   :  { %v4922_v60 = vadd.f32 %v4921_v15, %v7269_v2  ;;  %v4963_v2 = vadd.f32 %v4962_v43, %v3475_v9 }
 0x37e   :  { %v4923_v19 = vpop.f32.mrf.mxu1 }
 0x37f   :  { %v4924_v56 = vadd.f32 %v4923_v19, %v7272_v14  ;;  %v5092_v62 = vmax.f32 %v4922_v60, 0.0 }
 0x380   :  { %v4925_v33 = vpop.f32.mrf.mxu1 }
 0x381   :  { %v5093_v31 = vmax.f32 %v4924_v56, 0.0  ;;  %v5096_v7 = vpack.c.bf16 %v5092_v62, %v5092_v62 }
 0x382   :  { %v4926_v5 = vpop.f32.mrf.mxu1 }
 0x383   :  { %v5097_v6 = vpack.c.bf16 %v5093_v31, %v5093_v31 }
 0x385   :  { %5528 = vmatprep.mubr.bf16.mxu0 %v5097_v6 }
 0x386   :  { %5529 = vmatmul.mubr.bf16.vlgmr.msra.gmra.mxu0 %v5096_v7 }
 0x3b5   :  { %v5044_v8 = vpop.f32.mrf.mxu0 }
 0x3b7   :  { %v5046_v17 = vpop.f32.mrf.mxu0 }
 0x3b9   :  { %v5048_v10 = vpop.f32.mrf.mxu0 }
 0x3bb   :  { %v5049_v27 = vpop.f32.mrf.mxu0 }
 0x3bc   :  { %v5003_v12 = vpop.f32.mrf.mxu1 }
 0x3bd   :  { %v5004_v14 = vadd.f32 %v5003_v12, %v4963_v2 }
 0x3be   :  { %v5005_v32 = vpop.f32.mrf.mxu1 }
 0x3bf   :  { %v5006_v16 = vadd.f32 %v5005_v32, %v4965_v13  ;;  %v5045_v29 = vadd.f32 %v5044_v8, %v5004_v14 }
 0x3c0   :  { %v5007_v38 = vpop.f32.mrf.mxu1 }
 0x3c1   :  { %v5047_v18 = vadd.f32 %v5046_v17, %v5006_v16 }
 0x3c2   :  { %v5008_v50 = vpop.f32.mrf.mxu1 }
 0x3fc   :  { %v5085_v57 = vpop.f32.mrf.mxu1 }
 0x3fd   :  { %v5086_v39 = vadd.f32 %v5085_v57, %v5045_v29 }
 0x3fe   :  { %v5087_v20 = vpop.f32.mrf.mxu1 }
 0x3ff   :  { %v5088_v23 = vadd.f32 %v5087_v20, %v5047_v18  ;;  %v5094_v1 = vmax.f32 %v5086_v39, 0.0 }
 0x400   :  { %v5089_v44 = vpop.f32.mrf.mxu1 }
 0x401   :  { %v5095_v52 = vmax.f32 %v5088_v23, 0.0  ;;  %v5098_v55 = vpack.c.bf16 %v5094_v1, %v5094_v1 }
 0x402   :  { %v5090_v21 = vpop.f32.mrf.mxu1 }
 0x403   :  { %v5099_v49 = vpack.c.bf16 %v5095_v52, %v5095_v52 }
 0x405   :  { %5569 = vmatprep.mubr.bf16.mxu1 %v5099_v49 }
 0x406   :  { %5570 = vmatmul.mubr.bf16.vlgmr.msra.gmra.mxu1 %v5098_v55 }
 0x446   :  { %v5530_v47 = vpop.f32.mrf.mxu0 }
 0x447   :  { %v5531_v54 = vadd.f32 %v5530_v47, %v5169_v58 }
 0x448   :  { %v5532_v59 = vpop.f32.mrf.mxu0 }
 0x449   :  { %v5533_v41 = vadd.f32 %v5532_v59, %v5173_v26 }
 0x44a   :  { %v5534_v22 = vpop.f32.mrf.mxu0 }
 0x44c   :  { %v5535_v24 = vpop.f32.mrf.mxu0 }
 0x4c6   :  { %v5571_v61 = vpop.f32.mrf.mxu1 }
 0x4c7   :  { %v5572_v51 = vadd.f32 %v5571_v61, %v5531_v54 }
 0x4c8   :  { %v5573_v28 = vpop.f32.mrf.mxu1 }
 0x4c9   :  { %v5578_v34 = vmax.f32 %v5572_v51, 0.0  ;;  %v5574_v36 = vadd.f32 %v5573_v28, %v5533_v41 }
 0x4ca   :  { %v5575_v43 = vpop.f32.mrf.mxu1 }
 0x4cb   :  { %v5579_v45 = vmax.f32 %v5574_v36, 0.0  ;;  %v5592_v46 = vmul.f32 %v5585_v37, %v5578_v34 }
 0x4cc   :  { %v5576_v30 = vpop.f32.mrf.mxu1 }
 0x4cd   :  { %v5593_v35 = vmul.f32 %v5589_v40, %v5579_v45 }
 0x4cf   :  { %v5594_v15 = vadd.f32 %v5593_v35, %v5592_v46 }
 0x4d1   :  { %5595 = vadd.xlane.f32.xlu0 %v5594_v15 }
 0x55a   :  { %v5596_v60 = vpop.xlane.xlu0 %5595 }
 0x55b   :  { %v5604_v53 = vadd.f32 %v6337_v48, %v5596_v60 }
 0x55d   :  { %v5605_v19 = vsub.f32 0.0, %v5604_v53 }
 0x55f   :  { %v5606_v56 = vmul.f32 1.442695, %v5605_v19 }
 0x561   :  { %6832 = vpow2.f32 %v5606_v56 }
 0x56e   :  { %v6833_v62 = vpop.eup %6832 }
 0x56f   :  { %v5608_v33 = vadd.f32 1.0, %v6833_v62 }
 0x571   :  { %6834 = vrcp.f32 %v5608_v33 }
 0x57e   :  { %v6835_v63 = vpop.eup %6834 }
 0x57f   :  { %5612 = vst.msk [vmem:[%s7299_s9] sm:$0xff] %vm5611_vm1, %v6835_v63 }
 0x580   :  { %5617 = vsyncpa [#allocation4], 1 }
 0x581   :  { %5618 = vsyncpa [#allocation6], 1 }
 0x582   :  { %5619 = vsyncpa [#allocation9], 1 }
 0x583   :  { %5620 = vsyncpa [#allocation12], 1 }

</bundles_post_ra>
